<compile_context>
chip_gen: v5e
topology: v5e:2x2
jax: 0.10.0
libtpu: 0.0.40
codegen_flags: <defaults>
</compile_context>

<pallas_src>
import functools

import jax
import jax.numpy as jnp
from jax.experimental import pallas as pl
from jax.experimental.pallas import tpu as pltpu


def _round_up(x, m):
    return ((x + m - 1) // m) * m


def _pick_tk(k_pad, target=1536):
    """Largest 128-multiple divisor of k_pad that is <= target (K-stream block)."""
    cands = [d for d in range(128, k_pad + 1, 128) if k_pad % d == 0]
    le = [d for d in cands if d <= target]
    return max(le) if le else min(cands)


# ---------------------------------------------------------------------------
# Fused kernel
# ---------------------------------------------------------------------------
def _w2v_fused_kernel(*refs, layer_cfg, batch, tk, l_feat_pad, kt):
    """Whole W2VModel forward for one batch of inputs.

    Grid: (kt,) — streaming the fc1 weight over its (padded) K dimension.
    Step 0 additionally runs the conv stack and fills the VMEM feature buffer.
    Ref order: inputs, output, scratch:
      x, [w_mat, scale, shift] per conv layer, fc1_w_blk, fc1_b, fc2_w, fc2_b,
      out, [xpad, slab] per conv layer, feat, acc
    """
    n_layers = len(layer_cfg)
    it = iter(refs)
    x_ref = next(it)
    conv_params = [(next(it), next(it), next(it)) for _ in range(n_layers)]
    w1_ref = next(it)
    b1_ref = next(it)
    w2_ref = next(it)
    b2_ref = next(it)
    o_ref = next(it)
    conv_scratch = [(next(it), next(it)) for _ in range(n_layers)]
    feat_ref = next(it)
    acc_ref = next(it)

    j = pl.program_id(0)

    @pl.when(j == 0)
    def _convs_and_init():
        acc_ref[...] = jnp.zeros_like(acc_ref)
        feat_ref[...] = jnp.zeros_like(feat_ref)  # zeros in the lane-pad region
        for b in range(batch):                    # static loop, B is tiny
            cur = x_ref[b]                        # (C_in0, L0) f32, NCW
            for li, (c_in, c_out, ksz, stride, pad, l_in, l_out) in enumerate(layer_cfg):
                w_ref, s_ref, t_ref = conv_params[li]
                xp_ref, slab_ref = conv_scratch[li]
                # zero-padded input (length on lanes)
                xp_ref[...] = jnp.zeros_like(xp_ref)
                xp_ref[:, pl.ds(pad, l_in)] = cur
                # im2col: slab[k*c_in + ci, l] = x_pad[ci, l*stride + k]
                for k in range(ksz):
                    if stride == 1:
                        piece = xp_ref[:, pl.ds(k, l_out)]
                    else:
                        # TODO(synk): lane-strided reads (stride>1) are untested on
                        # this layout; demo config uses stride=1.
                        piece = xp_ref[:, pl.ds(k, l_out, stride=stride)]
                    slab_ref[pl.ds(k * c_in, c_in), :] = piece
                # one MXU dot per conv layer + folded BN (eval) + ReLU
                y = jnp.dot(w_ref[...], slab_ref[...],
                            preferred_element_type=jnp.float32)   # (c_out, l_out)
                cur = jnp.maximum(y * s_ref[...] + t_ref[...], 0.0)
            # cur: (hidden, l_final) channel-major == PyTorch view(-1, 6669) order.
            # Scatter each channel row into the lane-padded feature buffer.
            hidden, l_final = cur.shape
            for c in range(hidden):
                feat_ref[pl.ds(b, 1), pl.ds(c * l_feat_pad, l_final)] = cur[c:c + 1, :]

    # Streamed fc1: acc += feat[:, j*tk : (j+1)*tk] @ W1_blk   (bf16 in, f32 acc)
    off = pl.multiple_of(j * tk, 128)
    lhs = feat_ref[:, pl.ds(off, tk)].astype(jnp.bfloat16)
    acc_ref[...] += jnp.dot(lhs, w1_ref[...], preferred_element_type=jnp.float32)

    @pl.when(j == kt - 1)
    def _finalize():
        h1 = jnp.maximum(acc_ref[...] + b1_ref[...], 0.0)          # (B, 512) f32
        y2 = jnp.dot(h1.astype(jnp.bfloat16), w2_ref[...],
                     preferred_element_type=jnp.float32)           # (B, 256)
        o_ref[...] = jnp.maximum(y2 + b2_ref[...], 0.0)


# ---------------------------------------------------------------------------
# Wrapper
# ---------------------------------------------------------------------------
def w2v_forward(params, x_ncw):
    """x_ncw: (B, C_in, L) float32 — PyTorch NCW layout for Conv1d."""
    cfg = params["cfg"]
    layer_cfg = cfg["layer_cfg"]
    tk, kt = cfg["tk"], cfg["kt"]
    l_feat_pad, k_pad = cfg["l_feat_pad"], cfg["k_pad"]
    batch = x_ncw.shape[0]
    n1_pad = params["fc1_w_p"].shape[1]
    n2_pad = params["fc2_w_p"].shape[1]

    kern = functools.partial(
        _w2v_fused_kernel, layer_cfg=layer_cfg, batch=batch, tk=tk,
        l_feat_pad=l_feat_pad, kt=kt)

    in_specs = [pl.BlockSpec(x_ncw.shape, lambda j: (0, 0, 0))]
    args = [x_ncw]
    for layer in params["layers"]:
        for name in ("w_mat", "scale", "shift"):
            a = layer[name]
            in_specs.append(pl.BlockSpec(a.shape, lambda j: (0, 0)))
            args.append(a)
    # fc1 weight: streamed over K in (tk, n1_pad) blocks (double-buffered DMA)
    in_specs.append(pl.BlockSpec((tk, n1_pad), lambda j: (j, 0)))
    args.append(params["fc1_w_p"])
    for a in (params["fc1_b_p"], params["fc2_w_p"], params["fc2_b_p"]):
        in_specs.append(pl.BlockSpec(a.shape, lambda j: (0, 0)))
        args.append(a)

    scratch_shapes = []
    for (c_in, c_out, ksz, stride, pad, l_in, l_out) in layer_cfg:
        scratch_shapes.append(pltpu.VMEM((c_in, l_in + 2 * pad), jnp.float32))  # padded in
        scratch_shapes.append(pltpu.VMEM((ksz * c_in, l_out), jnp.float32))     # im2col slab
    scratch_shapes.append(pltpu.VMEM((batch, k_pad), jnp.float32))   # flattened features
    scratch_shapes.append(pltpu.VMEM((batch, n1_pad), jnp.float32))  # fc1 accumulator

    out = pl.pallas_call(
        kern,
        out_shape=jax.ShapeDtypeStruct((batch, n2_pad), jnp.float32),
        grid_spec=pltpu.PrefetchScalarGridSpec(
            num_scalar_prefetch=0,
            grid=(kt,),
            in_specs=in_specs,
            out_specs=pl.BlockSpec((batch, n2_pad), lambda j: (0, 0)),
            scratch_shapes=scratch_shapes,
        ),
        compiler_params=pltpu.CompilerParams(
            dimension_semantics=("arbitrary",),      # K-reduction axis
            vmem_limit_bytes=32 * 1024 * 1024,       # fits v5e/v6e/v7x; need ~3 MiB
        ),
    )(*args)
    return out[:, :cfg["out_dim"]]


# ---------------------------------------------------------------------------
# Deterministic parameter init (matches the PyTorch module's shapes) + prep
# ---------------------------------------------------------------------------
def init_params(key, input_dim, hidden_dim, strides, filter_sizes, paddings, seq_len):
    assert len(strides) == len(filter_sizes) == len(paddings)
    eps = 1e-5
    layers, layer_cfg = [], []
    c_in, l_in = input_dim, seq_len
    for s, fs, pad in zip(strides, filter_sizes, paddings):
        key, kw, kb, kg, kbeta = jax.random.split(key, 5)
        bound = 1.0 / (c_in * fs) ** 0.5
        w_oik = jax.random.uniform(kw, (hidden_dim, c_in, fs), jnp.float32, -bound, bound)
        b = jax.random.uniform(kb, (hidden_dim,), jnp.float32, -bound, bound)
        gamma = jax.random.uniform(kg, (hidden_dim,), jnp.float32, 0.5, 1.5)
        beta = jax.random.uniform(kbeta, (hidden_dim,), jnp.float32, -0.1, 0.1)
        running_mean = jnp.zeros((hidden_dim,), jnp.float32)
        running_var = jnp.ones((hidden_dim,), jnp.float32)
        scale = gamma / jnp.sqrt(running_var + eps)
        shift = beta + (b - running_mean) * scale
        l_out = (l_in + 2 * pad - fs) // s + 1
        layers.append(dict(
            # kernel-ready: (C_out, K*C_in), column order (k, c_in) to match im2col
            w_mat=jnp.transpose(w_oik, (0, 2, 1)).reshape(hidden_dim, fs * c_in),
            scale=scale.reshape(-1, 1),   # (C_out, 1): channels on sublanes (NCW)
            shift=shift.reshape(-1, 1),
            # raw tensors kept for the pure-JAX reference
            w_oik=w_oik, b=b, gamma=gamma, beta=beta,
            running_mean=running_mean, running_var=running_var, eps=eps,
            stride=s, padding=pad,
        ))
        layer_cfg.append((c_in, hidden_dim, fs, s, pad, l_in, l_out))
        c_in, l_in = hidden_dim, l_out

    l_final = l_in
    assert hidden_dim * l_final == 6669, (hidden_dim, l_final)

    key, k1, kb1, k2, kb2 = jax.random.split(key, 5)
    bound1 = 1.0 / 6669 ** 0.5
    fc1_w = jax.random.uniform(k1, (6669, 500), jnp.float32, -bound1, bound1)
    fc1_b = jax.random.uniform(kb1, (500,), jnp.float32, -bound1, bound1)
    bound2 = 1.0 / 500 ** 0.5
    fc2_w = jax.random.uniform(k2, (500, 255), jnp.float32, -bound2, bound2)
    fc2_b = jax.random.uniform(kb2, (255,), jnp.float32, -bound2, bound2)

    # ---- kernel-ready FC params (offline repack / pad / bf16) --------------
    l_feat_pad = _round_up(l_final, 128)            # 247 -> 256 per channel
    k_pad = hidden_dim * l_feat_pad                 # 27 * 256 = 6912
    n1_pad = _round_up(500, 128)                    # 512
    n2_pad = _round_up(255, 128)                    # 256

    w1_3d = fc1_w.reshape(hidden_dim, l_final, 500)          # channel-major rows
    w1_pad = jnp.zeros((hidden_dim, l_feat_pad, n1_pad), jnp.float32)
    w1_pad = w1_pad.at[:, :l_final, :500].set(w1_3d)
    fc1_w_p = w1_pad.reshape(k_pad, n1_pad).astype(jnp.bfloat16)
    fc1_b_p = jnp.zeros((1, n1_pad), jnp.float32).at[0, :500].set(fc1_b)
    fc2_w_p = (jnp.zeros((n1_pad, n2_pad), jnp.float32)
               .at[:500, :255].set(fc2_w).astype(jnp.bfloat16))
    fc2_b_p = jnp.zeros((1, n2_pad), jnp.float32).at[0, :255].set(fc2_b)

    tk = _pick_tk(k_pad)
    kt = k_pad // tk

    return dict(
        layers=layers,
        fc1_w_p=fc1_w_p, fc1_b_p=fc1_b_p, fc2_w_p=fc2_w_p, fc2_b_p=fc2_b_p,
        fc1_w=fc1_w, fc1_b=fc1_b, fc2_w=fc2_w, fc2_b=fc2_b,
        cfg=dict(layer_cfg=tuple(layer_cfg), l_feat_pad=l_feat_pad, k_pad=k_pad,
                 tk=tk, kt=kt, out_dim=255),
    )


# ---------------------------------------------------------------------------
# Pure-JAX reference (f32) for a numerical sanity check
# ---------------------------------------------------------------------------
def reference_forward(params, x_ncw):
    x = x_ncw
    for layer in params["layers"]:
        y = jax.lax.conv_general_dilated(
            x, layer["w_oik"],
            window_strides=(layer["stride"],),
            padding=[(layer["padding"], layer["padding"])],
            dimension_numbers=("NCH", "OIH", "NCH"))
        y = y + layer["b"][None, :, None]
        inv = layer["gamma"] / jnp.sqrt(layer["running_var"] + layer["eps"])
        y = ((y - layer["running_mean"][None, :, None]) * inv[None, :, None]
             + layer["beta"][None, :, None])
        x = jnp.maximum(y, 0.0)
    x = x.reshape(-1, 6669)
    x = jnp.maximum(x @ params["fc1_w"] + params["fc1_b"], 0.0)
    x = jnp.maximum(x @ params["fc2_w"] + params["fc2_b"], 0.0)
    return x


# ---------------------------------------------------------------------------
if __name__ == "__main__":
    # Shapes constrained by the module's hard-coded view(-1, 6669):
    # hidden_dim * L_out = 27 * 247 = 6669.
    batch = 2
    input_dim = 4
    hidden_dim = 27
    strides = [1, 1]
    filter_sizes = [3, 3]
    paddings = [1, 1]
    seq_len = 247

    key = jax.random.PRNGKey(0)
    key, kx = jax.random.split(key)
    x = jax.random.normal(kx, (batch, input_dim, seq_len), jnp.float32)

    params = init_params(key, input_dim, hidden_dim, strides, filter_sizes,
                         paddings, seq_len)

    out = jax.block_until_ready(w2v_forward(params, x))
    assert out.shape == (batch, 255), out.shape

    ref = jax.block_until_ready(reference_forward(params, x))
    assert jnp.allclose(out, ref, rtol=5e-2, atol=5e-2), (
        float(jnp.max(jnp.abs(out - ref))))

    print("KERNEL_OK")
</pallas_src>

<mosaic_0001>
module attributes {stable_mosaic.version = 11 : i64} {
  func.func @_w2v_fused_kernel(%arg0: i32, %arg1: memref<2x4x247xf32, #tpu.memory_space<vmem>>, %arg2: memref<27x12xf32, #tpu.memory_space<vmem>>, %arg3: memref<27x1xf32, #tpu.memory_space<vmem>>, %arg4: memref<27x1xf32, #tpu.memory_space<vmem>>, %arg5: memref<27x81xf32, #tpu.memory_space<vmem>>, %arg6: memref<27x1xf32, #tpu.memory_space<vmem>>, %arg7: memref<27x1xf32, #tpu.memory_space<vmem>>, %arg8: memref<1152x512xbf16, #tpu.memory_space<vmem>>, %arg9: memref<1x512xf32, #tpu.memory_space<vmem>>, %arg10: memref<512x256xbf16, #tpu.memory_space<vmem>>, %arg11: memref<1x256xf32, #tpu.memory_space<vmem>>, %arg12: memref<2x256xf32, #tpu.memory_space<vmem>>, %arg13: memref<4x249xf32, #tpu.memory_space<vmem>>, %arg14: memref<12x247xf32, #tpu.memory_space<vmem>>, %arg15: memref<27x249xf32, #tpu.memory_space<vmem>>, %arg16: memref<81x247xf32, #tpu.memory_space<vmem>>, %arg17: memref<2x6912xf32, #tpu.memory_space<vmem>>, %arg18: memref<2x512xf32, #tpu.memory_space<vmem>>) attributes {dimension_semantics = [#tpu.dimension_semantics<arbitrary>], iteration_bounds = array<i64: 6>, scalar_prefetch = 0 : i64, scratch_operands = 6 : i64, tpu.core_type = #tpu.core_type<tc>, window_params = [{pipeline_mode = #tpu.pipeline_mode<synchronous>, transform_indices = @transform_0, window_bounds = array<i64: 2, 4, 247>}, {pipeline_mode = #tpu.pipeline_mode<synchronous>, transform_indices = @transform_1, window_bounds = array<i64: 27, 12>}, {pipeline_mode = #tpu.pipeline_mode<synchronous>, transform_indices = @transform_2, window_bounds = array<i64: 27, 1>}, {pipeline_mode = #tpu.pipeline_mode<synchronous>, transform_indices = @transform_3, window_bounds = array<i64: 27, 1>}, {pipeline_mode = #tpu.pipeline_mode<synchronous>, transform_indices = @transform_4, window_bounds = array<i64: 27, 81>}, {pipeline_mode = #tpu.pipeline_mode<synchronous>, transform_indices = @transform_5, window_bounds = array<i64: 27, 1>}, {pipeline_mode = #tpu.pipeline_mode<synchronous>, transform_indices = @transform_6, window_bounds = array<i64: 27, 1>}, {transform_indices = @transform_7, window_bounds = array<i64: 1152, 512>}, {pipeline_mode = #tpu.pipeline_mode<synchronous>, transform_indices = @transform_8, window_bounds = array<i64: 1, 512>}, {pipeline_mode = #tpu.pipeline_mode<synchronous>, transform_indices = @transform_9, window_bounds = array<i64: 512, 256>}, {pipeline_mode = #tpu.pipeline_mode<synchronous>, transform_indices = @transform_10, window_bounds = array<i64: 1, 256>}, {pipeline_mode = #tpu.pipeline_mode<synchronous>, transform_indices = @transform_11, window_bounds = array<i64: 2, 256>}]} {
    %c0_i32 = arith.constant 0 : i32
    %0 = arith.cmpi eq, %arg0, %c0_i32 : i32
    %1 = arith.extui %0 : i1 to i32
    %c0_i32_0 = arith.constant 0 : i32
    %2 = arith.cmpi ne, %1, %c0_i32_0 : i32
    scf.if %2 {
      %cst_8 = arith.constant 0.000000e+00 : f32
      %16 = vector.broadcast %cst_8 : f32 to vector<2x512xf32>
      %c0_9 = arith.constant 0 : index
      %c0_10 = arith.constant 0 : index
      %17 = vector.load %arg18[%c0_9, %c0_10] : memref<2x512xf32, #tpu.memory_space<vmem>>, vector<2x512xf32>
      tpu.vector_store %arg18[%c0_9, %c0_10], %16 {strides = array<i32>} : memref<2x512xf32, #tpu.memory_space<vmem>>, vector<2x512xf32>,
      %cst_11 = arith.constant 0.000000e+00 : f32
      %18 = vector.broadcast %cst_11 : f32 to vector<2x6912xf32>
      %c0_12 = arith.constant 0 : index
      %c0_13 = arith.constant 0 : index
      %19 = vector.load %arg17[%c0_12, %c0_13] : memref<2x6912xf32, #tpu.memory_space<vmem>>, vector<2x6912xf32>
      tpu.vector_store %arg17[%c0_12, %c0_13], %18 {strides = array<i32>} : memref<2x6912xf32, #tpu.memory_space<vmem>>, vector<2x6912xf32>,
      %c0_14 = arith.constant 0 : index
      %c0_15 = arith.constant 0 : index
      %c0_16 = arith.constant 0 : index
      %20 = vector.load %arg1[%c0_14, %c0_15, %c0_16] : memref<2x4x247xf32, #tpu.memory_space<vmem>>, vector<1x4x247xf32>
      %21 = vector.shape_cast %20 : vector<1x4x247xf32> to vector<4x247xf32>
      %cst_17 = arith.constant 0.000000e+00 : f32
      %22 = vector.broadcast %cst_17 : f32 to vector<4x249xf32>
      %c0_18 = arith.constant 0 : index
      %c0_19 = arith.constant 0 : index
      %23 = vector.load %arg13[%c0_18, %c0_19] : memref<4x249xf32, #tpu.memory_space<vmem>>, vector<4x249xf32>
      tpu.vector_store %arg13[%c0_18, %c0_19], %22 {strides = array<i32>} : memref<4x249xf32, #tpu.memory_space<vmem>>, vector<4x249xf32>,
      %c0_20 = arith.constant 0 : index
      %c1 = arith.constant 1 : index
      %24 = vector.load %arg13[%c0_20, %c1] : memref<4x249xf32, #tpu.memory_space<vmem>>, vector<4x247xf32>
      tpu.vector_store %arg13[%c0_20, %c1], %21 {strides = array<i32>} : memref<4x249xf32, #tpu.memory_space<vmem>>, vector<4x247xf32>,
      %c0_21 = arith.constant 0 : index
      %c0_22 = arith.constant 0 : index
      %25 = vector.load %arg13[%c0_21, %c0_22] : memref<4x249xf32, #tpu.memory_space<vmem>>, vector<4x247xf32>
      %c0_23 = arith.constant 0 : index
      %c0_24 = arith.constant 0 : index
      %26 = vector.load %arg14[%c0_23, %c0_24] : memref<12x247xf32, #tpu.memory_space<vmem>>, vector<4x247xf32>
      tpu.vector_store %arg14[%c0_23, %c0_24], %25 {strides = array<i32>} : memref<12x247xf32, #tpu.memory_space<vmem>>, vector<4x247xf32>,
      %c0_25 = arith.constant 0 : index
      %c1_26 = arith.constant 1 : index
      %27 = vector.load %arg13[%c0_25, %c1_26] : memref<4x249xf32, #tpu.memory_space<vmem>>, vector<4x247xf32>
      %c4 = arith.constant 4 : index
      %c0_27 = arith.constant 0 : index
      %28 = vector.load %arg14[%c4, %c0_27] : memref<12x247xf32, #tpu.memory_space<vmem>>, vector<4x247xf32>
      tpu.vector_store %arg14[%c4, %c0_27], %27 {strides = array<i32>} : memref<12x247xf32, #tpu.memory_space<vmem>>, vector<4x247xf32>,
      %c0_28 = arith.constant 0 : index
      %c2 = arith.constant 2 : index
      %29 = vector.load %arg13[%c0_28, %c2] : memref<4x249xf32, #tpu.memory_space<vmem>>, vector<4x247xf32>
      %c8 = arith.constant 8 : index
      %c0_29 = arith.constant 0 : index
      %30 = vector.load %arg14[%c8, %c0_29] : memref<12x247xf32, #tpu.memory_space<vmem>>, vector<4x247xf32>
      tpu.vector_store %arg14[%c8, %c0_29], %29 {strides = array<i32>} : memref<12x247xf32, #tpu.memory_space<vmem>>, vector<4x247xf32>,
      %c0_30 = arith.constant 0 : index
      %c0_31 = arith.constant 0 : index
      %31 = vector.load %arg2[%c0_30, %c0_31] : memref<27x12xf32, #tpu.memory_space<vmem>>, vector<27x12xf32>
      %c0_32 = arith.constant 0 : index
      %c0_33 = arith.constant 0 : index
      %32 = vector.load %arg14[%c0_32, %c0_33] : memref<12x247xf32, #tpu.memory_space<vmem>>, vector<12x247xf32>
      %cst_34 = arith.constant dense<0.000000e+00> : vector<27x247xf32>
      %33 = tpu.matmul %31, %32, %cst_34 {dimension_numbers = #tpu.dot_dimension_numbers<[1], [0], [0], [1], [0, 0, 1, 1], [], []>} : vector<27x12xf32>, vector<12x247xf32>, vector<27x247xf32> -> vector<27x247xf32>
      %c0_35 = arith.constant 0 : index
      %c0_36 = arith.constant 0 : index
      %34 = vector.load %arg3[%c0_35, %c0_36] : memref<27x1xf32, #tpu.memory_space<vmem>>, vector<27x1xf32>
      %35 = vector.broadcast %34 : vector<27x1xf32> to vector<27x247xf32>
      %36 = arith.mulf %33, %35 : vector<27x247xf32>
      %c0_37 = arith.constant 0 : index
      %c0_38 = arith.constant 0 : index
      %37 = vector.load %arg4[%c0_37, %c0_38] : memref<27x1xf32, #tpu.memory_space<vmem>>, vector<27x1xf32>
      %38 = vector.broadcast %37 : vector<27x1xf32> to vector<27x247xf32>
      %39 = arith.addf %36, %38 : vector<27x247xf32>
      %cst_39 = arith.constant 0.000000e+00 : f32
      %40 = vector.broadcast %cst_39 : f32 to vector<27x247xf32>
      %41 = arith.maximumf %39, %40 : vector<27x247xf32>
      %cst_40 = arith.constant 0.000000e+00 : f32
      %42 = vector.broadcast %cst_40 : f32 to vector<27x249xf32>
      %c0_41 = arith.constant 0 : index
      %c0_42 = arith.constant 0 : index
      %43 = vector.load %arg15[%c0_41, %c0_42] : memref<27x249xf32, #tpu.memory_space<vmem>>, vector<27x249xf32>
      tpu.vector_store %arg15[%c0_41, %c0_42], %42 {strides = array<i32>} : memref<27x249xf32, #tpu.memory_space<vmem>>, vector<27x249xf32>,
      %c0_43 = arith.constant 0 : index
      %c1_44 = arith.constant 1 : index
      %44 = vector.load %arg15[%c0_43, %c1_44] : memref<27x249xf32, #tpu.memory_space<vmem>>, vector<27x247xf32>
      tpu.vector_store %arg15[%c0_43, %c1_44], %41 {strides = array<i32>} : memref<27x249xf32, #tpu.memory_space<vmem>>, vector<27x247xf32>,
      %c0_45 = arith.constant 0 : index
      %c0_46 = arith.constant 0 : index
      %45 = vector.load %arg15[%c0_45, %c0_46] : memref<27x249xf32, #tpu.memory_space<vmem>>, vector<27x247xf32>
      %c0_47 = arith.constant 0 : index
      %c0_48 = arith.constant 0 : index
      %46 = vector.load %arg16[%c0_47, %c0_48] : memref<81x247xf32, #tpu.memory_space<vmem>>, vector<27x247xf32>
      tpu.vector_store %arg16[%c0_47, %c0_48], %45 {strides = array<i32>} : memref<81x247xf32, #tpu.memory_space<vmem>>, vector<27x247xf32>,
      %c0_49 = arith.constant 0 : index
      %c1_50 = arith.constant 1 : index
      %47 = vector.load %arg15[%c0_49, %c1_50] : memref<27x249xf32, #tpu.memory_space<vmem>>, vector<27x247xf32>
      %c27 = arith.constant 27 : index
      %c0_51 = arith.constant 0 : index
      %48 = vector.load %arg16[%c27, %c0_51] : memref<81x247xf32, #tpu.memory_space<vmem>>, vector<27x247xf32>
      tpu.vector_store %arg16[%c27, %c0_51], %47 {strides = array<i32>} : memref<81x247xf32, #tpu.memory_space<vmem>>, vector<27x247xf32>,
      %c0_52 = arith.constant 0 : index
      %c2_53 = arith.constant 2 : index
      %49 = vector.load %arg15[%c0_52, %c2_53] : memref<27x249xf32, #tpu.memory_space<vmem>>, vector<27x247xf32>
      %c54 = arith.constant 54 : index
      %c0_54 = arith.constant 0 : index
      %50 = vector.load %arg16[%c54, %c0_54] : memref<81x247xf32, #tpu.memory_space<vmem>>, vector<27x247xf32>
      tpu.vector_store %arg16[%c54, %c0_54], %49 {strides = array<i32>} : memref<81x247xf32, #tpu.memory_space<vmem>>, vector<27x247xf32>,
      %c0_55 = arith.constant 0 : index
      %c0_56 = arith.constant 0 : index
      %51 = vector.load %arg5[%c0_55, %c0_56] : memref<27x81xf32, #tpu.memory_space<vmem>>, vector<27x81xf32>
      %c0_57 = arith.constant 0 : index
      %c0_58 = arith.constant 0 : index
      %52 = vector.load %arg16[%c0_57, %c0_58] : memref<81x247xf32, #tpu.memory_space<vmem>>, vector<81x247xf32>
      %cst_59 = arith.constant dense<0.000000e+00> : vector<27x247xf32>
      %53 = tpu.matmul %51, %52, %cst_59 {dimension_numbers = #tpu.dot_dimension_numbers<[1], [0], [0], [1], [0, 0, 1, 1], [], []>} : vector<27x81xf32>, vector<81x247xf32>, vector<27x247xf32> -> vector<27x247xf32>
      %c0_60 = arith.constant 0 : index
      %c0_61 = arith.constant 0 : index
      %54 = vector.load %arg6[%c0_60, %c0_61] : memref<27x1xf32, #tpu.memory_space<vmem>>, vector<27x1xf32>
      %55 = vector.broadcast %54 : vector<27x1xf32> to vector<27x247xf32>
      %56 = arith.mulf %53, %55 : vector<27x247xf32>
      %c0_62 = arith.constant 0 : index
      %c0_63 = arith.constant 0 : index
      %57 = vector.load %arg7[%c0_62, %c0_63] : memref<27x1xf32, #tpu.memory_space<vmem>>, vector<27x1xf32>
      %58 = vector.broadcast %57 : vector<27x1xf32> to vector<27x247xf32>
      %59 = arith.addf %56, %58 : vector<27x247xf32>
      %cst_64 = arith.constant 0.000000e+00 : f32
      %60 = vector.broadcast %cst_64 : f32 to vector<27x247xf32>
      %61 = arith.maximumf %59, %60 : vector<27x247xf32>
      %62 = vector.extract_strided_slice %61 {offsets = [0, 0], sizes = [1, 247], strides = [1, 1]} : vector<27x247xf32> to vector<1x247xf32>
      %c0_65 = arith.constant 0 : index
      %c0_66 = arith.constant 0 : index
      %63 = vector.load %arg17[%c0_65, %c0_66] : memref<2x6912xf32, #tpu.memory_space<vmem>>, vector<1x247xf32>
      tpu.vector_store %arg17[%c0_65, %c0_66], %62 {strides = array<i32>} : memref<2x6912xf32, #tpu.memory_space<vmem>>, vector<1x247xf32>,
      %64 = vector.extract_strided_slice %61 {offsets = [1, 0], sizes = [1, 247], strides = [1, 1]} : vector<27x247xf32> to vector<1x247xf32>
      %c0_67 = arith.constant 0 : index
      %c256 = arith.constant 256 : index
      %65 = vector.load %arg17[%c0_67, %c256] : memref<2x6912xf32, #tpu.memory_space<vmem>>, vector<1x247xf32>
      tpu.vector_store %arg17[%c0_67, %c256], %64 {strides = array<i32>} : memref<2x6912xf32, #tpu.memory_space<vmem>>, vector<1x247xf32>,
      %66 = vector.extract_strided_slice %61 {offsets = [2, 0], sizes = [1, 247], strides = [1, 1]} : vector<27x247xf32> to vector<1x247xf32>
      %c0_68 = arith.constant 0 : index
      %c512 = arith.constant 512 : index
      %67 = vector.load %arg17[%c0_68, %c512] : memref<2x6912xf32, #tpu.memory_space<vmem>>, vector<1x247xf32>
      tpu.vector_store %arg17[%c0_68, %c512], %66 {strides = array<i32>} : memref<2x6912xf32, #tpu.memory_space<vmem>>, vector<1x247xf32>,
      %68 = vector.extract_strided_slice %61 {offsets = [3, 0], sizes = [1, 247], strides = [1, 1]} : vector<27x247xf32> to vector<1x247xf32>
      %c0_69 = arith.constant 0 : index
      %c768 = arith.constant 768 : index
      %69 = vector.load %arg17[%c0_69, %c768] : memref<2x6912xf32, #tpu.memory_space<vmem>>, vector<1x247xf32>
      tpu.vector_store %arg17[%c0_69, %c768], %68 {strides = array<i32>} : memref<2x6912xf32, #tpu.memory_space<vmem>>, vector<1x247xf32>,
      %70 = vector.extract_strided_slice %61 {offsets = [4, 0], sizes = [1, 247], strides = [1, 1]} : vector<27x247xf32> to vector<1x247xf32>
      %c0_70 = arith.constant 0 : index
      %c1024 = arith.constant 1024 : index
      %71 = vector.load %arg17[%c0_70, %c1024] : memref<2x6912xf32, #tpu.memory_space<vmem>>, vector<1x247xf32>
      tpu.vector_store %arg17[%c0_70, %c1024], %70 {strides = array<i32>} : memref<2x6912xf32, #tpu.memory_space<vmem>>, vector<1x247xf32>,
      %72 = vector.extract_strided_slice %61 {offsets = [5, 0], sizes = [1, 247], strides = [1, 1]} : vector<27x247xf32> to vector<1x247xf32>
      %c0_71 = arith.constant 0 : index
      %c1280 = arith.constant 1280 : index
      %73 = vector.load %arg17[%c0_71, %c1280] : memref<2x6912xf32, #tpu.memory_space<vmem>>, vector<1x247xf32>
      tpu.vector_store %arg17[%c0_71, %c1280], %72 {strides = array<i32>} : memref<2x6912xf32, #tpu.memory_space<vmem>>, vector<1x247xf32>,
      %74 = vector.extract_strided_slice %61 {offsets = [6, 0], sizes = [1, 247], strides = [1, 1]} : vector<27x247xf32> to vector<1x247xf32>
      %c0_72 = arith.constant 0 : index
      %c1536 = arith.constant 1536 : index
      %75 = vector.load %arg17[%c0_72, %c1536] : memref<2x6912xf32, #tpu.memory_space<vmem>>, vector<1x247xf32>
      tpu.vector_store %arg17[%c0_72, %c1536], %74 {strides = array<i32>} : memref<2x6912xf32, #tpu.memory_space<vmem>>, vector<1x247xf32>,
      %76 = vector.extract_strided_slice %61 {offsets = [7, 0], sizes = [1, 247], strides = [1, 1]} : vector<27x247xf32> to vector<1x247xf32>
      %c0_73 = arith.constant 0 : index
      %c1792 = arith.constant 1792 : index
      %77 = vector.load %arg17[%c0_73, %c1792] : memref<2x6912xf32, #tpu.memory_space<vmem>>, vector<1x247xf32>
      tpu.vector_store %arg17[%c0_73, %c1792], %76 {strides = array<i32>} : memref<2x6912xf32, #tpu.memory_space<vmem>>, vector<1x247xf32>,
      %78 = vector.extract_strided_slice %61 {offsets = [8, 0], sizes = [1, 247], strides = [1, 1]} : vector<27x247xf32> to vector<1x247xf32>
      %c0_74 = arith.constant 0 : index
      %c2048 = arith.constant 2048 : index
      %79 = vector.load %arg17[%c0_74, %c2048] : memref<2x6912xf32, #tpu.memory_space<vmem>>, vector<1x247xf32>
      tpu.vector_store %arg17[%c0_74, %c2048], %78 {strides = array<i32>} : memref<2x6912xf32, #tpu.memory_space<vmem>>, vector<1x247xf32>,
      %80 = vector.extract_strided_slice %61 {offsets = [9, 0], sizes = [1, 247], strides = [1, 1]} : vector<27x247xf32> to vector<1x247xf32>
      %c0_75 = arith.constant 0 : index
      %c2304 = arith.constant 2304 : index
      %81 = vector.load %arg17[%c0_75, %c2304] : memref<2x6912xf32, #tpu.memory_space<vmem>>, vector<1x247xf32>
      tpu.vector_store %arg17[%c0_75, %c2304], %80 {strides = array<i32>} : memref<2x6912xf32, #tpu.memory_space<vmem>>, vector<1x247xf32>,
      %82 = vector.extract_strided_slice %61 {offsets = [10, 0], sizes = [1, 247], strides = [1, 1]} : vector<27x247xf32> to vector<1x247xf32>
      %c0_76 = arith.constant 0 : index
      %c2560 = arith.constant 2560 : index
      %83 = vector.load %arg17[%c0_76, %c2560] : memref<2x6912xf32, #tpu.memory_space<vmem>>, vector<1x247xf32>
      tpu.vector_store %arg17[%c0_76, %c2560], %82 {strides = array<i32>} : memref<2x6912xf32, #tpu.memory_space<vmem>>, vector<1x247xf32>,
      %84 = vector.extract_strided_slice %61 {offsets = [11, 0], sizes = [1, 247], strides = [1, 1]} : vector<27x247xf32> to vector<1x247xf32>
      %c0_77 = arith.constant 0 : index
      %c2816 = arith.constant 2816 : index
      %85 = vector.load %arg17[%c0_77, %c2816] : memref<2x6912xf32, #tpu.memory_space<vmem>>, vector<1x247xf32>
      tpu.vector_store %arg17[%c0_77, %c2816], %84 {strides = array<i32>} : memref<2x6912xf32, #tpu.memory_space<vmem>>, vector<1x247xf32>,
      %86 = vector.extract_strided_slice %61 {offsets = [12, 0], sizes = [1, 247], strides = [1, 1]} : vector<27x247xf32> to vector<1x247xf32>
      %c0_78 = arith.constant 0 : index
      %c3072 = arith.constant 3072 : index
      %87 = vector.load %arg17[%c0_78, %c3072] : memref<2x6912xf32, #tpu.memory_space<vmem>>, vector<1x247xf32>
      tpu.vector_store %arg17[%c0_78, %c3072], %86 {strides = array<i32>} : memref<2x6912xf32, #tpu.memory_space<vmem>>, vector<1x247xf32>,
      %88 = vector.extract_strided_slice %61 {offsets = [13, 0], sizes = [1, 247], strides = [1, 1]} : vector<27x247xf32> to vector<1x247xf32>
      %c0_79 = arith.constant 0 : index
      %c3328 = arith.constant 3328 : index
      %89 = vector.load %arg17[%c0_79, %c3328] : memref<2x6912xf32, #tpu.memory_space<vmem>>, vector<1x247xf32>
      tpu.vector_store %arg17[%c0_79, %c3328], %88 {strides = array<i32>} : memref<2x6912xf32, #tpu.memory_space<vmem>>, vector<1x247xf32>,
      %90 = vector.extract_strided_slice %61 {offsets = [14, 0], sizes = [1, 247], strides = [1, 1]} : vector<27x247xf32> to vector<1x247xf32>
      %c0_80 = arith.constant 0 : index
      %c3584 = arith.constant 3584 : index
      %91 = vector.load %arg17[%c0_80, %c3584] : memref<2x6912xf32, #tpu.memory_space<vmem>>, vector<1x247xf32>
      tpu.vector_store %arg17[%c0_80, %c3584], %90 {strides = array<i32>} : memref<2x6912xf32, #tpu.memory_space<vmem>>, vector<1x247xf32>,
      %92 = vector.extract_strided_slice %61 {offsets = [15, 0], sizes = [1, 247], strides = [1, 1]} : vector<27x247xf32> to vector<1x247xf32>
      %c0_81 = arith.constant 0 : index
      %c3840 = arith.constant 3840 : index
      %93 = vector.load %arg17[%c0_81, %c3840] : memref<2x6912xf32, #tpu.memory_space<vmem>>, vector<1x247xf32>
      tpu.vector_store %arg17[%c0_81, %c3840], %92 {strides = array<i32>} : memref<2x6912xf32, #tpu.memory_space<vmem>>, vector<1x247xf32>,
      %94 = vector.extract_strided_slice %61 {offsets = [16, 0], sizes = [1, 247], strides = [1, 1]} : vector<27x247xf32> to vector<1x247xf32>
      %c0_82 = arith.constant 0 : index
      %c4096 = arith.constant 4096 : index
      %95 = vector.load %arg17[%c0_82, %c4096] : memref<2x6912xf32, #tpu.memory_space<vmem>>, vector<1x247xf32>
      tpu.vector_store %arg17[%c0_82, %c4096], %94 {strides = array<i32>} : memref<2x6912xf32, #tpu.memory_space<vmem>>, vector<1x247xf32>,
      %96 = vector.extract_strided_slice %61 {offsets = [17, 0], sizes = [1, 247], strides = [1, 1]} : vector<27x247xf32> to vector<1x247xf32>
      %c0_83 = arith.constant 0 : index
      %c4352 = arith.constant 4352 : index
      %97 = vector.load %arg17[%c0_83, %c4352] : memref<2x6912xf32, #tpu.memory_space<vmem>>, vector<1x247xf32>
      tpu.vector_store %arg17[%c0_83, %c4352], %96 {strides = array<i32>} : memref<2x6912xf32, #tpu.memory_space<vmem>>, vector<1x247xf32>,
      %98 = vector.extract_strided_slice %61 {offsets = [18, 0], sizes = [1, 247], strides = [1, 1]} : vector<27x247xf32> to vector<1x247xf32>
      %c0_84 = arith.constant 0 : index
      %c4608 = arith.constant 4608 : index
      %99 = vector.load %arg17[%c0_84, %c4608] : memref<2x6912xf32, #tpu.memory_space<vmem>>, vector<1x247xf32>
      tpu.vector_store %arg17[%c0_84, %c4608], %98 {strides = array<i32>} : memref<2x6912xf32, #tpu.memory_space<vmem>>, vector<1x247xf32>,
      %100 = vector.extract_strided_slice %61 {offsets = [19, 0], sizes = [1, 247], strides = [1, 1]} : vector<27x247xf32> to vector<1x247xf32>
      %c0_85 = arith.constant 0 : index
      %c4864 = arith.constant 4864 : index
      %101 = vector.load %arg17[%c0_85, %c4864] : memref<2x6912xf32, #tpu.memory_space<vmem>>, vector<1x247xf32>
      tpu.vector_store %arg17[%c0_85, %c4864], %100 {strides = array<i32>} : memref<2x6912xf32, #tpu.memory_space<vmem>>, vector<1x247xf32>,
      %102 = vector.extract_strided_slice %61 {offsets = [20, 0], sizes = [1, 247], strides = [1, 1]} : vector<27x247xf32> to vector<1x247xf32>
      %c0_86 = arith.constant 0 : index
      %c5120 = arith.constant 5120 : index
      %103 = vector.load %arg17[%c0_86, %c5120] : memref<2x6912xf32, #tpu.memory_space<vmem>>, vector<1x247xf32>
      tpu.vector_store %arg17[%c0_86, %c5120], %102 {strides = array<i32>} : memref<2x6912xf32, #tpu.memory_space<vmem>>, vector<1x247xf32>,
      %104 = vector.extract_strided_slice %61 {offsets = [21, 0], sizes = [1, 247], strides = [1, 1]} : vector<27x247xf32> to vector<1x247xf32>
      %c0_87 = arith.constant 0 : index
      %c5376 = arith.constant 5376 : index
      %105 = vector.load %arg17[%c0_87, %c5376] : memref<2x6912xf32, #tpu.memory_space<vmem>>, vector<1x247xf32>
      tpu.vector_store %arg17[%c0_87, %c5376], %104 {strides = array<i32>} : memref<2x6912xf32, #tpu.memory_space<vmem>>, vector<1x247xf32>,
      %106 = vector.extract_strided_slice %61 {offsets = [22, 0], sizes = [1, 247], strides = [1, 1]} : vector<27x247xf32> to vector<1x247xf32>
      %c0_88 = arith.constant 0 : index
      %c5632 = arith.constant 5632 : index
      %107 = vector.load %arg17[%c0_88, %c5632] : memref<2x6912xf32, #tpu.memory_space<vmem>>, vector<1x247xf32>
      tpu.vector_store %arg17[%c0_88, %c5632], %106 {strides = array<i32>} : memref<2x6912xf32, #tpu.memory_space<vmem>>, vector<1x247xf32>,
      %108 = vector.extract_strided_slice %61 {offsets = [23, 0], sizes = [1, 247], strides = [1, 1]} : vector<27x247xf32> to vector<1x247xf32>
      %c0_89 = arith.constant 0 : index
      %c5888 = arith.constant 5888 : index
      %109 = vector.load %arg17[%c0_89, %c5888] : memref<2x6912xf32, #tpu.memory_space<vmem>>, vector<1x247xf32>
      tpu.vector_store %arg17[%c0_89, %c5888], %108 {strides = array<i32>} : memref<2x6912xf32, #tpu.memory_space<vmem>>, vector<1x247xf32>,
      %110 = vector.extract_strided_slice %61 {offsets = [24, 0], sizes = [1, 247], strides = [1, 1]} : vector<27x247xf32> to vector<1x247xf32>
      %c0_90 = arith.constant 0 : index
      %c6144 = arith.constant 6144 : index
      %111 = vector.load %arg17[%c0_90, %c6144] : memref<2x6912xf32, #tpu.memory_space<vmem>>, vector<1x247xf32>
      tpu.vector_store %arg17[%c0_90, %c6144], %110 {strides = array<i32>} : memref<2x6912xf32, #tpu.memory_space<vmem>>, vector<1x247xf32>,
      %112 = vector.extract_strided_slice %61 {offsets = [25, 0], sizes = [1, 247], strides = [1, 1]} : vector<27x247xf32> to vector<1x247xf32>
      %c0_91 = arith.constant 0 : index
      %c6400 = arith.constant 6400 : index
      %113 = vector.load %arg17[%c0_91, %c6400] : memref<2x6912xf32, #tpu.memory_space<vmem>>, vector<1x247xf32>
      tpu.vector_store %arg17[%c0_91, %c6400], %112 {strides = array<i32>} : memref<2x6912xf32, #tpu.memory_space<vmem>>, vector<1x247xf32>,
      %114 = vector.extract_strided_slice %61 {offsets = [26, 0], sizes = [1, 247], strides = [1, 1]} : vector<27x247xf32> to vector<1x247xf32>
      %c0_92 = arith.constant 0 : index
      %c6656 = arith.constant 6656 : index
      %115 = vector.load %arg17[%c0_92, %c6656] : memref<2x6912xf32, #tpu.memory_space<vmem>>, vector<1x247xf32>
      tpu.vector_store %arg17[%c0_92, %c6656], %114 {strides = array<i32>} : memref<2x6912xf32, #tpu.memory_space<vmem>>, vector<1x247xf32>,
      %c1_93 = arith.constant 1 : index
      %c0_94 = arith.constant 0 : index
      %c0_95 = arith.constant 0 : index
      %116 = vector.load %arg1[%c1_93, %c0_94, %c0_95] : memref<2x4x247xf32, #tpu.memory_space<vmem>>, vector<1x4x247xf32>
      %117 = vector.shape_cast %116 : vector<1x4x247xf32> to vector<4x247xf32>
      %cst_96 = arith.constant 0.000000e+00 : f32
      %118 = vector.broadcast %cst_96 : f32 to vector<4x249xf32>
      %c0_97 = arith.constant 0 : index
      %c0_98 = arith.constant 0 : index
      %119 = vector.load %arg13[%c0_97, %c0_98] : memref<4x249xf32, #tpu.memory_space<vmem>>, vector<4x249xf32>
      tpu.vector_store %arg13[%c0_97, %c0_98], %118 {strides = array<i32>} : memref<4x249xf32, #tpu.memory_space<vmem>>, vector<4x249xf32>,
      %c0_99 = arith.constant 0 : index
      %c1_100 = arith.constant 1 : index
      %120 = vector.load %arg13[%c0_99, %c1_100] : memref<4x249xf32, #tpu.memory_space<vmem>>, vector<4x247xf32>
      tpu.vector_store %arg13[%c0_99, %c1_100], %117 {strides = array<i32>} : memref<4x249xf32, #tpu.memory_space<vmem>>, vector<4x247xf32>,
      %c0_101 = arith.constant 0 : index
      %c0_102 = arith.constant 0 : index
      %121 = vector.load %arg13[%c0_101, %c0_102] : memref<4x249xf32, #tpu.memory_space<vmem>>, vector<4x247xf32>
      %c0_103 = arith.constant 0 : index
      %c0_104 = arith.constant 0 : index
      %122 = vector.load %arg14[%c0_103, %c0_104] : memref<12x247xf32, #tpu.memory_space<vmem>>, vector<4x247xf32>
      tpu.vector_store %arg14[%c0_103, %c0_104], %121 {strides = array<i32>} : memref<12x247xf32, #tpu.memory_space<vmem>>, vector<4x247xf32>,
      %c0_105 = arith.constant 0 : index
      %c1_106 = arith.constant 1 : index
      %123 = vector.load %arg13[%c0_105, %c1_106] : memref<4x249xf32, #tpu.memory_space<vmem>>, vector<4x247xf32>
      %c4_107 = arith.constant 4 : index
      %c0_108 = arith.constant 0 : index
      %124 = vector.load %arg14[%c4_107, %c0_108] : memref<12x247xf32, #tpu.memory_space<vmem>>, vector<4x247xf32>
      tpu.vector_store %arg14[%c4_107, %c0_108], %123 {strides = array<i32>} : memref<12x247xf32, #tpu.memory_space<vmem>>, vector<4x247xf32>,
      %c0_109 = arith.constant 0 : index
      %c2_110 = arith.constant 2 : index
      %125 = vector.load %arg13[%c0_109, %c2_110] : memref<4x249xf32, #tpu.memory_space<vmem>>, vector<4x247xf32>
      %c8_111 = arith.constant 8 : index
      %c0_112 = arith.constant 0 : index
      %126 = vector.load %arg14[%c8_111, %c0_112] : memref<12x247xf32, #tpu.memory_space<vmem>>, vector<4x247xf32>
      tpu.vector_store %arg14[%c8_111, %c0_112], %125 {strides = array<i32>} : memref<12x247xf32, #tpu.memory_space<vmem>>, vector<4x247xf32>,
      %c0_113 = arith.constant 0 : index
      %c0_114 = arith.constant 0 : index
      %127 = vector.load %arg2[%c0_113, %c0_114] : memref<27x12xf32, #tpu.memory_space<vmem>>, vector<27x12xf32>
      %c0_115 = arith.constant 0 : index
      %c0_116 = arith.constant 0 : index
      %128 = vector.load %arg14[%c0_115, %c0_116] : memref<12x247xf32, #tpu.memory_space<vmem>>, vector<12x247xf32>
      %cst_117 = arith.constant dense<0.000000e+00> : vector<27x247xf32>
      %129 = tpu.matmul %127, %128, %cst_117 {dimension_numbers = #tpu.dot_dimension_numbers<[1], [0], [0], [1], [0, 0, 1, 1], [], []>} : vector<27x12xf32>, vector<12x247xf32>, vector<27x247xf32> -> vector<27x247xf32>
      %c0_118 = arith.constant 0 : index
      %c0_119 = arith.constant 0 : index
      %130 = vector.load %arg3[%c0_118, %c0_119] : memref<27x1xf32, #tpu.memory_space<vmem>>, vector<27x1xf32>
      %131 = vector.broadcast %130 : vector<27x1xf32> to vector<27x247xf32>
      %132 = arith.mulf %129, %131 : vector<27x247xf32>
      %c0_120 = arith.constant 0 : index
      %c0_121 = arith.constant 0 : index
      %133 = vector.load %arg4[%c0_120, %c0_121] : memref<27x1xf32, #tpu.memory_space<vmem>>, vector<27x1xf32>
      %134 = vector.broadcast %133 : vector<27x1xf32> to vector<27x247xf32>
      %135 = arith.addf %132, %134 : vector<27x247xf32>
      %cst_122 = arith.constant 0.000000e+00 : f32
      %136 = vector.broadcast %cst_122 : f32 to vector<27x247xf32>
      %137 = arith.maximumf %135, %136 : vector<27x247xf32>
      %cst_123 = arith.constant 0.000000e+00 : f32
      %138 = vector.broadcast %cst_123 : f32 to vector<27x249xf32>
      %c0_124 = arith.constant 0 : index
      %c0_125 = arith.constant 0 : index
      %139 = vector.load %arg15[%c0_124, %c0_125] : memref<27x249xf32, #tpu.memory_space<vmem>>, vector<27x249xf32>
      tpu.vector_store %arg15[%c0_124, %c0_125], %138 {strides = array<i32>} : memref<27x249xf32, #tpu.memory_space<vmem>>, vector<27x249xf32>,
      %c0_126 = arith.constant 0 : index
      %c1_127 = arith.constant 1 : index
      %140 = vector.load %arg15[%c0_126, %c1_127] : memref<27x249xf32, #tpu.memory_space<vmem>>, vector<27x247xf32>
      tpu.vector_store %arg15[%c0_126, %c1_127], %137 {strides = array<i32>} : memref<27x249xf32, #tpu.memory_space<vmem>>, vector<27x247xf32>,
      %c0_128 = arith.constant 0 : index
      %c0_129 = arith.constant 0 : index
      %141 = vector.load %arg15[%c0_128, %c0_129] : memref<27x249xf32, #tpu.memory_space<vmem>>, vector<27x247xf32>
      %c0_130 = arith.constant 0 : index
      %c0_131 = arith.constant 0 : index
      %142 = vector.load %arg16[%c0_130, %c0_131] : memref<81x247xf32, #tpu.memory_space<vmem>>, vector<27x247xf32>
      tpu.vector_store %arg16[%c0_130, %c0_131], %141 {strides = array<i32>} : memref<81x247xf32, #tpu.memory_space<vmem>>, vector<27x247xf32>,
      %c0_132 = arith.constant 0 : index
      %c1_133 = arith.constant 1 : index
      %143 = vector.load %arg15[%c0_132, %c1_133] : memref<27x249xf32, #tpu.memory_space<vmem>>, vector<27x247xf32>
      %c27_134 = arith.constant 27 : index
      %c0_135 = arith.constant 0 : index
      %144 = vector.load %arg16[%c27_134, %c0_135] : memref<81x247xf32, #tpu.memory_space<vmem>>, vector<27x247xf32>
      tpu.vector_store %arg16[%c27_134, %c0_135], %143 {strides = array<i32>} : memref<81x247xf32, #tpu.memory_space<vmem>>, vector<27x247xf32>,
      %c0_136 = arith.constant 0 : index
      %c2_137 = arith.constant 2 : index
      %145 = vector.load %arg15[%c0_136, %c2_137] : memref<27x249xf32, #tpu.memory_space<vmem>>, vector<27x247xf32>
      %c54_138 = arith.constant 54 : index
      %c0_139 = arith.constant 0 : index
      %146 = vector.load %arg16[%c54_138, %c0_139] : memref<81x247xf32, #tpu.memory_space<vmem>>, vector<27x247xf32>
      tpu.vector_store %arg16[%c54_138, %c0_139], %145 {strides = array<i32>} : memref<81x247xf32, #tpu.memory_space<vmem>>, vector<27x247xf32>,
      %c0_140 = arith.constant 0 : index
      %c0_141 = arith.constant 0 : index
      %147 = vector.load %arg5[%c0_140, %c0_141] : memref<27x81xf32, #tpu.memory_space<vmem>>, vector<27x81xf32>
      %c0_142 = arith.constant 0 : index
      %c0_143 = arith.constant 0 : index
      %148 = vector.load %arg16[%c0_142, %c0_143] : memref<81x247xf32, #tpu.memory_space<vmem>>, vector<81x247xf32>
      %cst_144 = arith.constant dense<0.000000e+00> : vector<27x247xf32>
      %149 = tpu.matmul %147, %148, %cst_144 {dimension_numbers = #tpu.dot_dimension_numbers<[1], [0], [0], [1], [0, 0, 1, 1], [], []>} : vector<27x81xf32>, vector<81x247xf32>, vector<27x247xf32> -> vector<27x247xf32>
      %c0_145 = arith.constant 0 : index
      %c0_146 = arith.constant 0 : index
      %150 = vector.load %arg6[%c0_145, %c0_146] : memref<27x1xf32, #tpu.memory_space<vmem>>, vector<27x1xf32>
      %151 = vector.broadcast %150 : vector<27x1xf32> to vector<27x247xf32>
      %152 = arith.mulf %149, %151 : vector<27x247xf32>
      %c0_147 = arith.constant 0 : index
      %c0_148 = arith.constant 0 : index
      %153 = vector.load %arg7[%c0_147, %c0_148] : memref<27x1xf32, #tpu.memory_space<vmem>>, vector<27x1xf32>
      %154 = vector.broadcast %153 : vector<27x1xf32> to vector<27x247xf32>
      %155 = arith.addf %152, %154 : vector<27x247xf32>
      %cst_149 = arith.constant 0.000000e+00 : f32
      %156 = vector.broadcast %cst_149 : f32 to vector<27x247xf32>
      %157 = arith.maximumf %155, %156 : vector<27x247xf32>
      %158 = vector.extract_strided_slice %157 {offsets = [0, 0], sizes = [1, 247], strides = [1, 1]} : vector<27x247xf32> to vector<1x247xf32>
      %c1_150 = arith.constant 1 : index
      %c0_151 = arith.constant 0 : index
      %159 = vector.load %arg17[%c1_150, %c0_151] : memref<2x6912xf32, #tpu.memory_space<vmem>>, vector<1x247xf32>
      tpu.vector_store %arg17[%c1_150, %c0_151], %158 {strides = array<i32>} : memref<2x6912xf32, #tpu.memory_space<vmem>>, vector<1x247xf32>,
      %160 = vector.extract_strided_slice %157 {offsets = [1, 0], sizes = [1, 247], strides = [1, 1]} : vector<27x247xf32> to vector<1x247xf32>
      %c1_152 = arith.constant 1 : index
      %c256_153 = arith.constant 256 : index
      %161 = vector.load %arg17[%c1_152, %c256_153] : memref<2x6912xf32, #tpu.memory_space<vmem>>, vector<1x247xf32>
      tpu.vector_store %arg17[%c1_152, %c256_153], %160 {strides = array<i32>} : memref<2x6912xf32, #tpu.memory_space<vmem>>, vector<1x247xf32>,
      %162 = vector.extract_strided_slice %157 {offsets = [2, 0], sizes = [1, 247], strides = [1, 1]} : vector<27x247xf32> to vector<1x247xf32>
      %c1_154 = arith.constant 1 : index
      %c512_155 = arith.constant 512 : index
      %163 = vector.load %arg17[%c1_154, %c512_155] : memref<2x6912xf32, #tpu.memory_space<vmem>>, vector<1x247xf32>
      tpu.vector_store %arg17[%c1_154, %c512_155], %162 {strides = array<i32>} : memref<2x6912xf32, #tpu.memory_space<vmem>>, vector<1x247xf32>,
      %164 = vector.extract_strided_slice %157 {offsets = [3, 0], sizes = [1, 247], strides = [1, 1]} : vector<27x247xf32> to vector<1x247xf32>
      %c1_156 = arith.constant 1 : index
      %c768_157 = arith.constant 768 : index
      %165 = vector.load %arg17[%c1_156, %c768_157] : memref<2x6912xf32, #tpu.memory_space<vmem>>, vector<1x247xf32>
      tpu.vector_store %arg17[%c1_156, %c768_157], %164 {strides = array<i32>} : memref<2x6912xf32, #tpu.memory_space<vmem>>, vector<1x247xf32>,
      %166 = vector.extract_strided_slice %157 {offsets = [4, 0], sizes = [1, 247], strides = [1, 1]} : vector<27x247xf32> to vector<1x247xf32>
      %c1_158 = arith.constant 1 : index
      %c1024_159 = arith.constant 1024 : index
      %167 = vector.load %arg17[%c1_158, %c1024_159] : memref<2x6912xf32, #tpu.memory_space<vmem>>, vector<1x247xf32>
      tpu.vector_store %arg17[%c1_158, %c1024_159], %166 {strides = array<i32>} : memref<2x6912xf32, #tpu.memory_space<vmem>>, vector<1x247xf32>,
      %168 = vector.extract_strided_slice %157 {offsets = [5, 0], sizes = [1, 247], strides = [1, 1]} : vector<27x247xf32> to vector<1x247xf32>
      %c1_160 = arith.constant 1 : index
      %c1280_161 = arith.constant 1280 : index
      %169 = vector.load %arg17[%c1_160, %c1280_161] : memref<2x6912xf32, #tpu.memory_space<vmem>>, vector<1x247xf32>
      tpu.vector_store %arg17[%c1_160, %c1280_161], %168 {strides = array<i32>} : memref<2x6912xf32, #tpu.memory_space<vmem>>, vector<1x247xf32>,
      %170 = vector.extract_strided_slice %157 {offsets = [6, 0], sizes = [1, 247], strides = [1, 1]} : vector<27x247xf32> to vector<1x247xf32>
      %c1_162 = arith.constant 1 : index
      %c1536_163 = arith.constant 1536 : index
      %171 = vector.load %arg17[%c1_162, %c1536_163] : memref<2x6912xf32, #tpu.memory_space<vmem>>, vector<1x247xf32>
      tpu.vector_store %arg17[%c1_162, %c1536_163], %170 {strides = array<i32>} : memref<2x6912xf32, #tpu.memory_space<vmem>>, vector<1x247xf32>,
      %172 = vector.extract_strided_slice %157 {offsets = [7, 0], sizes = [1, 247], strides = [1, 1]} : vector<27x247xf32> to vector<1x247xf32>
      %c1_164 = arith.constant 1 : index
      %c1792_165 = arith.constant 1792 : index
      %173 = vector.load %arg17[%c1_164, %c1792_165] : memref<2x6912xf32, #tpu.memory_space<vmem>>, vector<1x247xf32>
      tpu.vector_store %arg17[%c1_164, %c1792_165], %172 {strides = array<i32>} : memref<2x6912xf32, #tpu.memory_space<vmem>>, vector<1x247xf32>,
      %174 = vector.extract_strided_slice %157 {offsets = [8, 0], sizes = [1, 247], strides = [1, 1]} : vector<27x247xf32> to vector<1x247xf32>
      %c1_166 = arith.constant 1 : index
      %c2048_167 = arith.constant 2048 : index
      %175 = vector.load %arg17[%c1_166, %c2048_167] : memref<2x6912xf32, #tpu.memory_space<vmem>>, vector<1x247xf32>
      tpu.vector_store %arg17[%c1_166, %c2048_167], %174 {strides = array<i32>} : memref<2x6912xf32, #tpu.memory_space<vmem>>, vector<1x247xf32>,
      %176 = vector.extract_strided_slice %157 {offsets = [9, 0], sizes = [1, 247], strides = [1, 1]} : vector<27x247xf32> to vector<1x247xf32>
      %c1_168 = arith.constant 1 : index
      %c2304_169 = arith.constant 2304 : index
      %177 = vector.load %arg17[%c1_168, %c2304_169] : memref<2x6912xf32, #tpu.memory_space<vmem>>, vector<1x247xf32>
      tpu.vector_store %arg17[%c1_168, %c2304_169], %176 {strides = array<i32>} : memref<2x6912xf32, #tpu.memory_space<vmem>>, vector<1x247xf32>,
      %178 = vector.extract_strided_slice %157 {offsets = [10, 0], sizes = [1, 247], strides = [1, 1]} : vector<27x247xf32> to vector<1x247xf32>
      %c1_170 = arith.constant 1 : index
      %c2560_171 = arith.constant 2560 : index
      %179 = vector.load %arg17[%c1_170, %c2560_171] : memref<2x6912xf32, #tpu.memory_space<vmem>>, vector<1x247xf32>
      tpu.vector_store %arg17[%c1_170, %c2560_171], %178 {strides = array<i32>} : memref<2x6912xf32, #tpu.memory_space<vmem>>, vector<1x247xf32>,
      %180 = vector.extract_strided_slice %157 {offsets = [11, 0], sizes = [1, 247], strides = [1, 1]} : vector<27x247xf32> to vector<1x247xf32>
      %c1_172 = arith.constant 1 : index
      %c2816_173 = arith.constant 2816 : index
      %181 = vector.load %arg17[%c1_172, %c2816_173] : memref<2x6912xf32, #tpu.memory_space<vmem>>, vector<1x247xf32>
      tpu.vector_store %arg17[%c1_172, %c2816_173], %180 {strides = array<i32>} : memref<2x6912xf32, #tpu.memory_space<vmem>>, vector<1x247xf32>,
      %182 = vector.extract_strided_slice %157 {offsets = [12, 0], sizes = [1, 247], strides = [1, 1]} : vector<27x247xf32> to vector<1x247xf32>
      %c1_174 = arith.constant 1 : index
      %c3072_175 = arith.constant 3072 : index
      %183 = vector.load %arg17[%c1_174, %c3072_175] : memref<2x6912xf32, #tpu.memory_space<vmem>>, vector<1x247xf32>
      tpu.vector_store %arg17[%c1_174, %c3072_175], %182 {strides = array<i32>} : memref<2x6912xf32, #tpu.memory_space<vmem>>, vector<1x247xf32>,
      %184 = vector.extract_strided_slice %157 {offsets = [13, 0], sizes = [1, 247], strides = [1, 1]} : vector<27x247xf32> to vector<1x247xf32>
      %c1_176 = arith.constant 1 : index
      %c3328_177 = arith.constant 3328 : index
      %185 = vector.load %arg17[%c1_176, %c3328_177] : memref<2x6912xf32, #tpu.memory_space<vmem>>, vector<1x247xf32>
      tpu.vector_store %arg17[%c1_176, %c3328_177], %184 {strides = array<i32>} : memref<2x6912xf32, #tpu.memory_space<vmem>>, vector<1x247xf32>,
      %186 = vector.extract_strided_slice %157 {offsets = [14, 0], sizes = [1, 247], strides = [1, 1]} : vector<27x247xf32> to vector<1x247xf32>
      %c1_178 = arith.constant 1 : index
      %c3584_179 = arith.constant 3584 : index
      %187 = vector.load %arg17[%c1_178, %c3584_179] : memref<2x6912xf32, #tpu.memory_space<vmem>>, vector<1x247xf32>
      tpu.vector_store %arg17[%c1_178, %c3584_179], %186 {strides = array<i32>} : memref<2x6912xf32, #tpu.memory_space<vmem>>, vector<1x247xf32>,
      %188 = vector.extract_strided_slice %157 {offsets = [15, 0], sizes = [1, 247], strides = [1, 1]} : vector<27x247xf32> to vector<1x247xf32>
      %c1_180 = arith.constant 1 : index
      %c3840_181 = arith.constant 3840 : index
      %189 = vector.load %arg17[%c1_180, %c3840_181] : memref<2x6912xf32, #tpu.memory_space<vmem>>, vector<1x247xf32>
      tpu.vector_store %arg17[%c1_180, %c3840_181], %188 {strides = array<i32>} : memref<2x6912xf32, #tpu.memory_space<vmem>>, vector<1x247xf32>,
      %190 = vector.extract_strided_slice %157 {offsets = [16, 0], sizes = [1, 247], strides = [1, 1]} : vector<27x247xf32> to vector<1x247xf32>
      %c1_182 = arith.constant 1 : index
      %c4096_183 = arith.constant 4096 : index
      %191 = vector.load %arg17[%c1_182, %c4096_183] : memref<2x6912xf32, #tpu.memory_space<vmem>>, vector<1x247xf32>
      tpu.vector_store %arg17[%c1_182, %c4096_183], %190 {strides = array<i32>} : memref<2x6912xf32, #tpu.memory_space<vmem>>, vector<1x247xf32>,
      %192 = vector.extract_strided_slice %157 {offsets = [17, 0], sizes = [1, 247], strides = [1, 1]} : vector<27x247xf32> to vector<1x247xf32>
      %c1_184 = arith.constant 1 : index
      %c4352_185 = arith.constant 4352 : index
      %193 = vector.load %arg17[%c1_184, %c4352_185] : memref<2x6912xf32, #tpu.memory_space<vmem>>, vector<1x247xf32>
      tpu.vector_store %arg17[%c1_184, %c4352_185], %192 {strides = array<i32>} : memref<2x6912xf32, #tpu.memory_space<vmem>>, vector<1x247xf32>,
      %194 = vector.extract_strided_slice %157 {offsets = [18, 0], sizes = [1, 247], strides = [1, 1]} : vector<27x247xf32> to vector<1x247xf32>
      %c1_186 = arith.constant 1 : index
      %c4608_187 = arith.constant 4608 : index
      %195 = vector.load %arg17[%c1_186, %c4608_187] : memref<2x6912xf32, #tpu.memory_space<vmem>>, vector<1x247xf32>
      tpu.vector_store %arg17[%c1_186, %c4608_187], %194 {strides = array<i32>} : memref<2x6912xf32, #tpu.memory_space<vmem>>, vector<1x247xf32>,
      %196 = vector.extract_strided_slice %157 {offsets = [19, 0], sizes = [1, 247], strides = [1, 1]} : vector<27x247xf32> to vector<1x247xf32>
      %c1_188 = arith.constant 1 : index
      %c4864_189 = arith.constant 4864 : index
      %197 = vector.load %arg17[%c1_188, %c4864_189] : memref<2x6912xf32, #tpu.memory_space<vmem>>, vector<1x247xf32>
      tpu.vector_store %arg17[%c1_188, %c4864_189], %196 {strides = array<i32>} : memref<2x6912xf32, #tpu.memory_space<vmem>>, vector<1x247xf32>,
      %198 = vector.extract_strided_slice %157 {offsets = [20, 0], sizes = [1, 247], strides = [1, 1]} : vector<27x247xf32> to vector<1x247xf32>
      %c1_190 = arith.constant 1 : index
      %c5120_191 = arith.constant 5120 : index
      %199 = vector.load %arg17[%c1_190, %c5120_191] : memref<2x6912xf32, #tpu.memory_space<vmem>>, vector<1x247xf32>
      tpu.vector_store %arg17[%c1_190, %c5120_191], %198 {strides = array<i32>} : memref<2x6912xf32, #tpu.memory_space<vmem>>, vector<1x247xf32>,
      %200 = vector.extract_strided_slice %157 {offsets = [21, 0], sizes = [1, 247], strides = [1, 1]} : vector<27x247xf32> to vector<1x247xf32>
      %c1_192 = arith.constant 1 : index
      %c5376_193 = arith.constant 5376 : index
      %201 = vector.load %arg17[%c1_192, %c5376_193] : memref<2x6912xf32, #tpu.memory_space<vmem>>, vector<1x247xf32>
      tpu.vector_store %arg17[%c1_192, %c5376_193], %200 {strides = array<i32>} : memref<2x6912xf32, #tpu.memory_space<vmem>>, vector<1x247xf32>,
      %202 = vector.extract_strided_slice %157 {offsets = [22, 0], sizes = [1, 247], strides = [1, 1]} : vector<27x247xf32> to vector<1x247xf32>
      %c1_194 = arith.constant 1 : index
      %c5632_195 = arith.constant 5632 : index
      %203 = vector.load %arg17[%c1_194, %c5632_195] : memref<2x6912xf32, #tpu.memory_space<vmem>>, vector<1x247xf32>
      tpu.vector_store %arg17[%c1_194, %c5632_195], %202 {strides = array<i32>} : memref<2x6912xf32, #tpu.memory_space<vmem>>, vector<1x247xf32>,
      %204 = vector.extract_strided_slice %157 {offsets = [23, 0], sizes = [1, 247], strides = [1, 1]} : vector<27x247xf32> to vector<1x247xf32>
      %c1_196 = arith.constant 1 : index
      %c5888_197 = arith.constant 5888 : index
      %205 = vector.load %arg17[%c1_196, %c5888_197] : memref<2x6912xf32, #tpu.memory_space<vmem>>, vector<1x247xf32>
      tpu.vector_store %arg17[%c1_196, %c5888_197], %204 {strides = array<i32>} : memref<2x6912xf32, #tpu.memory_space<vmem>>, vector<1x247xf32>,
      %206 = vector.extract_strided_slice %157 {offsets = [24, 0], sizes = [1, 247], strides = [1, 1]} : vector<27x247xf32> to vector<1x247xf32>
      %c1_198 = arith.constant 1 : index
      %c6144_199 = arith.constant 6144 : index
      %207 = vector.load %arg17[%c1_198, %c6144_199] : memref<2x6912xf32, #tpu.memory_space<vmem>>, vector<1x247xf32>
      tpu.vector_store %arg17[%c1_198, %c6144_199], %206 {strides = array<i32>} : memref<2x6912xf32, #tpu.memory_space<vmem>>, vector<1x247xf32>,
      %208 = vector.extract_strided_slice %157 {offsets = [25, 0], sizes = [1, 247], strides = [1, 1]} : vector<27x247xf32> to vector<1x247xf32>
      %c1_200 = arith.constant 1 : index
      %c6400_201 = arith.constant 6400 : index
      %209 = vector.load %arg17[%c1_200, %c6400_201] : memref<2x6912xf32, #tpu.memory_space<vmem>>, vector<1x247xf32>
      tpu.vector_store %arg17[%c1_200, %c6400_201], %208 {strides = array<i32>} : memref<2x6912xf32, #tpu.memory_space<vmem>>, vector<1x247xf32>,
      %210 = vector.extract_strided_slice %157 {offsets = [26, 0], sizes = [1, 247], strides = [1, 1]} : vector<27x247xf32> to vector<1x247xf32>
      %c1_202 = arith.constant 1 : index
      %c6656_203 = arith.constant 6656 : index
      %211 = vector.load %arg17[%c1_202, %c6656_203] : memref<2x6912xf32, #tpu.memory_space<vmem>>, vector<1x247xf32>
      tpu.vector_store %arg17[%c1_202, %c6656_203], %210 {strides = array<i32>} : memref<2x6912xf32, #tpu.memory_space<vmem>>, vector<1x247xf32>,
    } else {
    }
    %c1152_i32 = arith.constant 1152 : i32
    %3 = arith.muli %arg0, %c1152_i32 : i32
    %4 = tpu.assume_multiple %3, 128 : i32
    %c0 = arith.constant 0 : index
    %5 = arith.index_cast %4 : i32 to index
    %6 = vector.load %arg17[%c0, %5] : memref<2x6912xf32, #tpu.memory_space<vmem>>, vector<2x1152xf32>
    %7 = arith.truncf %6 : vector<2x1152xf32> to vector<2x1152xbf16>
    %c0_1 = arith.constant 0 : index
    %c0_2 = arith.constant 0 : index
    %8 = vector.load %arg18[%c0_1, %c0_2] : memref<2x512xf32, #tpu.memory_space<vmem>>, vector<2x512xf32>
    %c0_3 = arith.constant 0 : index
    %c0_4 = arith.constant 0 : index
    %9 = vector.load %arg8[%c0_3, %c0_4] : memref<1152x512xbf16, #tpu.memory_space<vmem>>, vector<1152x512xbf16>
    %cst = arith.constant dense<0.000000e+00> : vector<2x512xf32>
    %10 = tpu.matmul %7, %9, %cst {dimension_numbers = #tpu.dot_dimension_numbers<[1], [0], [0], [1], [0, 0, 1, 1], [], []>} : vector<2x1152xbf16>, vector<1152x512xbf16>, vector<2x512xf32> -> vector<2x512xf32>
    %11 = arith.addf %8, %10 : vector<2x512xf32>
    %c0_5 = arith.constant 0 : index
    %c0_6 = arith.constant 0 : index
    %12 = vector.load %arg18[%c0_5, %c0_6] : memref<2x512xf32, #tpu.memory_space<vmem>>, vector<2x512xf32>
    tpu.vector_store %arg18[%c0_5, %c0_6], %11 {strides = array<i32>} : memref<2x512xf32, #tpu.memory_space<vmem>>, vector<2x512xf32>,
    %c5_i32 = arith.constant 5 : i32
    %13 = arith.cmpi eq, %arg0, %c5_i32 : i32
    %14 = arith.extui %13 : i1 to i32
    %c0_i32_7 = arith.constant 0 : i32
    %15 = arith.cmpi ne, %14, %c0_i32_7 : i32
    scf.if %15 {
      %c0_8 = arith.constant 0 : index
      %c0_9 = arith.constant 0 : index
      %16 = vector.load %arg18[%c0_8, %c0_9] : memref<2x512xf32, #tpu.memory_space<vmem>>, vector<2x512xf32>
      %c0_10 = arith.constant 0 : index
      %c0_11 = arith.constant 0 : index
      %17 = vector.load %arg9[%c0_10, %c0_11] : memref<1x512xf32, #tpu.memory_space<vmem>>, vector<1x512xf32>
      %18 = vector.broadcast %17 : vector<1x512xf32> to vector<2x512xf32>
      %19 = arith.addf %16, %18 : vector<2x512xf32>
      %cst_12 = arith.constant 0.000000e+00 : f32
      %20 = vector.broadcast %cst_12 : f32 to vector<2x512xf32>
      %21 = arith.maximumf %19, %20 : vector<2x512xf32>
      %22 = arith.truncf %21 : vector<2x512xf32> to vector<2x512xbf16>
      %c0_13 = arith.constant 0 : index
      %c0_14 = arith.constant 0 : index
      %23 = vector.load %arg10[%c0_13, %c0_14] : memref<512x256xbf16, #tpu.memory_space<vmem>>, vector<512x256xbf16>
      %cst_15 = arith.constant dense<0.000000e+00> : vector<2x256xf32>
      %24 = tpu.matmul %22, %23, %cst_15 {dimension_numbers = #tpu.dot_dimension_numbers<[1], [0], [0], [1], [0, 0, 1, 1], [], []>} : vector<2x512xbf16>, vector<512x256xbf16>, vector<2x256xf32> -> vector<2x256xf32>
      %c0_16 = arith.constant 0 : index
      %c0_17 = arith.constant 0 : index
      %25 = vector.load %arg11[%c0_16, %c0_17] : memref<1x256xf32, #tpu.memory_space<vmem>>, vector<1x256xf32>
      %26 = vector.broadcast %25 : vector<1x256xf32> to vector<2x256xf32>
      %27 = arith.addf %24, %26 : vector<2x256xf32>
      %cst_18 = arith.constant 0.000000e+00 : f32
      %28 = vector.broadcast %cst_18 : f32 to vector<2x256xf32>
      %29 = arith.maximumf %27, %28 : vector<2x256xf32>
      %c0_19 = arith.constant 0 : index
      %c0_20 = arith.constant 0 : index
      %30 = vector.load %arg12[%c0_19, %c0_20] : memref<2x256xf32, #tpu.memory_space<vmem>>, vector<2x256xf32>
      tpu.vector_store %arg12[%c0_19, %c0_20], %29 {strides = array<i32>} : memref<2x256xf32, #tpu.memory_space<vmem>>, vector<2x256xf32>,
    } else {
    }
    return
  }
  func.func @transform_0(%arg0: i32) -> (i32, i32, i32) {
    %c0_i32 = arith.constant 0 : i32
    %c0_i32_0 = arith.constant 0 : i32
    %c0_i32_1 = arith.constant 0 : i32
    %c0_i32_2 = arith.constant 0 : i32
    return %c0_i32, %c0_i32_0, %c0_i32_1 : i32, i32, i32
  }
  func.func @transform_1(%arg0: i32) -> (i32, i32) {
    %c0_i32 = arith.constant 0 : i32
    %c0_i32_0 = arith.constant 0 : i32
    %c0_i32_1 = arith.constant 0 : i32
    return %c0_i32, %c0_i32_0 : i32, i32
  }
  func.func @transform_2(%arg0: i32) -> (i32, i32) {
    %c0_i32 = arith.constant 0 : i32
    %c0_i32_0 = arith.constant 0 : i32
    %c0_i32_1 = arith.constant 0 : i32
    return %c0_i32, %c0_i32_0 : i32, i32
  }
  func.func @transform_3(%arg0: i32) -> (i32, i32) {
    %c0_i32 = arith.constant 0 : i32
    %c0_i32_0 = arith.constant 0 : i32
    %c0_i32_1 = arith.constant 0 : i32
    return %c0_i32, %c0_i32_0 : i32, i32
  }
  func.func @transform_4(%arg0: i32) -> (i32, i32) {
    %c0_i32 = arith.constant 0 : i32
    %c0_i32_0 = arith.constant 0 : i32
    %c0_i32_1 = arith.constant 0 : i32
    return %c0_i32, %c0_i32_0 : i32, i32
  }
  func.func @transform_5(%arg0: i32) -> (i32, i32) {
    %c0_i32 = arith.constant 0 : i32
    %c0_i32_0 = arith.constant 0 : i32
    %c0_i32_1 = arith.constant 0 : i32
    return %c0_i32, %c0_i32_0 : i32, i32
  }
  func.func @transform_6(%arg0: i32) -> (i32, i32) {
    %c0_i32 = arith.constant 0 : i32
    %c0_i32_0 = arith.constant 0 : i32
    %c0_i32_1 = arith.constant 0 : i32
    return %c0_i32, %c0_i32_0 : i32, i32
  }
  func.func @transform_7(%arg0: i32) -> (i32, i32) {
    %c0_i32 = arith.constant 0 : i32
    %c0_i32_0 = arith.constant 0 : i32
    return %arg0, %c0_i32 : i32, i32
  }
  func.func @transform_8(%arg0: i32) -> (i32, i32) {
    %c0_i32 = arith.constant 0 : i32
    %c0_i32_0 = arith.constant 0 : i32
    %c0_i32_1 = arith.constant 0 : i32
    return %c0_i32, %c0_i32_0 : i32, i32
  }
  func.func @transform_9(%arg0: i32) -> (i32, i32) {
    %c0_i32 = arith.constant 0 : i32
    %c0_i32_0 = arith.constant 0 : i32
    %c0_i32_1 = arith.constant 0 : i32
    return %c0_i32, %c0_i32_0 : i32, i32
  }
  func.func @transform_10(%arg0: i32) -> (i32, i32) {
    %c0_i32 = arith.constant 0 : i32
    %c0_i32_0 = arith.constant 0 : i32
    %c0_i32_1 = arith.constant 0 : i32
    return %c0_i32, %c0_i32_0 : i32, i32
  }
  func.func @transform_11(%arg0: i32) -> (i32, i32) {
    %c0_i32 = arith.constant 0 : i32
    %c0_i32_0 = arith.constant 0 : i32
    %c0_i32_1 = arith.constant 0 : i32
    return %c0_i32, %c0_i32_0 : i32, i32
  }
}

</mosaic_0001>

<bundles_post_ra>
// kernel: tpu_custom_call.1
= control target key start
LH: loop header
LB: loop body
LE: loop exit
PB: predicated region body
PF: predicated region fallthrough
CT: control target
= control target key end

     0   :  { %s8800_s0 = inlined_call_operand.hbm [shape: f32[2,4,247], index: 0, kind: input, shape index: {}]   ;;  %s8801_s1 = inlined_call_operand.vmem [shape: f32[27,12], index: 1, kind: input, shape index: {}]   ;;  %s8802_s2 = inlined_call_operand.vmem [shape: f32[27,1], index: 2, kind: input, shape index: {}]   ;;  %s8803_s3 = inlined_call_operand.vmem [shape: f32[27,1], index: 3, kind: input, shape index: {}]   ;;  %s8804_s4 = inlined_call_operand.hbm [shape: f32[27,81], index: 4, kind: input, shape index: {}]   ;;  %s8805_s5 = inlined_call_operand.vmem [shape: f32[27,1], index: 5, kind: input, shape index: {}]   ;;  %s8806_s6 = inlined_call_operand.vmem [shape: f32[27,1], index: 6, kind: input, shape index: {}]   ;;  %s8807_s7 = inlined_call_operand.hbm [shape: bf16[6912,512], index: 7, kind: input, shape index: {}]   ;;  %s8808_s8 = inlined_call_operand.hbm [shape: f32[1,512], index: 8, kind: input, shape index: {}]   ;;  %s8809_s9 = inlined_call_operand.hbm [shape: bf16[512,256], index: 9, kind: input, shape index: {}]   ;;  %s8810_s10 = inlined_call_operand.hbm [shape: f32[1,256], index: 10, kind: input, shape index: {}]   ;;  %s8811_s11 = inlined_call_operand.hbm [shape: f32[2,256], index: 11, kind: output, shape index: {}]  }
   0x1   :  { %8819 = sst [smem:[#allocation25_spill]] %s8800_s0 }
   0x2   :  { %8820 = sst [smem:[#allocation26_spill]] %s8804_s4 }
   0x3   :  { %8821 = sst [smem:[#allocation27_spill]] %s8808_s8 }
   0x4   :  { %8822 = sst [smem:[#allocation28_spill]] %s8809_s9 }
   0x5   :  { %16 = vsyncpa [#allocation9], 0 }
   0x6   :  { %17 = vsyncpa [#allocation12], 0 }
   0x7   :  { %18 = vsyncpa [#allocation16], 0 }
   0x8   :  { %19 = vsyncpa [#allocation10], 0  ;;  %s7271_s17 = smov 0   ;;  %s7273_s18 = smov 0  }
   0x9   :  { %s7275_s19 = smov 0   ;;  %s7277_s20 = smov 0  }
   0xa LB: > { %s7290_s21 = sadd.s32 4294967295, %s7194_s20   ;;  %p192_p0 = scmp.ne.s32.totalorder %s7186_s18, %s7182_s17  ;;  %s7194_s20 = sphi %s7277_s20, %s8859_s20   ;;  %s7190_s19 = sphi %s7275_s19, %s8858_s19   ;;  %s7186_s18 = sphi %s7273_s18, %s8857_s18   ;;  %s7182_s17 = sphi %s7271_s17, %s8856_s17  }
   0xb   : > { %p193_p1 = scmp.eq.s32.totalorder %s7290_s21, 0  ;;  %p4974_p2 = scmp.ge.s32.totalorder %s7194_s20, 1 }
   0xc   : > { %p287_p3 = scmp.lt.s32.totalorder %s7194_s20, 7  ;;  %p4975_p4 = scmp.ne.s32.totalorder %s7290_s21, 0 }
   0xd   : > { %p7299_p5 = por %p193_p1, %p192_p0  ;;  %s8824_s0 = sld [smem:[#allocation25_spill]] }
   0xe   : > { %p7306_p6 = pnand %p4974_p2, %p287_p3  ;;  %s7196_s27 = smov [#allocation8]  }
   0xf   : > { %s300_s28 = sshll.u32 %s7196_s27, 4  ;;  %s8827_s4 = sld [smem:[#allocation26_spill]]  ;;  %s301_s28 = int_to_ptr.vmem [resolvable:$true] %s300_s28 }
  0x10   : > { %p6849_p7 = pneg %p7306_p6  ;;  %s7197_s14 = smov 128  }
  0x11   : > { %s7198_s15 = smov 8   ;;  %s7199_s16 = smov [#allocation11]  }
  0x12   : > { %p7314_p8 = pnand %p6849_p7, %p193_p1  ;;  %s323_s17 = sshll.u32 %s7199_s16, 4  ;;  %s324_s17 = int_to_ptr.vmem [resolvable:$true] %s323_s17 }
  0x13   : > { %s298_s25 = sshll.u32 %s8824_s0, 4  ;;  %s8828_s9 = sld [smem:[#allocation28_spill]]  ;;  %s299_s25 = int_to_ptr.hbm [resolvable:$true] %s298_s25 }
  0x14   : > { %6852 = dma.hbm_to_vmem [thread:$0]  (!%p7314_p8), %s299_s25, 256, %s301_s28, [#allocation9], %s7197_s14, %s7197_s14, %s7198_s15  }
  0x15   : > { %s321_s13 = sshll.u32 %s8827_s4, 4  ;;  %s8829_s8 = sld [smem:[#allocation27_spill]]  ;;  %s322_s13 = int_to_ptr.hbm [resolvable:$true] %s321_s13 }
  0x16   : > { %6855 = dma.hbm_to_vmem [thread:$0]  (!%p7314_p8), %s322_s13, 512, %s324_s17, [#allocation12], %s7197_s14, %s7197_s14, %s7198_s15  }
  0x17   : > { %s7200_s4 = smov [#allocation15]   ;;  %s7201_s28 = smov [#allocation14]  }
  0x18   : > { %s355_s25 = sshll.u32 %s7200_s4, 4  ;;  %s344_s13 = sshll.u32 %s7201_s28, 4  ;;  %s356_s25 = int_to_ptr.vmem [resolvable:$true] %s355_s25  ;;  %s345_s13 = int_to_ptr.vmem [resolvable:$true] %s344_s13 }
  0x19   : > { %s353_s27 = sshll.u32 %s8828_s9, 4  ;;  %s368_s23 = sshll.u32 %s8810_s10, 4  ;;  %s354_s27 = int_to_ptr.hbm [resolvable:$true] %s353_s27  ;;  %s369_s23 = int_to_ptr.hbm [resolvable:$true] %s368_s23 }
  0x1a   : > { %6861 = dma.hbm_to_vmem [thread:$0]  (!%p7314_p8), %s354_s27, 8192, %s356_s25, [#allocation16], %s7197_s14, %s7197_s14, %s7198_s15  }
  0x1b   : > { %s342_s0 = sshll.u32 %s8829_s8, 4  ;;  %s7202_s4 = smov [#allocation17]   ;;  %s343_s0 = int_to_ptr.hbm [resolvable:$true] %s342_s0 }
  0x1c   : > { %6858 = dma.hbm_to_vmem [thread:$0]  (!%p7314_p8), %s343_s0, 64, %s345_s13, [#allocation12]  }
  0x1d   : > { %s370_s24 = sshll.u32 %s7202_s4, 4  ;;  %s7339_s14 = sadd.s32 1, %s7194_s20   ;;  %s371_s24 = int_to_ptr.vmem [resolvable:$true] %s370_s24 }
  0x1e   : > { %6864 = dma.hbm_to_vmem [thread:$0]  (!%p7314_p8), %s369_s23, 32, %s371_s24, [#allocation16]  }
  0x1f   : > { %s176_s15 = ssub.s32 %s7194_s20, %s7339_s14  ;;  %s179_s27 = sadd.s32 1, %s7190_s19 }
  0x20   : > { %p177_p9 = scmp.eq.s32.totalorder %s176_s15, 0  ;;  %p186_p10 = scmp.ne.s32.totalorder %s7190_s19, %s7186_s18 }
  0x21   : > { %p187_p11 = scmp.eq.s32.totalorder %s7194_s20, 0  ;;  %p6874_p12 = scmp.lt.s32.totalorder %s7194_s20, 6 }
  0x22   : > { %s7351_s30 = scalar_select %p177_p9, %s7190_s19, %s179_s27  }
  0x23   : > { %p188_p13 = por %p187_p11, %p186_p10  ;;  %s381_s12 = sand.u32 1, %s7194_s20  }
  0x24   : > { %s383_s0 = sand.u32 1, %s7190_s19   ;;  %s6798_s29 = smul.u32 2304, %s7194_s20 }
  0x25   : > { %s6821_s25 = smul.u32 2304, %s383_s0  ;;  %p7355_p0 = pnand %p6874_p12, %p188_p13 }
  0x26   : > { %s391_s17 = scalar_lea.hbm %s8807_s7, %s6798_s29  ;;  %s382_s15 = scalar_lea.sflag [#allocation9], %s381_s12 }
  0x27   : > { %s385_s23 = scalar_lea.vmem [#allocation13], %s6821_s25  ;;  %s392_s24 = sshll.u32 %s391_s17, 4  ;;  %s393_s24 = int_to_ptr.hbm [resolvable:$true] %s392_s24 }
  0x28   : > { %s394_s4 = sshll.u32 %s385_s23, 4  ;;  %s7082_s27 = sshra.s32 %s393_s24, 4  ;;  %s395_s4 = int_to_ptr.vmem [resolvable:$true] %s394_s4  ;;  %s7083_s27 = int_to_ptr.hbm [resolvable:$true] %s7082_s27 }
  0x29   : > { %s7084_s8 = scalar_lea.hbm %s7083_s27, 2304  ;;  %p7086_p3 = pneg %p7355_p0 }
  0x2a   : > { %p7085_p2 = scmp.ne.s32.totalorder %s7083_s27, %s7084_s8  ;;  %s7089_s9 = scalar_lea.hbm %s8807_s7, 13824 }
  0x2b   : > { %p7090_p9 = scmp.lt.s32.totalorder %s7083_s27, %s8807_s7  ;;  %p7091_p10 = scmp.lt.s32.totalorder %s7089_s9, %s7084_s8 }
  0x2c   : > { %p7087_p7 = pnand %p7086_p3, %p7085_p2 }
  0x2d   : > { %p7092_p11 = por %p7091_p10, %p7090_p9 }
  0x2e   : > { %p7088_p8 = pneg %p7087_p7 }
  0x30   : > { %p7093_p12 = pnand %p7092_p11, %p7088_p8 }
  0x32   : > { %7096 = shalt.err (!%p7093_p12)
}
  0x33   : > { %s7203_s12 = smov 256   ;;  %s7204_s25 = smov 16  }
  0x34   : > { %6868 = dma.hbm_to_vmem [thread:$0]  (!%p7355_p0), %s393_s24, 36864, %s395_s4, %s382_s15, %s7203_s12, %s7203_s12, %s7204_s25  }
  0x35   : > { %406 = sbr.rel (%p7306_p6) target bundleno = 2801 (0xaf1), region = 64 }
  0x3a   : > { %7157 = dma.done.wait (%p193_p1), [#allocation9], 256  }
  0x3b   : > { %7159 = vsyncadd (%p193_p1), [#allocation9], 4294967040 }
  0x3c   : > { %7161 = dma.done.wait (%p193_p1), [#allocation12], 512  }
  0x3d   : > { %7163 = vsyncadd (%p193_p1), [#allocation12], 4294966784  ;;  %s418_s8 = sand.u32 1, %s7290_s21   ;;  %s420_s9 = sand.u32 1, %s7186_s18  }
  0x3e   : > { %s6822_s28 = smul.u32 2304, %s420_s9  ;;  %s419_s26 = scalar_lea.sflag [#allocation9], %s418_s8 }
  0x40   : > { %s7385_s16 = scalar_lea.vmem [#allocation13], %s6822_s28 }
  0x41   : > { %7165 = dma.done.wait (%p7299_p5), %s419_s26, 36864  }
  0x42   : > { %7167 = vsyncadd (%p7299_p5), %s419_s26, 4294930432 }
  0x43   : > { %7169 = dma.done.wait (%p193_p1), [#allocation12], 64  }
  0x44   : > { %7171 = vsyncadd (%p193_p1), [#allocation12], 4294967232 }
  0x45   : > { %7173 = dma.done.wait (%p193_p1), [#allocation16], 8224  }
  0x46   : > { %7175 = vsyncadd (%p193_p1), [#allocation16], 4294959072  ;;  %476 = sbr.rel (%p4975_p4) target bundleno = 2148 (0x864), region = 92  ;;  %s7205_s17 = smov (!%p4975_p4), 1  }
  0x47   : > { %s7207_s22 = smov (!%p4975_p4), 127   ;;  %s7208_s23 = smov (!%p4975_p4), 126  }
  0x4b   : > { %v492_v0 = vld [vmem:[#allocation8] sm:$0xff]  ;;  %vm493_vm0 = vcmask 1043456   ;;  %vm494_vm1 = vcmask 990212   ;;  %v7206_v2 = vmov 0.0   ;;  %vm504_vm3 = vcmask 1043464   ;;  %v7463_v19 = vld [vmem:[%s8803_s3] sm:$0xff] }
  0x4c   : > { %498 = vrot.lane.b32.xlu0 %v492_v0, %s7205_s17  ;;  %vm7403_vm2 = vmor %vm494_vm1, %vm493_vm0  ;;  %477 = vst [vmem:[#allocation7] sm:$0xff] %v7206_v2  ;;  %vm505_vm4 = vcmask 982020   ;;  %vm501_vm5 = vcmask 7168   ;;  %vm516_vm7 = vcmask 969728   ;;  %vm533_vm8 = vcmask 973828   ;;  %v7451_v17 = vld [vmem:[%s8803_s3 + $0x10] sm:$0xff] }
  0x4d   : > { %496 = vst.msk [vmem:[#allocation2] sm:$0xff] %vm7403_vm2, %v7206_v2  ;;  %vm7429_vm6 = vmor %vm505_vm4, %vm504_vm3  ;;  %v7209_v15 = vmov 0   ;;  %v670_v16 = vld [vmem:[%s8803_s3 + $0x18] sm:$0x7]  ;;  %v7457_v18 = vld [vmem:[%s8802_s2 + $0x10] sm:$0xff]  ;;  %vm544_vm9 = vcmask 1031168  }
  0x4e   : > { %478 = vst [vmem:[#allocation6] sm:$0xff] %v7206_v2  ;;  %6931 = vset.pattern.permute.xlu1 %v7209_v15  ;;  %6930 = vset.pattern.permute.xlu0 %v7209_v15  ;;  %v638_v20 = vld [vmem:[%s8802_s2 + $0x18] sm:$0x7]  ;;  %v7472_v21 = vld [vmem:[%s8803_s3 + $0x8] sm:$0xff]  ;;  %vm528_vm10 = vcmask 1039360   ;;  %v550_v30 = vld [vmem:[%s8801_s1] sm:$0xff] }
  0x4f   : > { %479 = vst [vmem:[#allocation6 + $0x8] sm:$0xff] %v7206_v2  ;;  %6929 = vset.pattern.permute.xlu2 %v7209_v15  ;;  %v7480_v25 = vld [vmem:[%s8802_s2 + $0x8] sm:$0xff]  ;;  %vm558_vm11 = vcmask 97280   ;;  %v7492_v32 = vld [vmem:[%s8802_s2] sm:$0xff]  ;;  %v552_v35 = vld [vmem:[%s8801_s1 + $0x10] sm:$0xff]  ;;  %vm708_vm12 = vcmask 990208  }
  0x50   : > { %480 = vst [vmem:[#allocation6 + $0x10] sm:$0xff] %v7206_v2  ;;  %v551_v34 = vld [vmem:[%s8801_s1 + $0x8] sm:$0xff]  ;;  %v553_v36 = vld [vmem:[%s8801_s1 + $0x18] sm:$0x7]  ;;  %vm715_vm13 = vcmask 985088   ;;  %vm8813_vm14 = vcmask 1042440  }
  0x51   : > { %481 = vst [vmem:[#allocation6 + $0x18] sm:$0xff] %v7206_v2  ;;  %vm753_vm15 = vcmask 1047560   ;;  %vm755_vm1 = vcmask 982016   ;;  %vm868_vm3 = vcmask 1045504   ;;  %vm781_vm4 = vcmask 968704  }
  0x52   : > { %482 = vst [vmem:[#allocation6 + $0x20] sm:$0xff] %v7206_v2 }
  0x53   : > { %483 = vst [vmem:[#allocation6 + $0x28] sm:$0xff] %v7206_v2 }
  0x54   : > { %484 = vst [vmem:[#allocation6 + $0x30] sm:$0xff] %v7206_v2 }
  0x55   : > { %485 = vst [vmem:[#allocation6 + $0x38] sm:$0xff] %v7206_v2 }
  0x56   : > { %486 = vst [vmem:[#allocation6 + $0x40] sm:$0xff] %v7206_v2 }
  0x57   : > { %487 = vst [vmem:[#allocation6 + $0x48] sm:$0xff] %v7206_v2 }
  0x58   : > { %488 = vst [vmem:[#allocation6 + $0x50] sm:$0xff] %v7206_v2 }
  0x59   : > { %489 = vst [vmem:[#allocation6 + $0x58] sm:$0xff] %v7206_v2 }
  0x5a   : > { %490 = vst [vmem:[#allocation6 + $0x60] sm:$0xff] %v7206_v2 }
  0x5b   : > { %491 = vst [vmem:[#allocation6 + $0x68] sm:$0xf] %v7206_v2 }
  0x5c   : > { %707 = vst [vmem:[#allocation4] sm:$0xff] %v7206_v2 }
  0x5d   : > { %710 = vst [vmem:[#allocation4 + $0x10] sm:$0xff] %v7206_v2 }
  0x5e   : > { %712 = vst [vmem:[#allocation4 + $0x20] sm:$0xff] %v7206_v2 }
  0x5f   : > { %714 = vst [vmem:[#allocation4 + $0x30] sm:$0x7] %v7206_v2 }
  0x60   : > { %713 = vst.msk [vmem:[#allocation4 + $0x28] sm:$0xff] %vm708_vm12, %v7206_v2 }
  0x61   : > { %709 = vst.msk [vmem:[#allocation4 + $0x8] sm:$0xff] %vm708_vm12, %v7206_v2 }
  0x62   : > { %711 = vst.msk [vmem:[#allocation4 + $0x18] sm:$0xff] %vm708_vm12, %v7206_v2 }
  0x63   : > { %716 = vst.msk [vmem:[#allocation4 + $0x38] sm:$0x7] %vm715_vm13, %v7206_v2 }
  0xbe   : > { %v499_v3 = vpop.permute.xlu0 %498 }
  0xbf   : > { %v500_v5 = vrot.slane %v499_v3, 4 }
  0xc1   : > { %v502_v6 = vsel %vm501_vm5, %v500_v5, %v499_v3 }
  0xc2   : > { %507 = vst.msk [vmem:[#allocation2] sm:$0xff] %vm7429_vm6, %v502_v6 }
  0xc9   : > { %v508_v7 = vld [vmem:[#allocation2] sm:$0xff] }
  0xca   : > { %510 = vst [vmem:[#allocation1] ss:$2 sm:$0xff] %v508_v7 }
  0xcb   : > { %1300 = vst.msk [vmem:[#allocation2] sm:$0xff] %vm7403_vm2, %v7206_v2  ;;  %vm8812_vm2 = vcmask 976896  }
  0xd1   : > { %v511_v8 = vld.sshfl [vmem:[#allocation1] sm:$0xff pattern:$0x75316420]  ;;  %v512_v9 = vld.sshfl [vmem:[#allocation1 + $0x8] sm:$0xff pattern:$0x75316420] }
  0xd2   : > { %521 = vst [vmem:[#allocation1 + $0x1] ss:$2 sm:$0xff] %v508_v7 }
  0xd3   : > { %515 = vst [vmem:[#allocation3] sm:$0xf] %v511_v8 }
  0xd4   : > { %517 = vst.msk [vmem:[#allocation3 + $0x8] sm:$0xf] %vm516_vm7, %v512_v9 }
  0xd9   : > { %v522_v10 = vld.sshfl [vmem:[#allocation1] sm:$0xff pattern:$0x75316420]  ;;  %v523_v11 = vld.sshfl [vmem:[#allocation1 + $0x8] sm:$0xff pattern:$0x75316420] }
  0xda   : > { %537 = vst [vmem:[#allocation1] ss:$2 sm:$0xff] %v508_v7  ;;  %526 = vrot.lane.b32.xlu2 %v523_v11, %s7207_s22 }
  0xe1   : > { %v539_v12 = vld.sshfl [vmem:[#allocation1 + $0x8] sm:$0xff pattern:$0x75316420]  ;;  %v538_v13 = vld.sshfl [vmem:[#allocation1] sm:$0xff pattern:$0x75316420] }
  0xe2   : > { %542 = vrot.lane.b32.xlu1 %v539_v12, %s7208_s23  ;;  %540 = vrot.lane.b32.xlu0 %v538_v13, %s7208_s23 }
  0xe3   : > { %656 = vperm.xlu2 %6929, %v638_v20  }
  0xea   : > { %524 = vrot.lane.b32.xlu1 %v522_v10, %s7207_s22  ;;  %651 = vperm.xlu0 %6930, %v7457_v18  }
  0xeb   : > { %646 = vperm.xlu2 %6929, %v7480_v25  }
  0xf2   : > { %688 = vperm.xlu1 %6931, %v670_v16   ;;  %678 = vperm.xlu0 %6930, %v7472_v21  }
  0xf3   : > { %641 = vperm.xlu2 %6929, %v7492_v32  }
  0xfa   : > { %683 = vperm.xlu1 %6931, %v7451_v17  }
 0x102   : > { %673 = vperm.xlu1 %6931, %v7463_v19  }
 0x134   : > { %v527_v14 = vpop.permute.xlu2 %526 }
 0x135   : > { %534 = vst.msk [vmem:[#allocation3 + $0x8] sm:$0xf0] %vm533_vm8, %v527_v14 }
 0x13c   : > { %v555_v31 = vld [vmem:[#allocation3 + $0x8] sm:$0xff] }
 0x13d   : > { %v657_v38 = vpop.permute.xlu2 %656 }
 0x145   : > { %v647_v43 = vpop.permute.xlu2 %646 }
 0x14d   : > { %v642_v58 = vpop.permute.xlu2 %641 }
 0x154   : > { %v543_v22 = vpop.permute.xlu1 %542  ;;  %v541_v23 = vpop.permute.xlu0 %540 }
 0x155   : > { %549 = vst.msk [vmem:[#allocation3 + $0x18] sm:$0xf] %vm516_vm7, %v543_v22  ;;  %v545_v24 = vsel %vm544_vm9, %v541_v23, %v543_v22 }
 0x156   : > { %548 = vst [vmem:[#allocation3 + $0x10] sm:$0xf] %v545_v24 }
 0x15c   : > { %v525_v26 = vpop.permute.xlu1 %524  ;;  %v557_v27 = vld [vmem:[#allocation3 + $0x18] sm:$0xf]  ;;  %v652_v39 = vpop.permute.xlu0 %651 }
 0x15d   : > { %v529_v28 = vsel %vm528_vm10, %v525_v26, %v527_v14  ;;  %4995 = vmatpush.msk.msra.mxu1 %vm493_vm0, %v557_v27  ;;  %v556_v29 = vld [vmem:[#allocation3 + $0x10] sm:$0xf] }
 0x15e   : > { %532 = vst [vmem:[#allocation3] sm:$0xf0] %v529_v28  ;;  %4990 = vmatpush.msk.msra.mxu0 %vm493_vm0, %v556_v29 }
 0x15f   : > { %621 = vmatpush.msra.mxu1 %v555_v31 }
 0x160   : > { %4996 = vmatmul.msk.f32.vlgmr.msra.gmra.mxu1 %vm558_vm11, %v550_v30 }
 0x164   : > { %v689_v41 = vpop.permute.xlu1 %688  ;;  %v679_v47 = vpop.permute.xlu0 %678 }
 0x165   : > { %v554_v33 = vld [vmem:[#allocation3] sm:$0xff] }
 0x166   : > { %592 = vmatpush.msra.mxu0 %v554_v33 }
 0x167   : > { %4991 = vmatmul.msk.f32.vlgmr.msra.gmra.mxu0 %vm558_vm11, %v550_v30 }
 0x168   : > { %4997 = vmatmul.msk.f32.gmra.mxu1 %vm558_vm11, %v551_v34 }
 0x16c   : > { %v684_v49 = vpop.permute.xlu1 %683 }
 0x16f   : > { %4992 = vmatmul.msk.f32.gmra.mxu0 %vm558_vm11, %v551_v34 }
 0x170   : > { %4998 = vmatmul.msk.f32.gmra.mxu1 %vm558_vm11, %v552_v35 }
 0x174   : > { %v674_v1 = vpop.permute.xlu1 %673 }
 0x177   : > { %4993 = vmatmul.msk.f32.gmra.mxu0 %vm558_vm11, %v552_v35 }
 0x178   : > { %4999 = vmatmul.msk.f32.gmra.mxu1 %vm558_vm11, %v553_v36 }
 0x17f   : > { %4994 = vmatmul.msk.f32.gmra.mxu0 %vm558_vm11, %v553_v36 }
 0x1dd   : > { %v623_v37 = vpop.f32.mrf.mxu1 }
 0x1de   : > { %v660_v63 = vmul.f32 %v642_v58, %v623_v37 }
 0x1e0   : > { %v692_v7 = vadd.f32 %v674_v1, %v660_v63 }
 0x1e2   : > { %v700_v12 = vmax.f32 %v692_v7, 0.0 }
 0x1e4   : > { %v594_v40 = vpop.f32.mrf.mxu0 }
 0x1e5   : > { %v626_v42 = vpop.f32.mrf.mxu1  ;;  %v659_v9 = vmul.f32 %v642_v58, %v594_v40 }
 0x1e6   : > { %v662_v61 = vmul.f32 %v647_v43, %v626_v42 }
 0x1e7   : > { %v691_v13 = vadd.f32 %v674_v1, %v659_v9 }
 0x1e8   : > { %v694_v5 = vadd.f32 %v679_v47, %v662_v61 }
 0x1e9   : > { %v699_v14 = vmax.f32 %v691_v13, 0.0  ;;  %v1037_v13 = vld [vmem:[%s8805_s5 + $0x18] sm:$0x7] }
 0x1ea   : > { %v702_v10 = vmax.f32 %v694_v5, 0.0 }
 0x1ec   : > { %v597_v44 = vpop.f32.mrf.mxu0 }
 0x1ed   : > { %v661_v45 = vmul.f32 %v647_v43, %v597_v44  ;;  %v629_v46 = vpop.f32.mrf.mxu1 }
 0x1ee   : > { %v664_v48 = vmul.f32 %v652_v39, %v629_v46 }
 0x1ef   : > { %v693_v50 = vadd.f32 %v679_v47, %v661_v45 }
 0x1f0   : > { %v696_v51 = vadd.f32 %v684_v49, %v664_v48 }
 0x1f1   : > { %v701_v52 = vmax.f32 %v693_v50, 0.0 }
 0x1f2   : > { %v704_v53 = vmax.f32 %v696_v51, 0.0 }
 0x1f3   : > { %729 = vrot.lane.b32.xlu0 %v701_v52, %s7205_s17 }
 0x1f4   : > { %735 = vrot.lane.b32.xlu2 %v704_v53, %s7205_s17  ;;  %v600_v54 = vpop.f32.mrf.mxu0 }
 0x1f5   : > { %v663_v55 = vmul.f32 %v652_v39, %v600_v54  ;;  %v632_v56 = vpop.f32.mrf.mxu1 }
 0x1f6   : > { %v666_v57 = vmul.f32 %v657_v38, %v632_v56 }
 0x1f7   : > { %v695_v59 = vadd.f32 %v684_v49, %v663_v55 }
 0x1f8   : > { %v698_v60 = vadd.f32 %v689_v41, %v666_v57 }
 0x1f9   : > { %v703_v62 = vmax.f32 %v695_v59, 0.0 }
 0x1fa   : > { %v706_v0 = vmax.f32 %v698_v60, 0.0 }
 0x1fb   : > { %733 = vrot.lane.b32.xlu1 %v703_v62, %s7205_s17 }
 0x1fc   : > { %739 = vrot.lane.b32.xlu0 %v706_v0, %s7205_s17  ;;  %v603_v3 = vpop.f32.mrf.mxu0 }
 0x1fd   : > { %v665_v6 = vmul.f32 %v657_v38, %v603_v3 }
 0x1ff   : > { %v697_v8 = vadd.f32 %v689_v41, %v665_v6 }
 0x201   : > { %v705_v11 = vmax.f32 %v697_v8, 0.0  ;;  %v1034_v8 = vld [vmem:[%s8805_s5] sm:$0xff] }
 0x203   : > { %731 = vrot.lane.b32.xlu1 %v702_v10, %s7205_s17  ;;  %737 = vrot.lane.b32.xlu2 %v705_v11, %s7205_s17  ;;  %v1067_v11 = vld [vmem:[%s8806_s6 + $0x8] sm:$0xff] }
 0x204   : > { %727 = vrot.lane.b32.xlu0 %v700_v12, %s7205_s17  ;;  %v7612_v12 = vld [vmem:[%s8806_s6] sm:$0xff] }
 0x20b   : > { %725 = vrot.lane.b32.xlu2 %v699_v14, %s7205_s17  ;;  %v7622_v14 = vld [vmem:[%s8805_s5 + $0x8] sm:$0xff] }
 0x24e   : > { %v736_v15 = vpop.permute.xlu2 %735 }
 0x25d   : > { %v738_v16 = vpop.permute.xlu2 %737 }
 0x25e   : > { %762 = vst.msk [vmem:[#allocation4 + $0x30] sm:$0x7] %vm8813_vm14, %v738_v16  ;;  %vm774_vm14 = vcmask 973824  }
 0x265   : > { %v730_v20 = vpop.permute.xlu0 %729  ;;  %v726_v22 = vpop.permute.xlu2 %725  ;;  %v771_v23 = vld [vmem:[#allocation4 + $0x30] sm:$0x7] }
 0x266   : > { %757 = vst.msk [vmem:[#allocation4 + $0x10] sm:$0xff] %vm753_vm15, %v730_v20  ;;  %v7531_v24 = vld [vmem:[#allocation4 + $0x30] sm:$0x7] }
 0x267   : > { %754 = vst.msk [vmem:[#allocation4] sm:$0xff] %vm753_vm15, %v726_v22  ;;  %v7533_v26 = vld [vmem:[#allocation4 + $0x30] sm:$0x7]  ;;  %v810_v9 = vrot.slane %v7531_v24, 5 }
 0x268   : > { %780 = vst [vmem:[#allocation5 + $0x30] sm:$0x7] %v771_v23  ;;  %v879_v52 = vrot.slane %v7533_v26, 2 }
 0x269   : > { %1508 = vst [vmem:[#allocation4 + $0x30] sm:$0x7] %v7206_v2 }
 0x26d   : > { %v7536_v27 = vld [vmem:[#allocation4 + $0x10] sm:$0xff]  ;;  %v734_v28 = vpop.permute.xlu1 %733 }
 0x26e   : > { %v7538_v29 = vld [vmem:[#allocation4] sm:$0xff]  ;;  %v743_v30 = vsel %vm501_vm5, %v734_v28, %v736_v15  ;;  %759 = vst.msk [vmem:[#allocation4 + $0x20] sm:$0xff] %vm753_vm15, %v734_v28  ;;  %v740_v31 = vpop.permute.xlu0 %739  ;;  %v871_v33 = vrot.slane %v7536_v27, 2  ;;  %v802_v41 = vrot.slane %v7536_v27, 5 }
 0x26f   : > { %760 = vst.msk [vmem:[#allocation4 + $0x28] sm:$0xff] %vm755_vm1, %v743_v30  ;;  %v744_v34 = vsel %vm501_vm5, %v738_v16, %v740_v31  ;;  %v869_v35 = vrot.slane %v7538_v29, 2  ;;  %v800_v62 = vrot.slane %v7538_v29, 5  ;;  %v7627_v15 = vld [vmem:[%s8805_s5 + $0x10] sm:$0xff] }
 0x270   : > { %764 = vst.msk [vmem:[#allocation4 + $0x38] sm:$0x7] %vm8812_vm2, %v744_v34  ;;  %vm8814_vm2 = vcmask 1042432   ;;  %v7634_v16 = vld [vmem:[%s8806_s6 + $0x10] sm:$0xff] }
 0x271   : > { %883 = vrot.lane.b32.xlu2 %v869_v35, %s7208_s23  ;;  %v872_v36 = vsel %vm868_vm3, %v869_v35, %v871_v33  ;;  %1504 = vst [vmem:[#allocation4 + $0x10] sm:$0xff] %v7206_v2  ;;  %v803_v0 = vsel %vm8814_vm2, %v800_v62, %v802_v41 }
 0x272   : > { %887 = vrot.lane.b32.xlu1 %v872_v36, %s7208_s23  ;;  %1502 = vst [vmem:[#allocation4] sm:$0xff] %v7206_v2 }
 0x275   : > { %v7552_v37 = vld [vmem:[#allocation4 + $0x20] sm:$0xff]  ;;  %v732_v38 = vpop.permute.xlu1 %731 }
 0x276   : > { %v742_v39 = vsel %vm501_vm5, %v730_v20, %v732_v38  ;;  %v728_v40 = vpop.permute.xlu0 %727  ;;  %v806_v42 = vrot.slane %v7552_v37, 5  ;;  %1506 = vst [vmem:[#allocation4 + $0x20] sm:$0xff] %v7206_v2  ;;  %v857_v46 = vld [vmem:[#allocation4 + $0x28] sm:$0xff]  ;;  %v875_v57 = vrot.slane %v7552_v37, 2 }
 0x277   : > { %758 = vst.msk [vmem:[#allocation4 + $0x18] sm:$0xff] %vm755_vm1, %v742_v39  ;;  %v741_v43 = vsel %vm501_vm5, %v726_v22, %v728_v40  ;;  %v772_v44 = vld [vmem:[#allocation4 + $0x38] sm:$0x7]  ;;  %v877_v55 = vrot.slane %v857_v46, 2  ;;  %v808_v61 = vrot.slane %v857_v46, 5 }
 0x278   : > { %756 = vst.msk [vmem:[#allocation4 + $0x8] sm:$0xff] %vm755_vm1, %v741_v43  ;;  %v807_v45 = vsel %vm8814_vm2, %v802_v41, %v806_v42  ;;  %v859_v47 = vld [vmem:[#allocation4 + $0x38] sm:$0x7]  ;;  %v876_v60 = vsel %vm868_vm3, %v871_v33, %v875_v57  ;;  %v880_v6 = vsel %vm868_vm3, %v875_v57, %v879_v52  ;;  %v811_v10 = vsel %vm8814_vm2, %v806_v42, %v810_v9  ;;  %v1069_v20 = vld [vmem:[%s8806_s6 + $0x18] sm:$0x7] }
 0x279   : > { %782 = vst.msk [vmem:[#allocation5 + $0x38] sm:$0x7] %vm781_vm4, %v772_v44  ;;  %v790_v48 = vld [vmem:[#allocation4 + $0x38] sm:$0x7]  ;;  %v881_v56 = vrot.slane %v859_v47, 2 }
 0x27a   : > { %822 = vrot.lane.b32.xlu1 %v807_v45, %s7207_s22  ;;  %1509 = vst.msk [vmem:[#allocation4 + $0x38] sm:$0x7] %vm715_vm13, %v7206_v2  ;;  %vm919_vm13 = vcmask 973830  }
 0x27b   : > { %779 = vst.msk [vmem:[#allocation5 + $0x28] sm:$0xff] %vm774_vm14, %v857_v46  ;;  %v882_v58 = vsel %vm868_vm3, %v877_v55, %v881_v56 }
 0x27c   : > { %1507 = vst.msk [vmem:[#allocation4 + $0x28] sm:$0xff] %vm708_vm12, %v7206_v2 }
 0x27e   : > { %v855_v49 = vld [vmem:[#allocation4 + $0x18] sm:$0xff] }
 0x27f   : > { %v853_v50 = vld [vmem:[#allocation4 + $0x8] sm:$0xff]  ;;  %v873_v51 = vrot.slane %v855_v49, 2  ;;  %777 = vst.msk [vmem:[#allocation5 + $0x18] sm:$0xff] %vm774_vm14, %v855_v49  ;;  %v804_v3 = vrot.slane %v855_v49, 5 }
 0x280   : > { %v870_v53 = vrot.slane %v853_v50, 2  ;;  %1505 = vst.msk [vmem:[#allocation4 + $0x18] sm:$0xff] %vm708_vm12, %v7206_v2  ;;  %v801_v1 = vrot.slane %v853_v50, 5 }
 0x281   : > { %775 = vst.msk [vmem:[#allocation5 + $0x8] sm:$0xff] %vm774_vm14, %v853_v50  ;;  %v878_v59 = vsel %vm868_vm3, %v873_v51, %v877_v55  ;;  %v809_v7 = vsel %vm8814_vm2, %v804_v3, %v808_v61 }
 0x282   : > { %899 = vrot.lane.b32.xlu1 %v879_v52, %s7208_s23  ;;  %885 = vrot.lane.b32.xlu0 %v870_v53, %s7208_s23  ;;  %v874_v54 = vsel %vm868_vm3, %v870_v53, %v873_v51  ;;  %1503 = vst.msk [vmem:[#allocation4 + $0x8] sm:$0xff] %vm708_vm12, %v7206_v2  ;;  %v812_v2 = vrot.slane %v790_v48, 5  ;;  %v805_v5 = vsel %vm8814_vm2, %v801_v1, %v804_v3  ;;  %vm8815_vm12 = vcmask 966656  }
 0x283   : > { %889 = vrot.lane.b32.xlu2 %v874_v54, %s7208_s23 }
 0x284   : > { %v813_v63 = vsel %vm8814_vm2, %v808_v61, %v812_v2  ;;  %vm969_vm2 = vcmask 1040384  }
 0x288   : > { %v935_v3 = vld [vmem:[#allocation5 + $0x8] sm:$0xff] }
 0x28a   : > { %897 = vrot.lane.b32.xlu1 %v882_v58, %s7208_s23  ;;  %893 = vrot.lane.b32.xlu0 %v878_v59, %s7208_s23 }
 0x28b   : > { %891 = vrot.lane.b32.xlu2 %v876_v60, %s7208_s23 }
 0x292   : > { %828 = vrot.lane.b32.xlu1 %v813_v63, %s7207_s22  ;;  %818 = vrot.lane.b32.xlu0 %v803_v0, %s7207_s22  ;;  %v939_v0 = vld [vmem:[#allocation5 + $0x28] sm:$0xff] }
 0x293   : > { %901 = vrot.lane.b32.xlu2 %v881_v56, %s7208_s23 }
 0x29a   : > { %820 = vrot.lane.b32.xlu1 %v805_v5, %s7207_s22  ;;  %895 = vrot.lane.b32.xlu0 %v880_v6, %s7208_s23  ;;  %v7669_v5 = vld [vmem:[#allocation11] sm:$0xff]  ;;  %v7671_v6 = vld [vmem:[#allocation11 + $0x8] sm:$0xff] }
 0x29b   : > { %824 = vrot.lane.b32.xlu2 %v809_v7, %s7207_s22 }
 0x2a2   : > { %1040 = vperm.xlu1 %6931, %v1034_v8   ;;  %826 = vrot.lane.b32.xlu0 %v811_v10, %s7207_s22 }
 0x2a3   : > { %814 = vrot.lane.b32.xlu2 %v800_v62, %s7207_s22 }
 0x2aa   : > { %1077 = vperm.xlu1 %6931, %v1067_v11   ;;  %816 = vrot.lane.b32.xlu0 %v801_v1, %s7207_s22  ;;  %v937_v1 = vld [vmem:[#allocation5 + $0x18] sm:$0xff] }
 0x2ab   : > { %1072 = vperm.xlu2 %6929, %v7612_v12  }
 0x2b2   : > { %1055 = vperm.xlu1 %6931, %v1037_v13   ;;  %1045 = vperm.xlu0 %6930, %v7622_v14  }
 0x2b3   : > { %1050 = vperm.xlu2 %6929, %v7627_v15  }
 0x2ba   : > { %1082 = vperm.xlu0 %6930, %v7634_v16  }
 0x2bb   : > { %1087 = vperm.xlu2 %6929, %v1069_v20   ;;  %v1111_v20 = vlaneseq }
 0x2cb   : > { %v884_v22 = vpop.permute.xlu2 %883 }
 0x2dd   : > { %v890_v23 = vpop.permute.xlu2 %889 }
 0x2de   : > { %922 = vst.msk [vmem:[#allocation5 + $0x78] sm:$0xff] %vm774_vm14, %v890_v23 }
 0x2e4   : > { %v888_v24 = vpop.permute.xlu1 %887 }
 0x2e5   : > { %v892_v26 = vpop.permute.xlu2 %891  ;;  %v949_v46 = vld [vmem:[#allocation5 + $0x78] sm:$0xff]  ;;  %v904_v53 = vsel %vm544_vm9, %v888_v24, %v890_v23 }
 0x2ec   : > { %v7641_v28 = vpop.permute.xlu1 %822 }
 0x2ed   : > { %v902_v30 = vpop.permute.xlu2 %901 }
 0x2ee   : > { %929 = vst.msk [vmem:[#allocation5 + $0xa8] sm:$0x1] %vm8815_vm12, %v902_v30  ;;  %vm8816_vm12 = vcmask 971776  }
 0x2f4   : > { %v900_v31 = vpop.permute.xlu1 %899  ;;  %v886_v33 = vpop.permute.xlu0 %885 }
 0x2f5   : > { %v907_v34 = vsel %vm544_vm9, %v900_v31, %v902_v30  ;;  %v903_v35 = vsel %vm544_vm9, %v884_v22, %v886_v33  ;;  %920 = vst.msk [vmem:[#allocation5 + $0x68] sm:$0xc0] %vm919_vm13, %v886_v33  ;;  %v825_v36 = vpop.permute.xlu2 %824  ;;  %v955_v38 = vld [vmem:[#allocation5 + $0xa8] sm:$0x1] }
 0x2f6   : > { %927 = vst [vmem:[#allocation5 + $0xa0] sm:$0x1] %v907_v34  ;;  %5005 = vmatpush.msk.msrb.mxu1 %vm969_vm2, %v955_v38  ;;  %6810 = vmatpush.msk.msra.mxu3 %vm969_vm2, %v955_v38  ;;  %v832_v61 = vsel %vm528_vm10, %v7641_v28, %v825_v36 }
 0x2f7   : > { %918 = vst [vmem:[#allocation5 + $0x60] sm:$0xc0] %v903_v35 }
 0x2f8   : > { %848 = vst.msk [vmem:[#allocation5 + $0x58] sm:$0xff] %vm774_vm14, %v825_v36 }
 0x2fc   : > { %v898_v39 = vpop.permute.xlu1 %897  ;;  %v894_v40 = vpop.permute.xlu0 %893 }
 0x2fd   : > { %926 = vst.msk [vmem:[#allocation5 + $0x98] sm:$0xff] %vm774_vm14, %v898_v39  ;;  %v954_v41 = vld [vmem:[#allocation5 + $0xa0] sm:$0x1]  ;;  %v905_v52 = vsel %vm544_vm9, %v892_v26, %v894_v40  ;;  %v815_v57 = vpop.permute.xlu2 %814 }
 0x2fe   : > { %924 = vst.msk [vmem:[#allocation5 + $0x88] sm:$0xff] %vm774_vm14, %v894_v40  ;;  %5000 = vmatpush.msk.msrb.mxu0 %vm969_vm2, %v954_v41  ;;  %6799 = vmatpush.msk.msra.mxu2 %vm969_vm2, %v954_v41 }
 0x2ff   : > { %v945_v51 = vld [vmem:[#allocation5 + $0x58] sm:$0xff] }
 0x304   : > { %v829_v42 = vpop.permute.xlu1 %828  ;;  %v819_v43 = vpop.permute.xlu0 %818  ;;  %v953_v44 = vld [vmem:[#allocation5 + $0x98] sm:$0xff] }
 0x305   : > { %851 = vst.msk [vmem:[#allocation5 + $0x68] sm:$0x3f] %vm8816_vm12, %v829_v42  ;;  %1011 = vmatpush.msrb.mxu1 %v953_v44  ;;  %6811 = vmatpush.msra.mxu3 %v953_v44  ;;  %v951_v45 = vld [vmem:[#allocation5 + $0x88] sm:$0xff]  ;;  %vm8817_vm12 = vcmask 973827   ;;  %v1073_v10 = vpop.permute.xlu2 %1072 }
 0x307   : > { %1012 = vmatpush.msrb.mxu1 %v951_v45  ;;  %6812 = vmatpush.msra.mxu3 %v951_v45 }
 0x309   : > { %1013 = vmatpush.msrb.mxu1 %v949_v46  ;;  %6813 = vmatpush.msra.mxu3 %v949_v46 }
 0x30c   : > { %v821_v47 = vpop.permute.xlu1 %820  ;;  %v896_v48 = vpop.permute.xlu0 %895  ;;  %v947_v49 = vld [vmem:[#allocation5 + $0x68] sm:$0xff] }
 0x30d   : > { %846 = vst.msk [vmem:[#allocation5 + $0x48] sm:$0xff] %vm774_vm14, %v821_v47  ;;  %v906_v50 = vsel %vm544_vm9, %v896_v48, %v898_v39  ;;  %1014 = vmatpush.msrb.mxu1 %v947_v49  ;;  %6814 = vmatpush.msra.mxu3 %v947_v49  ;;  %v831_v2 = vsel %vm528_vm10, %v819_v43, %v821_v47  ;;  %v1051_v44 = vpop.permute.xlu2 %1050 }
 0x30e   : > { %982 = vmatpush.msrb.mxu0 %v906_v50  ;;  %6800 = vmatpush.msra.mxu2 %v906_v50 }
 0x30f   : > { %1015 = vmatpush.msrb.mxu1 %v945_v51  ;;  %6815 = vmatpush.msra.mxu3 %v945_v51 }
 0x310   : > { %983 = vmatpush.msrb.mxu0 %v905_v52  ;;  %6801 = vmatpush.msra.mxu2 %v905_v52 }
 0x312   : > { %984 = vmatpush.msrb.mxu0 %v904_v53  ;;  %6802 = vmatpush.msra.mxu2 %v904_v53 }
 0x314   : > { %v827_v54 = vpop.permute.xlu0 %826  ;;  %v943_v55 = vld [vmem:[#allocation5 + $0x48] sm:$0xff] }
 0x315   : > { %v833_v56 = vsel %vm528_vm10, %v827_v54, %v829_v42  ;;  %1016 = vmatpush.msrb.mxu1 %v943_v55  ;;  %6816 = vmatpush.msra.mxu3 %v943_v55 }
 0x316   : > { %849 = vst [vmem:[#allocation5 + $0x60] sm:$0x3f] %v833_v56 }
 0x31c   : > { %v817_v58 = vpop.permute.xlu0 %816 }
 0x31d   : > { %v830_v59 = vsel %vm528_vm10, %v815_v57, %v817_v58  ;;  %844 = vst.msk [vmem:[#allocation5 + $0x38] sm:$0xf8] %vm8817_vm12, %v817_v58  ;;  %v946_v60 = vld [vmem:[#allocation5 + $0x60] sm:$0xff]  ;;  %vm8818_vm12 = vcmask 662528  }
 0x31e   : > { %842 = vst [vmem:[#allocation5 + $0x30] sm:$0xf8] %v830_v59  ;;  %985 = vmatpush.msrb.mxu0 %v946_v60  ;;  %6803 = vmatpush.msra.mxu2 %v946_v60 }
 0x320   : > { %986 = vmatpush.msrb.mxu0 %v832_v61  ;;  %6804 = vmatpush.msra.mxu2 %v832_v61 }
 0x322   : > { %987 = vmatpush.msrb.mxu0 %v831_v2  ;;  %6805 = vmatpush.msra.mxu2 %v831_v2  ;;  %v1088_v2 = vpop.permute.xlu2 %1087 }
 0x324   : > { %v941_v62 = vld [vmem:[#allocation5 + $0x38] sm:$0xff]  ;;  %v1046_v24 = vpop.permute.xlu0 %1045 }
 0x325   : > { %1017 = vmatpush.msrb.mxu1 %v941_v62  ;;  %6817 = vmatpush.msra.mxu3 %v941_v62  ;;  %v940_v63 = vld [vmem:[#allocation5 + $0x30] sm:$0xff] }
 0x326   : > { %988 = vmatpush.msrb.mxu0 %v940_v63  ;;  %6806 = vmatpush.msra.mxu2 %v940_v63 }
 0x327   : > { %1018 = vmatpush.msrb.mxu1 %v939_v0  ;;  %6818 = vmatpush.msra.mxu3 %v939_v0 }
 0x328   : > { %989 = vmatpush.msrb.mxu0 %v7552_v37  ;;  %6807 = vmatpush.msra.mxu2 %v7552_v37  ;;  %v1041_v37 = vpop.permute.xlu1 %1040 }
 0x329   : > { %1019 = vmatpush.msrb.mxu1 %v937_v1  ;;  %6819 = vmatpush.msra.mxu3 %v937_v1 }
 0x32a   : > { %990 = vmatpush.msrb.mxu0 %v7536_v27  ;;  %6808 = vmatpush.msra.mxu2 %v7536_v27  ;;  %v7683_v27 = vld [vmem:[#allocation11 + $0x10] sm:$0xff] }
 0x32b   : > { %1020 = vmatpush.msrb.mxu1 %v935_v3  ;;  %6820 = vmatpush.msra.mxu3 %v935_v3 }
 0x32c   : > { %991 = vmatpush.msrb.mxu0 %v7538_v29  ;;  %6809 = vmatpush.msra.mxu2 %v7538_v29  ;;  %v933_v29 = vld [vmem:[#allocation11 + $0x18] sm:$0x7]  ;;  %v1083_v49 = vpop.permute.xlu0 %1082 }
 0x32d   : > { %5006 = vmatmul.msk.f32.vlgmr.msrb.gmra.mxu1 %vm8818_vm12, %v7669_v5  ;;  %5007 = vmatmul.msk.f32.vlgmr.msra.gmra.mxu3 %vm8818_vm12, %v7671_v6 }
 0x32e   : > { %5001 = vmatmul.msk.f32.vlgmr.msrb.gmra.mxu0 %vm8818_vm12, %v7669_v5  ;;  %5002 = vmatmul.msk.f32.vlgmr.msra.gmra.mxu2 %vm8818_vm12, %v7671_v6 }
 0x330   : > { %v1078_v35 = vpop.permute.xlu1 %1077 }
 0x335   : > { %5008 = vmatmul.msk.f32.gmra.mxu3 %vm8818_vm12, %v7683_v27 }
 0x336   : > { %5003 = vmatmul.msk.f32.gmra.mxu2 %vm8818_vm12, %v7683_v27 }
 0x338   : > { %v1056_v57 = vpop.permute.xlu1 %1055 }
 0x33d   : > { %5009 = vmatmul.msk.f32.gmra.mxu3 %vm8818_vm12, %v933_v29 }
 0x33e   : > { %5004 = vmatmul.msk.f32.gmra.mxu2 %vm8818_vm12, %v933_v29  ;;  %vm7697_vm12 = vcmp.lt.s32.totalorder %v1111_v20, 247 }
 0x3aa   : > { %v1022_v7 = vpop.f32.mrf.mxu1 }
 0x3ab   : > { %v1059_v8 = vmul.f32 %v1041_v37, %v1022_v7  ;;  %v993_v9 = vpop.f32.mrf.mxu0 }
 0x3ac   : > { %v1058_v11 = vmul.f32 %v1041_v37, %v993_v9 }
 0x3ad   : > { %v1091_v13 = vadd.f32 %v1073_v10, %v1059_v8 }
 0x3ae   : > { %v1090_v22 = vadd.f32 %v1073_v10, %v1058_v11 }
 0x3af   : > { %v7691_v23 = vmax.f32 %v1091_v13, 0.0  ;;  %v1299_v13 = vld [vmem:[#allocation8 + $0x8] sm:$0xff] }
 0x3b0   : > { %v7693_v26 = vmax.f32 %v1090_v22, 0.0  ;;  %v1025_v28 = vpop.f32.mrf.mxu3  ;;  %1302 = vrot.lane.b32.xlu0 %v1299_v13, %s7205_s17 }
 0x3b1   : > { %v1108_v30 = vrot.slane %v7691_v23, 7  ;;  %1117 = vst [vmem:[#allocation1 + $0x9] sm:$0xff] %v7691_v23  ;;  %v1061_v33 = vmul.f32 %v1046_v24, %v1025_v28  ;;  %v996_v34 = vpop.f32.mrf.mxu2 }
 0x3b2   : > { %1116 = vst [vmem:[#allocation1] sm:$0xff] %v7693_v26  ;;  %v1060_v36 = vmul.f32 %v1046_v24, %v996_v34 }
 0x3b3   : > { %v1109_v38 = vsel %vm969_vm2, %v7693_v26, %v1108_v30  ;;  %v1093_v39 = vadd.f32 %v1078_v35, %v1061_v33 }
 0x3b4   : > { %1115 = vst.msk [vmem:[#allocation6] ss:$2 sm:$0x3] %vm7697_vm12, %v1109_v38  ;;  %v1092_v40 = vadd.f32 %v1078_v35, %v1060_v36 }
 0x3b5   : > { %v7706_v41 = vmax.f32 %v1093_v39, 0.0 }
 0x3b6   : > { %v7708_v42 = vmax.f32 %v1092_v40, 0.0 }
 0x3b7   : > { %v1167_v43 = vrot.slane %v7706_v41, 7 }
 0x3b8   : > { %v1028_v45 = vpop.f32.mrf.mxu3 }
 0x3b9   : > { %v1119_v46 = vld [vmem:[#allocation1 + $0x1] ss:$9 sm:$0xff]  ;;  %v1063_v47 = vmul.f32 %v1051_v44, %v1028_v45  ;;  %v999_v48 = vpop.f32.mrf.mxu2  ;;  %v1168_v50 = vsel %vm969_vm2, %v7708_v42, %v1167_v43 }
 0x3ba   : > { %1122 = vst.msk [vmem:[#allocation6 + $0x4] ss:$2 sm:$0x3] %vm7697_vm12, %v1119_v46  ;;  %v1062_v51 = vmul.f32 %v1051_v44, %v999_v48 }
 0x3bb   : > { %1123 = vst [vmem:[#allocation1] sm:$0xff] %v7693_v26  ;;  %v1095_v52 = vadd.f32 %v1083_v49, %v1063_v47 }
 0x3bc   : > { %1124 = vst [vmem:[#allocation1 + $0x9] sm:$0xff] %v7691_v23  ;;  %v1094_v53 = vadd.f32 %v1083_v49, %v1062_v51 }
 0x3bd   : > { %1171 = vst.msk [vmem:[#allocation6 + $0x20] ss:$2 sm:$0x3] %vm7697_vm12, %v1168_v50  ;;  %v7719_v54 = vmax.f32 %v1095_v52, 0.0 }
 0x3be   : > { %v7721_v55 = vmax.f32 %v1094_v53, 0.0  ;;  %v1433_v53 = vld [vmem:[%s8802_s2 + $0x18] sm:$0x7] }
 0x3bf   : > { %v1223_v56 = vrot.slane %v7719_v54, 7 }
 0x3c0   : > { %v1031_v58 = vpop.f32.mrf.mxu3 }
 0x3c1   : > { %v1224_v59 = vsel %vm969_vm2, %v7721_v55, %v1223_v56  ;;  %v1065_v60 = vmul.f32 %v1056_v57, %v1031_v58  ;;  %v1002_v61 = vpop.f32.mrf.mxu2 }
 0x3c2   : > { %1227 = vst.msk [vmem:[#allocation6 + $0x40] ss:$2 sm:$0x3] %vm7697_vm12, %v1224_v59  ;;  %v1064_v62 = vmul.f32 %v1056_v57, %v1002_v61  ;;  %v1348_v61 = vld [vmem:[%s8801_s1 + $0x10] sm:$0xff] }
 0x3c3   : > { %v1126_v63 = vld [vmem:[#allocation1 + $0x2] ss:$9 sm:$0xff]  ;;  %v1097_v0 = vadd.f32 %v1088_v2, %v1065_v60 }
 0x3c4   : > { %1130 = vst [vmem:[#allocation1] sm:$0xff] %v7693_v26  ;;  %v1096_v1 = vadd.f32 %v1088_v2, %v1064_v62  ;;  %v1347_v60 = vld [vmem:[%s8801_s1 + $0x8] sm:$0xff]  ;;  %v1349_v2 = vld [vmem:[%s8801_s1 + $0x18] sm:$0x7] }
 0x3c5   : > { %1131 = vst [vmem:[#allocation1 + $0x9] sm:$0xff] %v7691_v23  ;;  %v7730_v3 = vmax.f32 %v1097_v0, 0.0 }
 0x3c6   : > { %1129 = vst.msk [vmem:[#allocation6 + $0x8] ss:$2 sm:$0x3] %vm7697_vm12, %v1126_v63  ;;  %v7734_v29 = vmax.f32 %v1096_v1, 0.0 }
 0x3c7   : > { %v1279_v37 = vrot.slane %v7730_v3, 7 }
 0x3c9   : > { %v1280_v7 = vsel %vm969_vm2, %v7734_v29, %v1279_v37 }
 0x3ca   : > { %1283 = vst.msk [vmem:[#allocation6 + $0x60] ss:$2 sm:$0x3] %vm7697_vm12, %v1280_v7 }
 0x3cc   : > { %v1133_v8 = vld [vmem:[#allocation1 + $0x3] ss:$9 sm:$0xff] }
 0x3cd   : > { %1137 = vst [vmem:[#allocation1] sm:$0xff] %v7693_v26 }
 0x3ce   : > { %1138 = vst [vmem:[#allocation1 + $0x9] sm:$0xff] %v7691_v23 }
 0x3cf   : > { %1136 = vst.msk [vmem:[#allocation6 + $0xc] ss:$2 sm:$0x3] %vm7697_vm12, %v1133_v8 }
 0x3d5   : > { %v1140_v9 = vld [vmem:[#allocation1 + $0x4] ss:$9 sm:$0xff] }
 0x3d6   : > { %1144 = vst [vmem:[#allocation1] sm:$0xff] %v7693_v26 }
 0x3d7   : > { %1145 = vst [vmem:[#allocation1 + $0x9] sm:$0xff] %v7691_v23 }
 0x3d8   : > { %1143 = vst.msk [vmem:[#allocation6 + $0x10] ss:$2 sm:$0x3] %vm7697_vm12, %v1140_v9 }
 0x3de   : > { %v1147_v10 = vld [vmem:[#allocation1 + $0x5] ss:$9 sm:$0xff] }
 0x3df   : > { %1151 = vst [vmem:[#allocation1] sm:$0xff] %v7693_v26 }
 0x3e0   : > { %1152 = vst [vmem:[#allocation1 + $0x9] sm:$0xff] %v7691_v23 }
 0x3e1   : > { %1150 = vst.msk [vmem:[#allocation6 + $0x14] ss:$2 sm:$0x3] %vm7697_vm12, %v1147_v10 }
 0x3e7   : > { %v1154_v11 = vld [vmem:[#allocation1 + $0x6] ss:$9 sm:$0xff] }
 0x3e8   : > { %1158 = vst [vmem:[#allocation1] sm:$0xff] %v7693_v26 }
 0x3e9   : > { %1159 = vst [vmem:[#allocation1 + $0x9] sm:$0xff] %v7691_v23 }
 0x3ea   : > { %1157 = vst.msk [vmem:[#allocation6 + $0x18] ss:$2 sm:$0x3] %vm7697_vm12, %v1154_v11 }
 0x3f0   : > { %v1161_v20 = vld [vmem:[#allocation1 + $0x7] ss:$9 sm:$0xff] }
 0x3f1   : > { %1164 = vst.msk [vmem:[#allocation6 + $0x1c] ss:$2 sm:$0x3] %vm7697_vm12, %v1161_v20 }
 0x3f2   : > { %1173 = vst [vmem:[#allocation1 + $0x9] sm:$0xff] %v7706_v41 }
 0x3f3   : > { %1172 = vst [vmem:[#allocation1] sm:$0xff] %v7708_v42 }
 0x3fa   : > { %v1175_v22 = vld [vmem:[#allocation1 + $0x1] ss:$9 sm:$0xff] }
 0x3fb   : > { %1178 = vst.msk [vmem:[#allocation6 + $0x24] ss:$2 sm:$0x3] %vm7697_vm12, %v1175_v22 }
 0x3fc   : > { %1179 = vst [vmem:[#allocation1] sm:$0xff] %v7708_v42 }
 0x3fd   : > { %1180 = vst [vmem:[#allocation1 + $0x9] sm:$0xff] %v7706_v41 }
 0x404   : > { %v1182_v23 = vld [vmem:[#allocation1 + $0x2] ss:$9 sm:$0xff] }
 0x405   : > { %1186 = vst [vmem:[#allocation1] sm:$0xff] %v7708_v42 }
 0x406   : > { %1187 = vst [vmem:[#allocation1 + $0x9] sm:$0xff] %v7706_v41 }
 0x407   : > { %1185 = vst.msk [vmem:[#allocation6 + $0x28] ss:$2 sm:$0x3] %vm7697_vm12, %v1182_v23 }
 0x40d   : > { %v1189_v24 = vld [vmem:[#allocation1 + $0x3] ss:$9 sm:$0xff] }
 0x40e   : > { %1193 = vst [vmem:[#allocation1] sm:$0xff] %v7708_v42 }
 0x40f   : > { %1194 = vst [vmem:[#allocation1 + $0x9] sm:$0xff] %v7706_v41 }
 0x410   : > { %1192 = vst.msk [vmem:[#allocation6 + $0x2c] ss:$2 sm:$0x3] %vm7697_vm12, %v1189_v24 }
 0x416   : > { %v1196_v26 = vld [vmem:[#allocation1 + $0x4] ss:$9 sm:$0xff] }
 0x417   : > { %1200 = vst [vmem:[#allocation1] sm:$0xff] %v7708_v42 }
 0x418   : > { %1201 = vst [vmem:[#allocation1 + $0x9] sm:$0xff] %v7706_v41 }
 0x419   : > { %1199 = vst.msk [vmem:[#allocation6 + $0x30] ss:$2 sm:$0x3] %vm7697_vm12, %v1196_v26 }
 0x41f   : > { %v1203_v28 = vld [vmem:[#allocation1 + $0x5] ss:$9 sm:$0xff] }
 0x420   : > { %1207 = vst [vmem:[#allocation1] sm:$0xff] %v7708_v42 }
 0x421   : > { %1208 = vst [vmem:[#allocation1 + $0x9] sm:$0xff] %v7706_v41 }
 0x422   : > { %1206 = vst.msk [vmem:[#allocation6 + $0x34] ss:$2 sm:$0x3] %vm7697_vm12, %v1203_v28  ;;  %v1303_v39 = vpop.permute.xlu0 %1302 }
 0x423   : > { %v1304_v40 = vrot.slane %v1303_v39, 4 }
 0x428   : > { %v1210_v30 = vld [vmem:[#allocation1 + $0x6] ss:$9 sm:$0xff] }
 0x429   : > { %1214 = vst [vmem:[#allocation1] sm:$0xff] %v7708_v42 }
 0x42a   : > { %1215 = vst [vmem:[#allocation1 + $0x9] sm:$0xff] %v7706_v41  ;;  %v1305_v41 = vsel %vm501_vm5, %v1304_v40, %v1303_v39 }
 0x42b   : > { %1213 = vst.msk [vmem:[#allocation6 + $0x38] ss:$2 sm:$0x3] %vm7697_vm12, %v1210_v30 }
 0x42c   : > { %1307 = vst.msk [vmem:[#allocation2] sm:$0xff] %vm7429_vm6, %v1305_v41  ;;  %vm8838_vm6 = vcmask 976896  }
 0x431   : > { %v1217_v33 = vld [vmem:[#allocation1 + $0x7] ss:$9 sm:$0xff] }
 0x432   : > { %1220 = vst.msk [vmem:[#allocation6 + $0x3c] ss:$2 sm:$0x3] %vm7697_vm12, %v1217_v33 }
 0x433   : > { %1229 = vst [vmem:[#allocation1 + $0x9] sm:$0xff] %v7719_v54  ;;  %v1308_v45 = vld [vmem:[#allocation2] sm:$0xff] }
 0x434   : > { %1228 = vst [vmem:[#allocation1] sm:$0xff] %v7721_v55 }
 0x43b   : > { %v1231_v34 = vld [vmem:[#allocation1 + $0x1] ss:$9 sm:$0xff] }
 0x43c   : > { %1234 = vst.msk [vmem:[#allocation6 + $0x44] ss:$2 sm:$0x3] %vm7697_vm12, %v1231_v34 }
 0x43d   : > { %1235 = vst [vmem:[#allocation1] sm:$0xff] %v7721_v55 }
 0x43e   : > { %1236 = vst [vmem:[#allocation1 + $0x9] sm:$0xff] %v7719_v54 }
 0x445   : > { %v1238_v35 = vld [vmem:[#allocation1 + $0x2] ss:$9 sm:$0xff] }
 0x446   : > { %1242 = vst [vmem:[#allocation1] sm:$0xff] %v7721_v55 }
 0x447   : > { %1243 = vst [vmem:[#allocation1 + $0x9] sm:$0xff] %v7719_v54 }
 0x448   : > { %1241 = vst.msk [vmem:[#allocation6 + $0x48] ss:$2 sm:$0x3] %vm7697_vm12, %v1238_v35 }
 0x44e   : > { %v1245_v36 = vld [vmem:[#allocation1 + $0x3] ss:$9 sm:$0xff] }
 0x44f   : > { %1249 = vst [vmem:[#allocation1] sm:$0xff] %v7721_v55 }
 0x450   : > { %1250 = vst [vmem:[#allocation1 + $0x9] sm:$0xff] %v7719_v54 }
 0x451   : > { %1248 = vst.msk [vmem:[#allocation6 + $0x4c] ss:$2 sm:$0x3] %vm7697_vm12, %v1245_v36 }
 0x457   : > { %v1252_v38 = vld [vmem:[#allocation1 + $0x4] ss:$9 sm:$0xff] }
 0x458   : > { %1256 = vst [vmem:[#allocation1] sm:$0xff] %v7721_v55 }
 0x459   : > { %1257 = vst [vmem:[#allocation1 + $0x9] sm:$0xff] %v7719_v54 }
 0x45a   : > { %1255 = vst.msk [vmem:[#allocation6 + $0x50] ss:$2 sm:$0x3] %vm7697_vm12, %v1252_v38 }
 0x460   : > { %v1259_v42 = vld [vmem:[#allocation1 + $0x5] ss:$9 sm:$0xff] }
 0x461   : > { %1263 = vst [vmem:[#allocation1] sm:$0xff] %v7721_v55 }
 0x462   : > { %1264 = vst [vmem:[#allocation1 + $0x9] sm:$0xff] %v7719_v54 }
 0x463   : > { %1262 = vst.msk [vmem:[#allocation6 + $0x54] ss:$2 sm:$0x3] %vm7697_vm12, %v1259_v42 }
 0x469   : > { %v1266_v43 = vld [vmem:[#allocation1 + $0x6] ss:$9 sm:$0xff] }
 0x46a   : > { %1269 = vst.msk [vmem:[#allocation6 + $0x58] ss:$2 sm:$0x3] %vm7697_vm12, %v1266_v43 }
 0x46b   : > { %1270 = vst [vmem:[#allocation1] sm:$0xff] %v7721_v55 }
 0x46c   : > { %1271 = vst [vmem:[#allocation1 + $0x9] sm:$0xff] %v7719_v54  ;;  %v1465_v54 = vld [vmem:[%s8803_s3 + $0x18] sm:$0x7] }
 0x473   : > { %v1273_v44 = vld [vmem:[#allocation1 + $0x7] ss:$9 sm:$0xff] }
 0x474   : > { %1276 = vst.msk [vmem:[#allocation6 + $0x5c] ss:$2 sm:$0x3] %vm7697_vm12, %v1273_v44 }
 0x475   : > { %1285 = vst [vmem:[#allocation1 + $0x9] sm:$0xff] %v7730_v3 }
 0x476   : > { %1284 = vst [vmem:[#allocation1] sm:$0xff] %v7734_v29 }
 0x47d   : > { %v1287_v4 = vld [vmem:[#allocation1 + $0x1] ss:$9 sm:$0xff] }
 0x47e   : > { %1290 = vst.msk [vmem:[#allocation6 + $0x64] ss:$2 sm:$0x3] %vm7697_vm12, %v1287_v4 }
 0x47f   : > { %1291 = vst [vmem:[#allocation1] sm:$0xff] %v7734_v29 }
 0x480   : > { %1292 = vst [vmem:[#allocation1 + $0x9] sm:$0xff] %v7730_v3 }
 0x487   : > { %v1294_v46 = vld [vmem:[#allocation1 + $0x2] ss:$9 sm:$0xff] }
 0x488   : > { %1310 = vst [vmem:[#allocation1] ss:$2 sm:$0xff] %v1308_v45 }
 0x489   : > { %1297 = vst.msk [vmem:[#allocation6 + $0x68] ss:$2 sm:$0x3] %vm7697_vm12, %v1294_v46 }
 0x48f   : > { %v1311_v47 = vld.sshfl [vmem:[#allocation1] sm:$0xff pattern:$0x75316420]  ;;  %v1312_v48 = vld.sshfl [vmem:[#allocation1 + $0x8] sm:$0xff pattern:$0x75316420] }
 0x490   : > { %1320 = vst [vmem:[#allocation1 + $0x1] ss:$2 sm:$0xff] %v1308_v45 }
 0x491   : > { %1315 = vst [vmem:[#allocation3] sm:$0xf] %v1311_v47 }
 0x492   : > { %1316 = vst.msk [vmem:[#allocation3 + $0x8] sm:$0xf] %vm516_vm7, %v1312_v48 }
 0x497   : > { %v1321_v49 = vld.sshfl [vmem:[#allocation1] sm:$0xff pattern:$0x75316420]  ;;  %v1322_v50 = vld.sshfl [vmem:[#allocation1 + $0x8] sm:$0xff pattern:$0x75316420] }
 0x498   : > { %1323 = vrot.lane.b32.xlu0 %v1321_v49, %s7207_s22  ;;  %1334 = vst [vmem:[#allocation1] ss:$2 sm:$0xff] %v1308_v45 }
 0x49f   : > { %v1336_v51 = vld.sshfl [vmem:[#allocation1 + $0x8] sm:$0xff pattern:$0x75316420]  ;;  %v1335_v52 = vld.sshfl [vmem:[#allocation1] sm:$0xff pattern:$0x75316420] }
 0x4a0   : > { %1446 = vperm.xlu0 %6930, %v7457_v18   ;;  %1339 = vrot.lane.b32.xlu2 %v1336_v51, %s7208_s23 }
 0x4a1   : > { %1337 = vrot.lane.b32.xlu1 %v1335_v52, %s7208_s23 }
 0x4a8   : > { %1478 = vperm.xlu0 %6930, %v7451_v17   ;;  %1451 = vperm.xlu2 %6929, %v1433_v53  }
 0x4a9   : > { %1325 = vrot.lane.b32.xlu1 %v1322_v50, %s7207_s22 }
 0x4b0   : > { %1468 = vperm.xlu0 %6930, %v7463_v19   ;;  %1441 = vperm.xlu2 %6929, %v7480_v25  }
 0x4b1   : > { %1483 = vperm.xlu1 %6931, %v1465_v54  }
 0x4b8   : > { %1473 = vperm.xlu2 %6929, %v7472_v21   ;;  %v1346_v21 = vld [vmem:[%s8801_s1] sm:$0xff] }
 0x4b9   : > { %1436 = vperm.xlu1 %6931, %v7492_v32  }
 0x4fa   : > { %v1340_v18 = vpop.permute.xlu2 %1339 }
 0x4fb   : > { %1345 = vst.msk [vmem:[#allocation3 + $0x18] sm:$0xf] %vm516_vm7, %v1340_v18 }
 0x502   : > { %v1353_v17 = vld [vmem:[#allocation3 + $0x18] sm:$0xf]  ;;  %v1452_v62 = vpop.permute.xlu2 %1451 }
 0x503   : > { %5015 = vmatpush.msk.msra.mxu1 %vm493_vm0, %v1353_v17 }
 0x50a   : > { %v1324_v57 = vpop.permute.xlu0 %1323  ;;  %v1442_v0 = vpop.permute.xlu2 %1441 }
 0x512   : > { %v1447_v3 = vpop.permute.xlu0 %1446  ;;  %v1474_v8 = vpop.permute.xlu2 %1473 }
 0x513   : > { %v1338_v55 = vpop.permute.xlu1 %1337 }
 0x514   : > { %v1341_v56 = vsel %vm544_vm9, %v1338_v55, %v1340_v18 }
 0x515   : > { %1344 = vst [vmem:[#allocation3 + $0x10] sm:$0xf] %v1341_v56 }
 0x51a   : > { %v1479_v22 = vpop.permute.xlu0 %1478 }
 0x51b   : > { %v1326_v58 = vpop.permute.xlu1 %1325 }
 0x51c   : > { %v1327_v19 = vsel %vm528_vm10, %v1324_v57, %v1326_v58  ;;  %1331 = vst.msk [vmem:[#allocation3 + $0x8] sm:$0xf0] %vm533_vm8, %v1326_v58  ;;  %v1352_v25 = vld [vmem:[#allocation3 + $0x10] sm:$0xf] }
 0x51d   : > { %1330 = vst [vmem:[#allocation3] sm:$0xf0] %v1327_v19  ;;  %5010 = vmatpush.msk.msra.mxu0 %vm493_vm0, %v1352_v25  ;;  %vm8837_vm0 = vcmask 1042440  }
 0x522   : > { %v1469_v48 = vpop.permute.xlu0 %1468 }
 0x523   : > { %v1351_v32 = vld [vmem:[#allocation3 + $0x8] sm:$0xff]  ;;  %v1484_v23 = vpop.permute.xlu1 %1483 }
 0x524   : > { %1416 = vmatpush.msra.mxu1 %v1351_v32  ;;  %v1350_v59 = vld [vmem:[#allocation3] sm:$0xff] }
 0x525   : > { %1387 = vmatpush.msra.mxu0 %v1350_v59  ;;  %5016 = vmatmul.msk.f32.vlgmr.msra.gmra.mxu1 %vm558_vm11, %v1346_v21 }
 0x526   : > { %5011 = vmatmul.msk.f32.vlgmr.msra.gmra.mxu0 %vm558_vm11, %v1346_v21 }
 0x52b   : > { %v1437_v42 = vpop.permute.xlu1 %1436 }
 0x52d   : > { %5017 = vmatmul.msk.f32.gmra.mxu1 %vm558_vm11, %v1347_v60 }
 0x52e   : > { %5012 = vmatmul.msk.f32.gmra.mxu0 %vm558_vm11, %v1347_v60 }
 0x535   : > { %5018 = vmatmul.msk.f32.gmra.mxu1 %vm558_vm11, %v1348_v61 }
 0x536   : > { %5013 = vmatmul.msk.f32.gmra.mxu0 %vm558_vm11, %v1348_v61 }
 0x53d   : > { %5019 = vmatmul.msk.f32.gmra.mxu1 %vm558_vm11, %v1349_v2 }
 0x53e   : > { %5014 = vmatmul.msk.f32.gmra.mxu0 %vm558_vm11, %v1349_v2 }
 0x5a2   : > { %v1418_v63 = vpop.f32.mrf.mxu1 }
 0x5a3   : > { %v1389_v1 = vpop.f32.mrf.mxu0  ;;  %v1455_v44 = vmul.f32 %v1437_v42, %v1418_v63 }
 0x5a4   : > { %v1454_v45 = vmul.f32 %v1437_v42, %v1389_v1 }
 0x5a5   : > { %v1487_v49 = vadd.f32 %v1469_v48, %v1455_v44 }
 0x5a6   : > { %v1486_v50 = vadd.f32 %v1469_v48, %v1454_v45 }
 0x5a7   : > { %v1495_v51 = vmax.f32 %v1487_v49, 0.0  ;;  %v1813_v49 = vld [vmem:[%s8805_s5] sm:$0xff] }
 0x5a8   : > { %v1494_v52 = vmax.f32 %v1486_v50, 0.0  ;;  %v1846_v50 = vld [vmem:[%s8806_s6 + $0x8] sm:$0xff] }
 0x5aa   : > { %v1421_v29 = vpop.f32.mrf.mxu1 }
 0x5ab   : > { %v1392_v37 = vpop.f32.mrf.mxu0  ;;  %v1457_v33 = vmul.f32 %v1442_v0, %v1421_v29 }
 0x5ac   : > { %v1456_v7 = vmul.f32 %v1442_v0, %v1392_v37 }
 0x5ad   : > { %v1489_v39 = vadd.f32 %v1474_v8, %v1457_v33 }
 0x5ae   : > { %v1488_v9 = vadd.f32 %v1474_v8, %v1456_v7 }
 0x5af   : > { %v1497_v46 = vmax.f32 %v1489_v39, 0.0 }
 0x5b0   : > { %v1496_v10 = vmax.f32 %v1488_v9, 0.0 }
 0x5b2   : > { %v1424_v11 = vpop.f32.mrf.mxu1  ;;  %1522 = vrot.lane.b32.xlu2 %v1496_v10, %s7205_s17 }
 0x5b3   : > { %v1459_v13 = vmul.f32 %v1447_v3, %v1424_v11  ;;  %v1395_v20 = vpop.f32.mrf.mxu0 }
 0x5b4   : > { %v1458_v24 = vmul.f32 %v1447_v3, %v1395_v20 }
 0x5b5   : > { %v1491_v26 = vadd.f32 %v1479_v22, %v1459_v13 }
 0x5b6   : > { %v1490_v28 = vadd.f32 %v1479_v22, %v1458_v24 }
 0x5b7   : > { %v1499_v30 = vmax.f32 %v1491_v26, 0.0 }
 0x5b8   : > { %v1498_v34 = vmax.f32 %v1490_v28, 0.0 }
 0x5b9   : > { %1528 = vrot.lane.b32.xlu1 %v1499_v30, %s7205_s17 }
 0x5ba   : > { %v1427_v35 = vpop.f32.mrf.mxu1  ;;  %1526 = vrot.lane.b32.xlu0 %v1498_v34, %s7205_s17 }
 0x5bb   : > { %v1461_v36 = vmul.f32 %v1452_v62, %v1427_v35  ;;  %v1398_v38 = vpop.f32.mrf.mxu0 }
 0x5bc   : > { %v1460_v40 = vmul.f32 %v1452_v62, %v1398_v38 }
 0x5bd   : > { %v1493_v41 = vadd.f32 %v1484_v23, %v1461_v36 }
 0x5be   : > { %v1492_v43 = vadd.f32 %v1484_v23, %v1460_v40 }
 0x5bf   : > { %v1501_v4 = vmax.f32 %v1493_v41, 0.0 }
 0x5c0   : > { %v1500_v47 = vmax.f32 %v1492_v43, 0.0 }
 0x5c1   : > { %1532 = vrot.lane.b32.xlu2 %v1501_v4, %s7205_s17 }
 0x5c2   : > { %1524 = vrot.lane.b32.xlu0 %v1497_v46, %s7205_s17  ;;  %1530 = vrot.lane.b32.xlu1 %v1500_v47, %s7205_s17 }
 0x5c9   : > { %1520 = vrot.lane.b32.xlu2 %v1495_v51, %s7205_s17  ;;  %v1848_v51 = vld [vmem:[%s8806_s6 + $0x18] sm:$0x7] }
 0x5ca   : > { %1518 = vrot.lane.b32.xlu1 %v1494_v52, %s7205_s17 }
 0x60c   : > { %v1523_v53 = vpop.permute.xlu2 %1522 }
 0x60d   : > { %1548 = vst.msk [vmem:[#allocation4 + $0x10] sm:$0xff] %vm753_vm15, %v1523_v53 }
 0x614   : > { %v7879_v54 = vld [vmem:[#allocation4 + $0x10] sm:$0xff] }
 0x615   : > { %v1654_v29 = vrot.slane %v7879_v54, 2  ;;  %v1588_v10 = vrot.slane %v7879_v54, 5 }
 0x61b   : > { %v1533_v56 = vpop.permute.xlu2 %1532 }
 0x623   : > { %v1521_v59 = vpop.permute.xlu2 %1520 }
 0x62b   : > { %v1529_v18 = vpop.permute.xlu1 %1528 }
 0x62c   : > { %v1527_v17 = vpop.permute.xlu0 %1526 }
 0x62d   : > { %v1536_v55 = vsel %vm501_vm5, %v1527_v17, %v1529_v18  ;;  %1550 = vst.msk [vmem:[#allocation4 + $0x20] sm:$0xff] %vm753_vm15, %v1527_v17 }
 0x62e   : > { %1551 = vst.msk [vmem:[#allocation4 + $0x28] sm:$0xff] %vm755_vm1, %v1536_v55 }
 0x634   : > { %v7884_v57 = vld [vmem:[#allocation4 + $0x20] sm:$0xff]  ;;  %v1525_v58 = vpop.permute.xlu0 %1524  ;;  %v1531_v19 = vpop.permute.xlu1 %1530 }
 0x635   : > { %v7886_v25 = vld [vmem:[#allocation4 + $0x28] sm:$0xff]  ;;  %v1535_v21 = vsel %vm501_vm5, %v1523_v53, %v1525_v58  ;;  %v1537_v32 = vsel %vm501_vm5, %v1531_v19, %v1533_v56  ;;  %1552 = vst.msk [vmem:[#allocation4 + $0x30] sm:$0x7] %vm8837_vm0, %v1531_v19  ;;  %v1592_v9 = vrot.slane %v7884_v57, 5  ;;  %v1658_v23 = vrot.slane %v7884_v57, 2 }
 0x636   : > { %1567 = vst.msk [vmem:[#allocation5 + $0x28] sm:$0xff] %vm774_vm14, %v7886_v25  ;;  %v1660_v11 = vrot.slane %v7886_v25, 2  ;;  %v1594_v44 = vrot.slane %v7886_v25, 5 }
 0x637   : > { %1549 = vst.msk [vmem:[#allocation4 + $0x18] sm:$0xff] %vm755_vm1, %v1535_v21  ;;  %v1659_v28 = vsel %vm868_vm3, %v1654_v29, %v1658_v23 }
 0x638   : > { %1553 = vst.msk [vmem:[#allocation4 + $0x38] sm:$0x7] %vm8838_vm6, %v1537_v32 }
 0x63c   : > { %v1519_v60 = vpop.permute.xlu1 %1518  ;;  %v1560_v63 = vld [vmem:[#allocation4 + $0x30] sm:$0x7] }
 0x63d   : > { %v1534_v61 = vsel %vm501_vm5, %v1519_v60, %v1521_v59  ;;  %1546 = vst.msk [vmem:[#allocation4] sm:$0xff] %vm753_vm15, %v1519_v60  ;;  %vm8839_vm5 = vcmask 1042432   ;;  %v1642_v24 = vld [vmem:[#allocation4 + $0x30] sm:$0x7] }
 0x63e   : > { %v1557_v2 = vld [vmem:[#allocation4 + $0x18] sm:$0xff]  ;;  %1547 = vst.msk [vmem:[#allocation4 + $0x8] sm:$0xff] %vm755_vm1, %v1534_v61  ;;  %v1593_v20 = vsel %vm8839_vm5, %v1588_v10, %v1592_v9  ;;  %v1662_v30 = vrot.slane %v1642_v24, 2  ;;  %vm8840_vm7 = vmmov %vm8839_vm5  ;;  %v1576_v40 = vld [vmem:[#allocation4 + $0x30] sm:$0x7] }
 0x63f   : > { %1565 = vst.msk [vmem:[#allocation5 + $0x18] sm:$0xff] %vm774_vm14, %v1557_v2  ;;  %v1561_v62 = vld [vmem:[#allocation4 + $0x38] sm:$0x7]  ;;  %v1656_v8 = vrot.slane %v1557_v2, 2  ;;  %v1590_v41 = vrot.slane %v1557_v2, 5  ;;  %v1596_v43 = vrot.slane %v1576_v40, 5  ;;  %vm8841_vm8 = vmmov %vm8839_vm5 }
 0x640   : > { %1569 = vst.msk [vmem:[#allocation5 + $0x38] sm:$0x7] %vm781_vm4, %v1561_v62  ;;  %v1643_v34 = vld [vmem:[#allocation4 + $0x38] sm:$0x7]  ;;  %v1663_v38 = vsel %vm868_vm3, %v1658_v23, %v1662_v30  ;;  %vm8842_vm11 = vmmov %vm8839_vm5  ;;  %vm8846_vm4 = vcmask 966656  }
 0x641   : > { %1568 = vst [vmem:[#allocation5 + $0x30] sm:$0x7] %v1560_v63  ;;  %v1661_v22 = vsel %vm868_vm3, %v1656_v8, %v1660_v11  ;;  %v1664_v35 = vrot.slane %v1643_v34, 2  ;;  %v1577_v39 = vld [vmem:[#allocation4 + $0x38] sm:$0x7]  ;;  %v1595_v4 = vsel %vm8841_vm8, %v1590_v41, %v1594_v44  ;;  %vm8843_vm15 = vmmov %vm8839_vm5  ;;  %v1720_v34 = vld [vmem:[#allocation5 + $0x28] sm:$0xff] }
 0x642   : > { %v1598_v42 = vrot.slane %v1577_v39, 5  ;;  %v1597_v46 = vsel %vm8843_vm15, %v1592_v9, %v1596_v43  ;;  %vm8844_vm1 = vmmov %vm8839_vm5 }
 0x643   : > { %v1665_v36 = vsel %vm868_vm3, %v1660_v11, %v1664_v35 }
 0x644   : > { %v7900_v0 = vld [vmem:[#allocation4] sm:$0xff]  ;;  %v1599_v45 = vsel %vm8842_vm11, %v1594_v44, %v1598_v42 }
 0x645   : > { %v1555_v1 = vld [vmem:[#allocation4 + $0x8] sm:$0xff]  ;;  %v1652_v3 = vrot.slane %v7900_v0, 2  ;;  %v1586_v26 = vrot.slane %v7900_v0, 5 }
 0x646   : > { %1563 = vst.msk [vmem:[#allocation5 + $0x8] sm:$0xff] %vm774_vm14, %v1555_v1  ;;  %v1653_v37 = vrot.slane %v1555_v1, 2  ;;  %v1587_v47 = vrot.slane %v1555_v1, 5 }
 0x647   : > { %1666 = vrot.lane.b32.xlu1 %v1652_v3, %s7208_s23  ;;  %v1655_v7 = vsel %vm868_vm3, %v1652_v3, %v1654_v29  ;;  %v1589_v33 = vsel %vm8840_vm7, %v1586_v26, %v1588_v10 }
 0x648   : > { %1670 = vrot.lane.b32.xlu0 %v1655_v7, %s7208_s23  ;;  %1668 = vrot.lane.b32.xlu2 %v1653_v37, %s7208_s23  ;;  %v1657_v13 = vsel %vm868_vm3, %v1653_v37, %v1656_v8  ;;  %v1591_v48 = vsel %vm8844_vm1, %v1587_v47, %v1590_v41  ;;  %vm8845_vm3 = vcmask 973827  }
 0x64f   : > { %1672 = vrot.lane.b32.xlu1 %v1657_v13, %s7208_s23 }
 0x650   : > { %1608 = vrot.lane.b32.xlu0 %v1593_v20, %s7207_s22  ;;  %1676 = vrot.lane.b32.xlu2 %v1661_v22, %s7208_s23 }
 0x657   : > { %1674 = vrot.lane.b32.xlu1 %v1659_v28, %s7208_s23 }
 0x658   : > { %1682 = vrot.lane.b32.xlu0 %v1662_v30, %s7208_s23  ;;  %1604 = vrot.lane.b32.xlu2 %v1589_v33, %s7207_s22 }
 0x65f   : > { %1684 = vrot.lane.b32.xlu1 %v1664_v35, %s7208_s23  ;;  %v1718_v35 = vld [vmem:[#allocation5 + $0x18] sm:$0xff] }
 0x660   : > { %1680 = vrot.lane.b32.xlu0 %v1665_v36, %s7208_s23  ;;  %1678 = vrot.lane.b32.xlu2 %v1663_v38, %s7208_s23  ;;  %v1716_v36 = vld [vmem:[#allocation5 + $0x8] sm:$0xff] }
 0x667   : > { %1610 = vrot.lane.b32.xlu1 %v1595_v4, %s7207_s22 }
 0x668   : > { %1614 = vrot.lane.b32.xlu0 %v1599_v45, %s7207_s22  ;;  %1612 = vrot.lane.b32.xlu2 %v1597_v46, %s7207_s22 }
 0x66f   : > { %1600 = vrot.lane.b32.xlu1 %v1586_v26, %s7207_s22 }
 0x670   : > { %1602 = vrot.lane.b32.xlu2 %v1587_v47, %s7207_s22  ;;  %1606 = vrot.lane.b32.xlu0 %v1591_v48, %s7207_s22 }
 0x677   : > { %1851 = vperm.xlu1 %6931, %v7612_v12   ;;  %v1816_v12 = vld [vmem:[%s8805_s5 + $0x18] sm:$0x7] }
 0x678   : > { %1824 = vperm.xlu2 %6929, %v7622_v14   ;;  %1819 = vperm.xlu0 %6930, %v1813_v49  }
 0x67f   : > { %1829 = vperm.xlu1 %6931, %v7627_v15  }
 0x680   : > { %1861 = vperm.xlu2 %6929, %v7634_v16   ;;  %1856 = vperm.xlu0 %6930, %v1846_v50  }
 0x687   : > { %1866 = vperm.xlu1 %6931, %v1848_v51  }
 0x688   : > { %1834 = vperm.xlu0 %6930, %v1816_v12  }
 0x6a2   : > { %v1669_v14 = vpop.permute.xlu2 %1668 }
 0x6a3   : > { %1702 = vst.msk [vmem:[#allocation5 + $0x68] sm:$0xc0] %vm919_vm13, %v1669_v14  ;;  %vm8847_vm13 = vcmask 971776  }
 0x6aa   : > { %v1677_v52 = vpop.permute.xlu2 %1676 }
 0x6ab   : > { %1706 = vst.msk [vmem:[#allocation5 + $0x88] sm:$0xff] %vm774_vm14, %v1677_v52 }
 0x6b2   : > { %v1605_v15 = vpop.permute.xlu2 %1604  ;;  %v1732_v9 = vld [vmem:[#allocation5 + $0x88] sm:$0xff] }
 0x6b9   : > { %v1667_v53 = vpop.permute.xlu1 %1666 }
 0x6ba   : > { %v1686_v16 = vsel %vm544_vm9, %v1667_v53, %v1669_v14  ;;  %v1671_v18 = vpop.permute.xlu0 %1670  ;;  %v1679_v17 = vpop.permute.xlu2 %1678 }
 0x6bb   : > { %1701 = vst [vmem:[#allocation5 + $0x60] sm:$0xc0] %v1686_v16 }
 0x6c1   : > { %v1673_v55 = vpop.permute.xlu1 %1672 }
 0x6c2   : > { %v1687_v56 = vsel %vm544_vm9, %v1671_v18, %v1673_v55  ;;  %1704 = vst.msk [vmem:[#allocation5 + $0x78] sm:$0xff] %vm774_vm14, %v1673_v55  ;;  %v1609_v58 = vpop.permute.xlu0 %1608  ;;  %v1613_v19 = vpop.permute.xlu2 %1612 }
 0x6c9   : > { %v1675_v25 = vpop.permute.xlu1 %1674  ;;  %v1730_v10 = vld [vmem:[#allocation5 + $0x78] sm:$0xff] }
 0x6ca   : > { %v1688_v21 = vsel %vm544_vm9, %v1675_v25, %v1677_v52  ;;  %v1683_v32 = vpop.permute.xlu0 %1682  ;;  %v1603_v59 = vpop.permute.xlu2 %1602 }
 0x6cb   : > { %1629 = vst.msk [vmem:[#allocation5 + $0x38] sm:$0xf8] %vm8845_vm3, %v1603_v59 }
 0x6d1   : > { %v1685_v60 = vpop.permute.xlu1 %1684 }
 0x6d2   : > { %v1690_v61 = vsel %vm544_vm9, %v1683_v32, %v1685_v60  ;;  %1710 = vst.msk [vmem:[#allocation5 + $0xa8] sm:$0x1] %vm8846_vm4, %v1685_v60  ;;  %v1681_v2 = vpop.permute.xlu0 %1680  ;;  %v1722_v33 = vld [vmem:[#allocation5 + $0x38] sm:$0xff] }
 0x6d3   : > { %1709 = vst [vmem:[#allocation5 + $0xa0] sm:$0x1] %v1690_v61  ;;  %v1689_v62 = vsel %vm544_vm9, %v1679_v17, %v1681_v2  ;;  %vm8848_vm9 = vcmask 662528  }
 0x6d4   : > { %1708 = vst.msk [vmem:[#allocation5 + $0x98] sm:$0xff] %vm774_vm14, %v1681_v2  ;;  %vm8851_vm0 = vmmov %vm8848_vm9 }
 0x6d5   : > { %vm8852_vm6 = vmmov %vm8851_vm0 }
 0x6d6   : > { %vm8853_vm5 = vmmov %vm8851_vm0 }
 0x6d7   : > { %vm8854_vm7 = vmmov %vm8851_vm0 }
 0x6d8   : > { %vm8855_vm8 = vmmov %vm8851_vm0 }
 0x6d9   : > { %v1611_v63 = vpop.permute.xlu1 %1610  ;;  %v1736_v1 = vld [vmem:[#allocation5 + $0xa8] sm:$0x1] }
 0x6da   : > { %v1618_v3 = vsel %vm528_vm10, %v1609_v58, %v1611_v63  ;;  %1633 = vst.msk [vmem:[#allocation5 + $0x58] sm:$0xff] %vm774_vm14, %v1611_v63  ;;  %v1615_v29 = vpop.permute.xlu0 %1614  ;;  %5025 = vmatpush.msk.msrb.mxu3 %vm969_vm2, %v1736_v1  ;;  %v1735_v37 = vld [vmem:[#allocation5 + $0xa0] sm:$0x1] }
 0x6db   : > { %v1619_v7 = vsel %vm528_vm10, %v1613_v19, %v1615_v29  ;;  %5020 = vmatpush.msk.msrb.mxu2 %vm969_vm2, %v1735_v37  ;;  %v1734_v8 = vld [vmem:[#allocation5 + $0x98] sm:$0xff]  ;;  %1635 = vst.msk [vmem:[#allocation5 + $0x68] sm:$0x3f] %vm8847_vm13, %v1615_v29 }
 0x6dc   : > { %1634 = vst [vmem:[#allocation5 + $0x60] sm:$0x3f] %v1619_v7  ;;  %1790 = vmatpush.msrb.mxu3 %v1734_v8 }
 0x6dd   : > { %1761 = vmatpush.msrb.mxu2 %v1689_v62 }
 0x6de   : > { %1791 = vmatpush.msrb.mxu3 %v1732_v9 }
 0x6df   : > { %1762 = vmatpush.msrb.mxu2 %v1688_v21 }
 0x6e0   : > { %1792 = vmatpush.msrb.mxu3 %v1730_v10 }
 0x6e1   : > { %1763 = vmatpush.msrb.mxu2 %v1687_v56  ;;  %v1601_v11 = vpop.permute.xlu1 %1600  ;;  %v1726_v26 = vld [vmem:[#allocation5 + $0x58] sm:$0xff] }
 0x6e2   : > { %v1616_v13 = vsel %vm528_vm10, %v1601_v11, %v1603_v59  ;;  %v1607_v20 = vpop.permute.xlu0 %1606  ;;  %v1728_v24 = vld [vmem:[#allocation5 + $0x68] sm:$0xff] }
 0x6e3   : > { %1628 = vst [vmem:[#allocation5 + $0x30] sm:$0xf8] %v1616_v13  ;;  %v1617_v22 = vsel %vm528_vm10, %v1605_v15, %v1607_v20  ;;  %v1727_v23 = vld [vmem:[#allocation5 + $0x60] sm:$0xff]  ;;  %1793 = vmatpush.msrb.mxu3 %v1728_v24  ;;  %vm8849_vm10 = vmmov %vm8848_vm9 }
 0x6e4   : > { %1764 = vmatpush.msrb.mxu2 %v1727_v23  ;;  %1631 = vst.msk [vmem:[#allocation5 + $0x48] sm:$0xff] %vm774_vm14, %v1607_v20  ;;  %vm8850_vm14 = vmmov %vm8848_vm9 }
 0x6e5   : > { %1794 = vmatpush.msrb.mxu3 %v1726_v26 }
 0x6e6   : > { %1765 = vmatpush.msrb.mxu2 %v1618_v3 }
 0x6e8   : > { %1766 = vmatpush.msrb.mxu2 %v1617_v22 }
 0x6e9   : > { %v1852_v38 = vpop.permute.xlu1 %1851 }
 0x6ea   : > { %v1721_v28 = vld [vmem:[#allocation5 + $0x30] sm:$0xff] }
 0x6eb   : > { %1767 = vmatpush.msrb.mxu2 %v1721_v28  ;;  %v1724_v30 = vld [vmem:[#allocation5 + $0x48] sm:$0xff] }
 0x6ec   : > { %1795 = vmatpush.msrb.mxu3 %v1724_v30 }
 0x6ed   : > { %1768 = vmatpush.msrb.mxu2 %v7884_v57  ;;  %v1820_v57 = vpop.permute.xlu0 %1819 }
 0x6ee   : > { %1796 = vmatpush.msrb.mxu3 %v1722_v33 }
 0x6ef   : > { %1769 = vmatpush.msrb.mxu2 %v7879_v54  ;;  %v1714_v54 = vld [vmem:[#allocation11 + $0x18] sm:$0x7] }
 0x6f0   : > { %1797 = vmatpush.msrb.mxu3 %v1720_v34 }
 0x6f1   : > { %1770 = vmatpush.msrb.mxu2 %v7900_v0  ;;  %v1830_v52 = vpop.permute.xlu1 %1829 }
 0x6f2   : > { %5021 = vmatmul.msk.f32.vlgmr.msrb.gmra.mxu2 %vm8848_vm9, %v7669_v5  ;;  %1798 = vmatpush.msrb.mxu3 %v1718_v35 }
 0x6f4   : > { %1799 = vmatpush.msrb.mxu3 %v1716_v36 }
 0x6f5   : > { %5026 = vmatmul.msk.f32.vlgmr.msrb.gmra.mxu3 %vm8849_vm10, %v7669_v5  ;;  %v1857_v49 = vpop.permute.xlu0 %1856 }
 0x6f9   : > { %v1867_v29 = vpop.permute.xlu1 %1866 }
 0x6fa   : > { %5022 = vmatmul.msk.f32.gmra.mxu2 %vm8850_vm14, %v7671_v6 }
 0x6fd   : > { %5027 = vmatmul.msk.f32.gmra.mxu3 %vm8851_vm0, %v7671_v6  ;;  %v1835_v2 = vpop.permute.xlu0 %1834 }
 0x702   : > { %5023 = vmatmul.msk.f32.gmra.mxu2 %vm8852_vm6, %v7683_v27 }
 0x705   : > { %5028 = vmatmul.msk.f32.gmra.mxu3 %vm8853_vm5, %v7683_v27  ;;  %v1825_v27 = vpop.permute.xlu2 %1824 }
 0x70a   : > { %5024 = vmatmul.msk.f32.gmra.mxu2 %vm8854_vm7, %v1714_v54 }
 0x70d   : > { %5029 = vmatmul.msk.f32.gmra.mxu3 %vm8855_vm8, %v1714_v54  ;;  %v1862_v58 = vpop.permute.xlu2 %1861 }
 0x775   : > { %v1772_v0 = vpop.f32.mrf.mxu2 }
 0x776   : > { %v1837_v5 = vmul.f32 %v1820_v57, %v1772_v0 }
 0x778   : > { %v1869_v39 = vadd.f32 %v1852_v38, %v1837_v5  ;;  %v1801_v40 = vpop.f32.mrf.mxu3 }
 0x779   : > { %v1838_v41 = vmul.f32 %v1820_v57, %v1801_v40 }
 0x77a   : > { %v7994_v42 = vmax.f32 %v1869_v39, 0.0 }
 0x77b   : > { %v1870_v6 = vadd.f32 %v1852_v38, %v1838_v41 }
 0x77c   : > { %1892 = vst [vmem:[#allocation1] sm:$0xff] %v7994_v42 }
 0x77d   : > { %v1775_v43 = vpop.f32.mrf.mxu2  ;;  %v7997_v44 = vmax.f32 %v1870_v6, 0.0 }
 0x77e   : > { %v1839_v45 = vmul.f32 %v1825_v27, %v1775_v43 }
 0x77f   : > { %v1887_v4 = vrot.slane %v7997_v44, 7  ;;  %1893 = vst [vmem:[#allocation1 + $0x9] sm:$0xff] %v7997_v44 }
 0x780   : > { %v1804_v46 = vpop.f32.mrf.mxu3  ;;  %v1871_v51 = vadd.f32 %v1857_v49, %v1839_v45 }
 0x781   : > { %v1888_v47 = vsel %vm969_vm2, %v7994_v42, %v1887_v4  ;;  %v1840_v48 = vmul.f32 %v1825_v27, %v1804_v46 }
 0x782   : > { %1891 = vst.msk [vmem:[#allocation6 + $0x1] ss:$2 sm:$0x3] %vm7697_vm12, %v1888_v47  ;;  %v8010_v16 = vmax.f32 %v1871_v51, 0.0 }
 0x783   : > { %v1872_v50 = vadd.f32 %v1857_v49, %v1840_v48 }
 0x785   : > { %v1778_v12 = vpop.f32.mrf.mxu2  ;;  %v8005_v14 = vmax.f32 %v1872_v50, 0.0 }
 0x786   : > { %v1895_v15 = vld [vmem:[#allocation1 + $0x1] ss:$9 sm:$0xff]  ;;  %v1841_v18 = vmul.f32 %v1830_v52, %v1778_v12 }
 0x787   : > { %1898 = vst.msk [vmem:[#allocation6 + $0x5] ss:$2 sm:$0x3] %vm7697_vm12, %v1895_v15  ;;  %v1943_v53 = vrot.slane %v8005_v14, 7 }
 0x788   : > { %1899 = vst [vmem:[#allocation1] sm:$0xff] %v7994_v42  ;;  %v1807_v17 = vpop.f32.mrf.mxu3  ;;  %v1873_v25 = vadd.f32 %v1862_v58, %v1841_v18 }
 0x789   : > { %1900 = vst [vmem:[#allocation1 + $0x9] sm:$0xff] %v7997_v44  ;;  %v1944_v55 = vsel %vm969_vm2, %v8010_v16, %v1943_v53  ;;  %v1842_v56 = vmul.f32 %v1830_v52, %v1807_v17 }
 0x78a   : > { %1947 = vst.msk [vmem:[#allocation6 + $0x21] ss:$2 sm:$0x3] %vm7697_vm12, %v1944_v55  ;;  %v8021_v59 = vmax.f32 %v1873_v25, 0.0 }
 0x78b   : > { %v1874_v19 = vadd.f32 %v1862_v58, %v1842_v56 }
 0x78d   : > { %v8018_v21 = vmax.f32 %v1874_v19, 0.0  ;;  %v1781_v62 = vpop.f32.mrf.mxu2 }
 0x78e   : > { %v1843_v1 = vmul.f32 %v1835_v2, %v1781_v62 }
 0x78f   : > { %v1999_v32 = vrot.slane %v8018_v21, 7 }
 0x790   : > { %v1902_v60 = vld [vmem:[#allocation1 + $0x2] ss:$9 sm:$0xff]  ;;  %v1810_v63 = vpop.f32.mrf.mxu3  ;;  %v1875_v8 = vadd.f32 %v1867_v29, %v1843_v1 }
 0x791   : > { %1905 = vst.msk [vmem:[#allocation6 + $0x9] ss:$2 sm:$0x3] %vm7697_vm12, %v1902_v60  ;;  %v2000_v61 = vsel %vm969_vm2, %v8021_v59, %v1999_v32  ;;  %v1844_v3 = vmul.f32 %v1835_v2, %v1810_v63 }
 0x792   : > { %1906 = vst [vmem:[#allocation1] sm:$0xff] %v7994_v42  ;;  %v8038_v11 = vmax.f32 %v1875_v8, 0.0 }
 0x793   : > { %1907 = vst [vmem:[#allocation1 + $0x9] sm:$0xff] %v7997_v44  ;;  %v1876_v7 = vadd.f32 %v1867_v29, %v1844_v3 }
 0x794   : > { %2003 = vst.msk [vmem:[#allocation6 + $0x41] ss:$2 sm:$0x3] %vm7697_vm12, %v2000_v61 }
 0x795   : > { %v8035_v9 = vmax.f32 %v1876_v7, 0.0 }
 0x797   : > { %v2055_v10 = vrot.slane %v8035_v9, 7 }
 0x799   : > { %v2056_v13 = vsel %vm969_vm2, %v8038_v11, %v2055_v10 }
 0x79a   : > { %v1909_v37 = vld [vmem:[#allocation1 + $0x3] ss:$9 sm:$0xff]  ;;  %2059 = vst.msk [vmem:[#allocation6 + $0x61] ss:$2 sm:$0x3] %vm7697_vm12, %v2056_v13 }
 0x79b   : > { %1912 = vst.msk [vmem:[#allocation6 + $0xd] ss:$2 sm:$0x3] %vm7697_vm12, %v1909_v37 }
 0x79c   : > { %1913 = vst [vmem:[#allocation1] sm:$0xff] %v7994_v42 }
 0x79d   : > { %1914 = vst [vmem:[#allocation1 + $0x9] sm:$0xff] %v7997_v44 }
 0x7a4   : > { %v1916_v20 = vld [vmem:[#allocation1 + $0x4] ss:$9 sm:$0xff] }
 0x7a5   : > { %1919 = vst.msk [vmem:[#allocation6 + $0x11] ss:$2 sm:$0x3] %vm7697_vm12, %v1916_v20 }
 0x7a6   : > { %1920 = vst [vmem:[#allocation1] sm:$0xff] %v7994_v42 }
 0x7a7   : > { %1921 = vst [vmem:[#allocation1 + $0x9] sm:$0xff] %v7997_v44 }
 0x7ae   : > { %v1923_v22 = vld [vmem:[#allocation1 + $0x5] ss:$9 sm:$0xff] }
 0x7af   : > { %1926 = vst.msk [vmem:[#allocation6 + $0x15] ss:$2 sm:$0x3] %vm7697_vm12, %v1923_v22 }
 0x7b0   : > { %1927 = vst [vmem:[#allocation1] sm:$0xff] %v7994_v42 }
 0x7b1   : > { %1928 = vst [vmem:[#allocation1 + $0x9] sm:$0xff] %v7997_v44 }
 0x7b8   : > { %v1930_v23 = vld [vmem:[#allocation1 + $0x6] ss:$9 sm:$0xff] }
 0x7b9   : > { %1933 = vst.msk [vmem:[#allocation6 + $0x19] ss:$2 sm:$0x3] %vm7697_vm12, %v1930_v23 }
 0x7ba   : > { %1934 = vst [vmem:[#allocation1] sm:$0xff] %v7994_v42 }
 0x7bb   : > { %1935 = vst [vmem:[#allocation1 + $0x9] sm:$0xff] %v7997_v44 }
 0x7c2   : > { %v1937_v24 = vld [vmem:[#allocation1 + $0x7] ss:$9 sm:$0xff] }
 0x7c3   : > { %1940 = vst.msk [vmem:[#allocation6 + $0x1d] ss:$2 sm:$0x3] %vm7697_vm12, %v1937_v24 }
 0x7c4   : > { %1949 = vst [vmem:[#allocation1 + $0x9] sm:$0xff] %v8005_v14 }
 0x7c5   : > { %1948 = vst [vmem:[#allocation1] sm:$0xff] %v8010_v16 }
 0x7cc   : > { %v1951_v26 = vld [vmem:[#allocation1 + $0x1] ss:$9 sm:$0xff] }
 0x7cd   : > { %1954 = vst.msk [vmem:[#allocation6 + $0x25] ss:$2 sm:$0x3] %vm7697_vm12, %v1951_v26 }
 0x7ce   : > { %1955 = vst [vmem:[#allocation1] sm:$0xff] %v8010_v16 }
 0x7cf   : > { %1956 = vst [vmem:[#allocation1 + $0x9] sm:$0xff] %v8005_v14 }
 0x7d6   : > { %v1958_v28 = vld [vmem:[#allocation1 + $0x2] ss:$9 sm:$0xff] }
 0x7d7   : > { %1961 = vst.msk [vmem:[#allocation6 + $0x29] ss:$2 sm:$0x3] %vm7697_vm12, %v1958_v28 }
 0x7d8   : > { %1962 = vst [vmem:[#allocation1] sm:$0xff] %v8010_v16 }
 0x7d9   : > { %1963 = vst [vmem:[#allocation1 + $0x9] sm:$0xff] %v8005_v14 }
 0x7e0   : > { %v1965_v30 = vld [vmem:[#allocation1 + $0x3] ss:$9 sm:$0xff] }
 0x7e1   : > { %1968 = vst.msk [vmem:[#allocation6 + $0x2d] ss:$2 sm:$0x3] %vm7697_vm12, %v1965_v30 }
 0x7e2   : > { %1969 = vst [vmem:[#allocation1] sm:$0xff] %v8010_v16 }
 0x7e3   : > { %1970 = vst [vmem:[#allocation1 + $0x9] sm:$0xff] %v8005_v14 }
 0x7ea   : > { %v1972_v33 = vld [vmem:[#allocation1 + $0x4] ss:$9 sm:$0xff] }
 0x7eb   : > { %1975 = vst.msk [vmem:[#allocation6 + $0x31] ss:$2 sm:$0x3] %vm7697_vm12, %v1972_v33 }
 0x7ec   : > { %1976 = vst [vmem:[#allocation1] sm:$0xff] %v8010_v16 }
 0x7ed   : > { %1977 = vst [vmem:[#allocation1 + $0x9] sm:$0xff] %v8005_v14 }
 0x7f4   : > { %v1979_v34 = vld [vmem:[#allocation1 + $0x5] ss:$9 sm:$0xff] }
 0x7f5   : > { %1982 = vst.msk [vmem:[#allocation6 + $0x35] ss:$2 sm:$0x3] %vm7697_vm12, %v1979_v34 }
 0x7f6   : > { %1983 = vst [vmem:[#allocation1] sm:$0xff] %v8010_v16 }
 0x7f7   : > { %1984 = vst [vmem:[#allocation1 + $0x9] sm:$0xff] %v8005_v14 }
 0x7fe   : > { %v1986_v35 = vld [vmem:[#allocation1 + $0x6] ss:$9 sm:$0xff] }
 0x7ff   : > { %1989 = vst.msk [vmem:[#allocation6 + $0x39] ss:$2 sm:$0x3] %vm7697_vm12, %v1986_v35 }
 0x800   : > { %1990 = vst [vmem:[#allocation1] sm:$0xff] %v8010_v16 }
 0x801   : > { %1991 = vst [vmem:[#allocation1 + $0x9] sm:$0xff] %v8005_v14 }
 0x808   : > { %v1993_v36 = vld [vmem:[#allocation1 + $0x7] ss:$9 sm:$0xff] }
 0x809   : > { %1996 = vst.msk [vmem:[#allocation6 + $0x3d] ss:$2 sm:$0x3] %vm7697_vm12, %v1993_v36 }
 0x80a   : > { %2005 = vst [vmem:[#allocation1 + $0x9] sm:$0xff] %v8018_v21 }
 0x80b   : > { %2004 = vst [vmem:[#allocation1] sm:$0xff] %v8021_v59 }
 0x812   : > { %v2007_v54 = vld [vmem:[#allocation1 + $0x1] ss:$9 sm:$0xff] }
 0x813   : > { %2010 = vst.msk [vmem:[#allocation6 + $0x45] ss:$2 sm:$0x3] %vm7697_vm12, %v2007_v54 }
 0x814   : > { %2011 = vst [vmem:[#allocation1] sm:$0xff] %v8021_v59 }
 0x815   : > { %2012 = vst [vmem:[#allocation1 + $0x9] sm:$0xff] %v8018_v21 }
 0x81c   : > { %v2014_v57 = vld [vmem:[#allocation1 + $0x2] ss:$9 sm:$0xff] }
 0x81d   : > { %2017 = vst.msk [vmem:[#allocation6 + $0x49] ss:$2 sm:$0x3] %vm7697_vm12, %v2014_v57 }
 0x81e   : > { %2018 = vst [vmem:[#allocation1] sm:$0xff] %v8021_v59 }
 0x81f   : > { %2019 = vst [vmem:[#allocation1 + $0x9] sm:$0xff] %v8018_v21 }
 0x826   : > { %v2021_v0 = vld [vmem:[#allocation1 + $0x3] ss:$9 sm:$0xff] }
 0x827   : > { %2024 = vst.msk [vmem:[#allocation6 + $0x4d] ss:$2 sm:$0x3] %vm7697_vm12, %v2021_v0 }
 0x828   : > { %2025 = vst [vmem:[#allocation1] sm:$0xff] %v8021_v59 }
 0x829   : > { %2026 = vst [vmem:[#allocation1 + $0x9] sm:$0xff] %v8018_v21 }
 0x830   : > { %v2028_v5 = vld [vmem:[#allocation1 + $0x4] ss:$9 sm:$0xff] }
 0x831   : > { %2031 = vst.msk [vmem:[#allocation6 + $0x51] ss:$2 sm:$0x3] %vm7697_vm12, %v2028_v5 }
 0x832   : > { %2032 = vst [vmem:[#allocation1] sm:$0xff] %v8021_v59 }
 0x833   : > { %2033 = vst [vmem:[#allocation1 + $0x9] sm:$0xff] %v8018_v21 }
 0x83a   : > { %v2035_v38 = vld [vmem:[#allocation1 + $0x5] ss:$9 sm:$0xff] }
 0x83b   : > { %2038 = vst.msk [vmem:[#allocation6 + $0x55] ss:$2 sm:$0x3] %vm7697_vm12, %v2035_v38 }
 0x83c   : > { %2039 = vst [vmem:[#allocation1] sm:$0xff] %v8021_v59 }
 0x83d   : > { %2040 = vst [vmem:[#allocation1 + $0x9] sm:$0xff] %v8018_v21 }
 0x844   : > { %v2042_v39 = vld [vmem:[#allocation1 + $0x6] ss:$9 sm:$0xff] }
 0x845   : > { %2045 = vst.msk [vmem:[#allocation6 + $0x59] ss:$2 sm:$0x3] %vm7697_vm12, %v2042_v39 }
 0x846   : > { %2046 = vst [vmem:[#allocation1] sm:$0xff] %v8021_v59 }
 0x847   : > { %2047 = vst [vmem:[#allocation1 + $0x9] sm:$0xff] %v8018_v21 }
 0x84e   : > { %v2049_v40 = vld [vmem:[#allocation1 + $0x7] ss:$9 sm:$0xff] }
 0x84f   : > { %2052 = vst.msk [vmem:[#allocation6 + $0x5d] ss:$2 sm:$0x3] %vm7697_vm12, %v2049_v40 }
 0x850   : > { %2061 = vst [vmem:[#allocation1 + $0x9] sm:$0xff] %v8035_v9 }
 0x851   : > { %2060 = vst [vmem:[#allocation1] sm:$0xff] %v8038_v11 }
 0x858   : > { %v2063_v41 = vld [vmem:[#allocation1 + $0x1] ss:$9 sm:$0xff] }
 0x859   : > { %2066 = vst.msk [vmem:[#allocation6 + $0x65] ss:$2 sm:$0x3] %vm7697_vm12, %v2063_v41 }
 0x85a   : > { %2067 = vst [vmem:[#allocation1] sm:$0xff] %v8038_v11 }
 0x85b   : > { %2068 = vst [vmem:[#allocation1 + $0x9] sm:$0xff] %v8035_v9 }
 0x862   : > { %v2070_v42 = vld [vmem:[#allocation1 + $0x2] ss:$9 sm:$0xff] }
 0x863   : > { %2073 = vst.msk [vmem:[#allocation6 + $0x69] ss:$2 sm:$0x3] %vm7697_vm12, %v2070_v42 }
 0x864 PF: > { %v5145_v6 = vld [vmem:[%s7385_s16 + $0xe0] sm:$0xf]  ;;  %v6476_v43 = vld [vmem:[%s7385_s16 + $0xec] sm:$0xf0]  ;;  %s2074_s24 = smul.u32 1152, %s7290_s21  ;;  %vm4320_vm2 = vcmask 1041408  }
 0x865   : > { %v5273_v44 = vld [vmem:[%s7385_s16 + $0x1e0] sm:$0xf]  ;;  %v5146_v27 = vor.u32 %v6476_v43, %v5145_v6  ;;  %v6508_v4 = vld [vmem:[%s7385_s16 + $0x1ec] sm:$0xf0]  ;;  %vm4322_vm12 = vcmask 1045508   ;;  %vm4324_vm11 = vcmask 1043456  }
 0x866   : > { %v5401_v31 = vld [vmem:[%s7385_s16 + $0x2e0] sm:$0xf]  ;;  %v6540_v45 = vld [vmem:[%s7385_s16 + $0x2ec] sm:$0xf0]  ;;  %v5274_v46 = vor.u32 %v6508_v4, %v5273_v44  ;;  %s2075_s15 = sshra.s32 %s2074_s24, 7  ;;  %p6183_p1 = scmp.ne.s32.totalorder %s7290_s21, 5 }
 0x867   : > { %v5402_v47 = vor.u32 %v6540_v45, %v5401_v31  ;;  %v5529_v48 = vld [vmem:[%s7385_s16 + $0x3e0] sm:$0xf]  ;;  %v6572_v49 = vld [vmem:[%s7385_s16 + $0x3ec] sm:$0xf0]  ;;  %3845 = vmatpush.bf16.msra.mxu0 %v5146_v27  ;;  %s5030_s27 = sshll.u32 %s2075_s15, 1 }
 0x868   : > { %v5129_v50 = vld [vmem:[%s7385_s16 + $0xc0] sm:$0xf]  ;;  %v5530_v51 = vor.u32 %v6572_v49, %v5529_v48  ;;  %v6472_v12 = vld [vmem:[%s7385_s16 + $0xcc] sm:$0xf0]  ;;  %3858 = vmatpush.bf16.msra.mxu1 %v5274_v46  ;;  %s8217_s0 = scalar_lea.vmem [#allocation6], %s5030_s27 }
 0x869   : > { %v5257_v14 = vld [vmem:[%s7385_s16 + $0x1c0] sm:$0xf]  ;;  %v6504_v52 = vld [vmem:[%s7385_s16 + $0x1cc] sm:$0xf0]  ;;  %3871 = vmatpush.bf16.msra.mxu2 %v5402_v47  ;;  %v5130_v15 = vor.u32 %v6472_v12, %v5129_v50 }
 0x86a   : > { %v5258_v53 = vor.u32 %v6504_v52, %v5257_v14  ;;  %v5385_v16 = vld [vmem:[%s7385_s16 + $0x2c0] sm:$0xf]  ;;  %v6536_v18 = vld [vmem:[%s7385_s16 + $0x2cc] sm:$0xf0]  ;;  %3884 = vmatpush.bf16.msra.mxu3 %v5530_v51 }
 0x86b   : > { %v5513_v17 = vld [vmem:[%s7385_s16 + $0x3c0] sm:$0xf]  ;;  %v5386_v55 = vor.u32 %v6536_v18, %v5385_v16  ;;  %v6568_v56 = vld [vmem:[%s7385_s16 + $0x3cc] sm:$0xf0]  ;;  %3846 = vmatpush.bf16.msra.mxu0 %v5130_v15 }
 0x86c   : > { %v5113_v58 = vld [vmem:[%s7385_s16 + $0xa0] sm:$0xf]  ;;  %v6468_v19 = vld [vmem:[%s7385_s16 + $0xac] sm:$0xf0]  ;;  %v5514_v25 = vor.u32 %v6568_v56, %v5513_v17  ;;  %3859 = vmatpush.bf16.msra.mxu1 %v5258_v53 }
 0x86d   : > { %v5241_v21 = vld [vmem:[%s7385_s16 + $0x1a0] sm:$0xf]  ;;  %v6500_v32 = vld [vmem:[%s7385_s16 + $0x1ac] sm:$0xf0]  ;;  %v5114_v60 = vor.u32 %v6468_v19, %v5113_v58  ;;  %3872 = vmatpush.bf16.msra.mxu2 %v5386_v55 }
 0x86e   : > { %v5369_v59 = vld [vmem:[%s7385_s16 + $0x2a0] sm:$0xf]  ;;  %v6532_v61 = vld [vmem:[%s7385_s16 + $0x2ac] sm:$0xf0]  ;;  %v5242_v63 = vor.u32 %v6500_v32, %v5241_v21  ;;  %3885 = vmatpush.bf16.msra.mxu3 %v5514_v25 }
 0x86f   : > { %v5497_v2 = vld [vmem:[%s7385_s16 + $0x3a0] sm:$0xf]  ;;  %v6564_v62 = vld [vmem:[%s7385_s16 + $0x3ac] sm:$0xf0]  ;;  %v5370_v1 = vor.u32 %v6532_v61, %v5369_v59  ;;  %3847 = vmatpush.bf16.msra.mxu0 %v5114_v60 }
 0x870   : > { %v5097_v3 = vld [vmem:[%s7385_s16 + $0x80] sm:$0xf]  ;;  %v6464_v29 = vld [vmem:[%s7385_s16 + $0x8c] sm:$0xf0]  ;;  %v5498_v7 = vor.u32 %v6564_v62, %v5497_v2  ;;  %3860 = vmatpush.bf16.msra.mxu1 %v5242_v63 }
 0x871   : > { %v5225_v37 = vld [vmem:[%s7385_s16 + $0x180] sm:$0xf]  ;;  %v6496_v8 = vld [vmem:[%s7385_s16 + $0x18c] sm:$0xf0]  ;;  %v5098_v20 = vor.u32 %v6464_v29, %v5097_v3  ;;  %3873 = vmatpush.bf16.msra.mxu2 %v5370_v1 }
 0x872   : > { %v5353_v9 = vld [vmem:[%s7385_s16 + $0x280] sm:$0xf]  ;;  %v6528_v10 = vld [vmem:[%s7385_s16 + $0x28c] sm:$0xf0]  ;;  %v5226_v22 = vor.u32 %v6496_v8, %v5225_v37  ;;  %3886 = vmatpush.bf16.msra.mxu3 %v5498_v7 }
 0x873   : > { %v5481_v11 = vld [vmem:[%s7385_s16 + $0x380] sm:$0xf]  ;;  %v6560_v13 = vld [vmem:[%s7385_s16 + $0x38c] sm:$0xf0]  ;;  %v5354_v23 = vor.u32 %v6528_v10, %v5353_v9  ;;  %3848 = vmatpush.bf16.msra.mxu0 %v5098_v20 }
 0x874   : > { %v5081_v24 = vld [vmem:[%s7385_s16 + $0x60] sm:$0xf]  ;;  %v6460_v26 = vld [vmem:[%s7385_s16 + $0x6c] sm:$0xf0]  ;;  %v5482_v30 = vor.u32 %v6560_v13, %v5481_v11  ;;  %3861 = vmatpush.bf16.msra.mxu1 %v5226_v22 }
 0x875   : > { %v5209_v28 = vld [vmem:[%s7385_s16 + $0x160] sm:$0xf]  ;;  %v6492_v33 = vld [vmem:[%s7385_s16 + $0x16c] sm:$0xf0]  ;;  %v5082_v57 = vor.u32 %v6460_v26, %v5081_v24  ;;  %3874 = vmatpush.bf16.msra.mxu2 %v5354_v23 }
 0x876   : > { %v5337_v34 = vld [vmem:[%s7385_s16 + $0x260] sm:$0xf]  ;;  %v6524_v35 = vld [vmem:[%s7385_s16 + $0x26c] sm:$0xf0]  ;;  %v5210_v0 = vor.u32 %v6492_v33, %v5209_v28  ;;  %3887 = vmatpush.bf16.msra.mxu3 %v5482_v30 }
 0x877   : > { %v5465_v36 = vld [vmem:[%s7385_s16 + $0x360] sm:$0xf]  ;;  %v6556_v54 = vld [vmem:[%s7385_s16 + $0x36c] sm:$0xf0]  ;;  %v5338_v5 = vor.u32 %v6524_v35, %v5337_v34  ;;  %3849 = vmatpush.bf16.msra.mxu0 %v5082_v57 }
 0x878   : > { %v5065_v38 = vld [vmem:[%s7385_s16 + $0x40] sm:$0xf]  ;;  %v6456_v39 = vld [vmem:[%s7385_s16 + $0x4c] sm:$0xf0]  ;;  %v5466_v41 = vor.u32 %v6556_v54, %v5465_v36  ;;  %3862 = vmatpush.bf16.msra.mxu1 %v5210_v0 }
 0x879   : > { %v5193_v40 = vld [vmem:[%s7385_s16 + $0x140] sm:$0xf]  ;;  %v6488_v42 = vld [vmem:[%s7385_s16 + $0x14c] sm:$0xf0]  ;;  %v5066_v4 = vor.u32 %v6456_v39, %v5065_v38  ;;  %3875 = vmatpush.bf16.msra.mxu2 %v5338_v5 }
 0x87a   : > { %v5321_v6 = vld [vmem:[%s7385_s16 + $0x240] sm:$0xf]  ;;  %v6520_v43 = vld [vmem:[%s7385_s16 + $0x24c] sm:$0xf0]  ;;  %v5194_v31 = vor.u32 %v6488_v42, %v5193_v40  ;;  %3888 = vmatpush.bf16.msra.mxu3 %v5466_v41 }
 0x87b   : > { %v5449_v44 = vld [vmem:[%s7385_s16 + $0x340] sm:$0xf]  ;;  %v6552_v27 = vld [vmem:[%s7385_s16 + $0x34c] sm:$0xf0]  ;;  %v5322_v45 = vor.u32 %v6520_v43, %v5321_v6  ;;  %3850 = vmatpush.bf16.msra.mxu0 %v5066_v4 }
 0x87c   : > { %v5049_v46 = vld [vmem:[%s7385_s16 + $0x20] sm:$0xf]  ;;  %v6452_v47 = vld [vmem:[%s7385_s16 + $0x2c] sm:$0xf0]  ;;  %v5450_v49 = vor.u32 %v6552_v27, %v5449_v44  ;;  %3863 = vmatpush.bf16.msra.mxu1 %v5194_v31 }
 0x87d   : > { %v5177_v48 = vld [vmem:[%s7385_s16 + $0x120] sm:$0xf]  ;;  %v6484_v50 = vld [vmem:[%s7385_s16 + $0x12c] sm:$0xf0]  ;;  %v5050_v15 = vor.u32 %v6452_v47, %v5049_v46  ;;  %3876 = vmatpush.bf16.msra.mxu2 %v5322_v45 }
 0x87e   : > { %v5305_v51 = vld [vmem:[%s7385_s16 + $0x220] sm:$0xf]  ;;  %v6516_v12 = vld [vmem:[%s7385_s16 + $0x22c] sm:$0xf0]  ;;  %v5178_v18 = vor.u32 %v6484_v50, %v5177_v48  ;;  %3889 = vmatpush.bf16.msra.mxu3 %v5450_v49 }
 0x87f   : > { %v5433_v14 = vld [vmem:[%s7385_s16 + $0x320] sm:$0xf]  ;;  %v6548_v52 = vld [vmem:[%s7385_s16 + $0x32c] sm:$0xf0]  ;;  %v5306_v17 = vor.u32 %v6516_v12, %v5305_v51  ;;  %3851 = vmatpush.bf16.msra.mxu0 %v5050_v15 }
 0x880   : > { %v5033_v53 = vld [vmem:[%s7385_s16] sm:$0xf]  ;;  %v6448_v16 = vld [vmem:[%s7385_s16 + $0xc] sm:$0xf0]  ;;  %v5434_v19 = vor.u32 %v6548_v52, %v5433_v14  ;;  %3864 = vmatpush.bf16.msra.mxu1 %v5178_v18 }
 0x881   : > { %v5161_v55 = vld [vmem:[%s7385_s16 + $0x100] sm:$0xf]  ;;  %v6480_v56 = vld [vmem:[%s7385_s16 + $0x10c] sm:$0xf0]  ;;  %v5034_v2 = vor.u32 %v6448_v16, %v5033_v53  ;;  %3877 = vmatpush.bf16.msra.mxu2 %v5306_v17 }
 0x882   : > { %v5289_v58 = vld [vmem:[%s7385_s16 + $0x200] sm:$0xf]  ;;  %v6512_v25 = vld [vmem:[%s7385_s16 + $0x20c] sm:$0xf0]  ;;  %v5162_v3 = vor.u32 %v6480_v56, %v5161_v55  ;;  %3890 = vmatpush.bf16.msra.mxu3 %v5434_v19 }
 0x883   : > { %v5417_v21 = vld [vmem:[%s7385_s16 + $0x300] sm:$0xf]  ;;  %v6544_v32 = vld [vmem:[%s7385_s16 + $0x30c] sm:$0xf0]  ;;  %v5290_v29 = vor.u32 %v6512_v25, %v5289_v58  ;;  %3852 = vmatpush.bf16.msra.mxu0 %v5034_v2 }
 0x884   : > { %v5657_v59 = vld [vmem:[%s7385_s16 + $0x4e0] sm:$0xf]  ;;  %v6604_v60 = vld [vmem:[%s7385_s16 + $0x4ec] sm:$0xf0]  ;;  %v5418_v8 = vor.u32 %v6544_v32, %v5417_v21  ;;  %3865 = vmatpush.bf16.msra.mxu1 %v5162_v3 }
 0x885   : > { %v5785_v61 = vld [vmem:[%s7385_s16 + $0x5e0] sm:$0xf]  ;;  %v6636_v62 = vld [vmem:[%s7385_s16 + $0x5ec] sm:$0xf0]  ;;  %v5658_v9 = vor.u32 %v6604_v60, %v5657_v59  ;;  %3878 = vmatpush.bf16.msra.mxu2 %v5290_v29  ;;  %v2081_v29 = vld [vmem:[%s8217_s0 + $0x10] sm:$0x3] }
 0x886   : > { %v5913_v63 = vld [vmem:[%s7385_s16 + $0x6e0] sm:$0xf]  ;;  %v6668_v1 = vld [vmem:[%s7385_s16 + $0x6ec] sm:$0xf0]  ;;  %v5786_v10 = vor.u32 %v6636_v62, %v5785_v61  ;;  %3891 = vmatpush.bf16.msra.mxu3 %v5418_v8 }
 0x887   : > { %v6041_v37 = vld [vmem:[%s7385_s16 + $0x7e0] sm:$0xf]  ;;  %v6700_v7 = vld [vmem:[%s7385_s16 + $0x7ec] sm:$0xf0]  ;;  %v5914_v11 = vor.u32 %v6668_v1, %v5913_v63  ;;  %3897 = vmatpush.bf16.msrb.mxu0 %v5658_v9 }
 0x888   : > { %v5641_v13 = vld [vmem:[%s7385_s16 + $0x4c0] sm:$0xf]  ;;  %v6600_v20 = vld [vmem:[%s7385_s16 + $0x4cc] sm:$0xf0]  ;;  %v6042_v23 = vor.u32 %v6700_v7, %v6041_v37  ;;  %3910 = vmatpush.bf16.msrb.mxu1 %v5786_v10 }
 0x889   : > { %v5769_v22 = vld [vmem:[%s7385_s16 + $0x5c0] sm:$0xf]  ;;  %v6632_v24 = vld [vmem:[%s7385_s16 + $0x5cc] sm:$0xf0]  ;;  %v5642_v34 = vor.u32 %v6600_v20, %v5641_v13  ;;  %3923 = vmatpush.bf16.msrb.mxu2 %v5914_v11 }
 0x88a   : > { %v5897_v26 = vld [vmem:[%s7385_s16 + $0x6c0] sm:$0xf]  ;;  %v6664_v28 = vld [vmem:[%s7385_s16 + $0x6cc] sm:$0xf0]  ;;  %v5770_v36 = vor.u32 %v6632_v24, %v5769_v22  ;;  %3936 = vmatpush.bf16.msrb.mxu3 %v6042_v23 }
 0x88b   : > { %v6025_v30 = vld [vmem:[%s7385_s16 + $0x7c0] sm:$0xf]  ;;  %v6696_v33 = vld [vmem:[%s7385_s16 + $0x7cc] sm:$0xf0]  ;;  %v5898_v54 = vor.u32 %v6664_v28, %v5897_v26  ;;  %3898 = vmatpush.bf16.msrb.mxu0 %v5642_v34 }
 0x88c   : > { %v5625_v35 = vld [vmem:[%s7385_s16 + $0x4a0] sm:$0xf]  ;;  %v6596_v57 = vld [vmem:[%s7385_s16 + $0x4ac] sm:$0xf0]  ;;  %v6026_v5 = vor.u32 %v6696_v33, %v6025_v30  ;;  %3911 = vmatpush.bf16.msrb.mxu1 %v5770_v36 }
 0x88d   : > { %v5753_v0 = vld [vmem:[%s7385_s16 + $0x5a0] sm:$0xf]  ;;  %v6628_v38 = vld [vmem:[%s7385_s16 + $0x5ac] sm:$0xf0]  ;;  %v5626_v6 = vor.u32 %v6596_v57, %v5625_v35  ;;  %3924 = vmatpush.bf16.msrb.mxu2 %v5898_v54 }
 0x88e   : > { %v5881_v39 = vld [vmem:[%s7385_s16 + $0x6a0] sm:$0xf]  ;;  %v6660_v40 = vld [vmem:[%s7385_s16 + $0x6ac] sm:$0xf0]  ;;  %v5754_v27 = vor.u32 %v6628_v38, %v5753_v0  ;;  %3937 = vmatpush.bf16.msrb.mxu3 %v6026_v5  ;;  %v2080_v5 = vld [vmem:[%s8217_s0 + $0x8] sm:$0xff] }
 0x88f   : > { %v6009_v41 = vld [vmem:[%s7385_s16 + $0x7a0] sm:$0xf]  ;;  %v6692_v42 = vld [vmem:[%s7385_s16 + $0x7ac] sm:$0xf0]  ;;  %v5882_v4 = vor.u32 %v6660_v40, %v5881_v39  ;;  %3899 = vmatpush.bf16.msrb.mxu0 %v5626_v6  ;;  %2087 = vst [vmem:[#allocation1 + $0x20] ss:$4 sm:$0xff] %v2080_v5 }
 0x890   : > { %v5609_v43 = vld [vmem:[%s7385_s16 + $0x480] sm:$0xf]  ;;  %v6592_v44 = vld [vmem:[%s7385_s16 + $0x48c] sm:$0xf0]  ;;  %v6010_v46 = vor.u32 %v6692_v42, %v6009_v41  ;;  %3912 = vmatpush.bf16.msrb.mxu1 %v5754_v27 }
 0x891   : > { %v5737_v31 = vld [vmem:[%s7385_s16 + $0x580] sm:$0xf]  ;;  %v6624_v45 = vld [vmem:[%s7385_s16 + $0x58c] sm:$0xf0]  ;;  %v5610_v12 = vor.u32 %v6592_v44, %v5609_v43  ;;  %3925 = vmatpush.bf16.msrb.mxu2 %v5882_v4 }
 0x892   : > { %v5865_v47 = vld [vmem:[%s7385_s16 + $0x680] sm:$0xf]  ;;  %v6656_v48 = vld [vmem:[%s7385_s16 + $0x68c] sm:$0xf0]  ;;  %v5738_v52 = vor.u32 %v6624_v45, %v5737_v31  ;;  %3938 = vmatpush.bf16.msrb.mxu3 %v6010_v46 }
 0x893   : > { %v2079_v49 = vld [vmem:[%s8217_s0] sm:$0xff]  ;;  %v6688_v51 = vld [vmem:[%s7385_s16 + $0x78c] sm:$0xf0]  ;;  %v5866_v15 = vor.u32 %v6656_v48, %v5865_v47  ;;  %3900 = vmatpush.bf16.msrb.mxu0 %v5610_v12  ;;  %v6474_v48 = vld [vmem:[%s7385_s16 + $0xe4] sm:$0xf] }
 0x894   : > { %v5993_v50 = vld [vmem:[%s7385_s16 + $0x780] sm:$0xf]  ;;  %2085 = vst [vmem:[#allocation1] ss:$4 sm:$0xff] %v2079_v49  ;;  %v6588_v53 = vld [vmem:[%s7385_s16 + $0x46c] sm:$0xf0]  ;;  %3913 = vmatpush.bf16.msrb.mxu1 %v5738_v52 }
 0x895   : > { %v5593_v14 = vld [vmem:[%s7385_s16 + $0x460] sm:$0xf]  ;;  %v6620_v18 = vld [vmem:[%s7385_s16 + $0x56c] sm:$0xf0]  ;;  %v5994_v17 = vor.u32 %v6688_v51, %v5993_v50  ;;  %3926 = vmatpush.bf16.msrb.mxu2 %v5866_v15  ;;  %v5147_v50 = vld [vmem:[%s7385_s16 + $0xf0] sm:$0xf0] }
 0x896   : > { %v5721_v16 = vld [vmem:[%s7385_s16 + $0x560] sm:$0xf]  ;;  %v6652_v56 = vld [vmem:[%s7385_s16 + $0x66c] sm:$0xf0]  ;;  %v5594_v32 = vor.u32 %v6588_v53, %v5593_v14  ;;  %v6506_v51 = vld [vmem:[%s7385_s16 + $0x1e4] sm:$0xf] }
 0x897   : > { %v5849_v55 = vld [vmem:[%s7385_s16 + $0x660] sm:$0xf]  ;;  %v6684_v19 = vld [vmem:[%s7385_s16 + $0x76c] sm:$0xf0]  ;;  %v5722_v62 = vor.u32 %v6620_v18, %v5721_v16  ;;  %3939 = vmatpush.bf16.msrb.mxu3 %v5994_v17  ;;  %v5275_v12 = vld [vmem:[%s7385_s16 + $0x1f0] sm:$0xf0] }
 0x898   : > { %v5977_v58 = vld [vmem:[%s7385_s16 + $0x760] sm:$0xf]  ;;  %v6584_v21 = vld [vmem:[%s7385_s16 + $0x44c] sm:$0xf0]  ;;  %v5850_v63 = vor.u32 %v6652_v56, %v5849_v55  ;;  %3901 = vmatpush.bf16.msrb.mxu0 %v5594_v32  ;;  %v6538_v15 = vld [vmem:[%s7385_s16 + $0x2e4] sm:$0xf] }
 0x899   : > { %v5577_v25 = vld [vmem:[%s7385_s16 + $0x440] sm:$0xf]  ;;  %v6616_v60 = vld [vmem:[%s7385_s16 + $0x54c] sm:$0xf0]  ;;  %v5978_v37 = vor.u32 %v6684_v19, %v5977_v58  ;;  %3914 = vmatpush.bf16.msrb.mxu1 %v5722_v62  ;;  %v5403_v53 = vld [vmem:[%s7385_s16 + $0x2f0] sm:$0xf0]  ;;  %v5150_v58 = vor.u32 %v6474_v48, %v5147_v50  ;;  %v5278_v19 = vor.u32 %v6506_v51, %v5275_v12 }
 0x89a   : > { %v5705_v59 = vld [vmem:[%s7385_s16 + $0x540] sm:$0xf]  ;;  %v6648_v2 = vld [vmem:[%s7385_s16 + $0x64c] sm:$0xf0]  ;;  %v5578_v20 = vor.u32 %v6584_v21, %v5577_v25  ;;  %3927 = vmatpush.bf16.msrb.mxu2 %v5850_v63  ;;  %v6470_v56 = vld [vmem:[%s7385_s16 + $0xc4] sm:$0xf]  ;;  %v5406_v32 = vor.u32 %v6538_v15, %v5403_v53 }
 0x89b   : > { %v5833_v61 = vld [vmem:[%s7385_s16 + $0x640] sm:$0xf]  ;;  %v6680_v3 = vld [vmem:[%s7385_s16 + $0x74c] sm:$0xf0]  ;;  %v5706_v24 = vor.u32 %v6616_v60, %v5705_v59  ;;  %3940 = vmatpush.bf16.msrb.mxu3 %v5978_v37  ;;  %v5131_v25 = vld [vmem:[%s7385_s16 + $0xd0] sm:$0xf0] }
 0x89c   : > { %v5961_v1 = vld [vmem:[%s7385_s16 + $0x740] sm:$0xf]  ;;  %v2090_v7 = vld.sshfl [vmem:[#allocation1 + $0x10] sm:$0xff pattern:$0x73625140]  ;;  %v5834_v26 = vor.u32 %v6648_v2, %v5833_v61  ;;  %3902 = vmatpush.bf16.msrb.mxu0 %v5578_v20  ;;  %v5134_v37 = vor.u32 %v6470_v56, %v5131_v25 }
 0x89d   : > { %v2088_v8 = vld.sshfl [vmem:[#allocation1] sm:$0xff pattern:$0x73625140]  ;;  %v8239_v9 = vpack.c.bf16 %v2090_v7, %v2090_v7  ;;  %v2091_v11 = vld.sshfl [vmem:[#allocation1 + $0x18] sm:$0xff pattern:$0x73625140]  ;;  %v5962_v34 = vor.u32 %v6680_v3, %v5961_v1  ;;  %3915 = vmatpush.bf16.msrb.mxu1 %v5706_v24 }
 0x89e   : > { %v8241_v10 = vpack.c.bf16 %v2088_v8, %v2088_v8  ;;  %v2089_v13 = vld.sshfl [vmem:[#allocation1 + $0x8] sm:$0xff pattern:$0x73625140]  ;;  %v8243_v22 = vpack.c.bf16 %v2091_v11, %v2091_v11  ;;  %v5561_v28 = vld [vmem:[%s7385_s16 + $0x420] sm:$0xf]  ;;  %3928 = vmatpush.bf16.msrb.mxu2 %v5834_v26 }
 0x89f   : > { %2096 = vst [vmem:[#allocation1] ss:$4 sm:$0xff] %v2081_v29  ;;  %v8245_v23 = vpack.c.bf16 %v2089_v13, %v2089_v13  ;;  %v6580_v30 = vld [vmem:[%s7385_s16 + $0x42c] sm:$0xf0]  ;;  %v5689_v33 = vld [vmem:[%s7385_s16 + $0x520] sm:$0xf]  ;;  %3879 = vmatmul.bf16.vlgmr.msra.gmra.mxu2 %v8239_v9  ;;  %3941 = vmatpush.bf16.msrb.mxu3 %v5962_v34 }
 0x8a0   : > { %v6612_v35 = vld [vmem:[%s7385_s16 + $0x52c] sm:$0xf0]  ;;  %v5817_v36 = vld [vmem:[%s7385_s16 + $0x620] sm:$0xf]  ;;  %3853 = vmatmul.bf16.vlgmr.msra.gmra.mxu0 %v8241_v10  ;;  %3892 = vmatmul.bf16.vlgmr.msra.gmra.mxu3 %v8243_v22  ;;  %v5562_v38 = vor.u32 %v6580_v30, %v5561_v28  ;;  %v6502_v59 = vld [vmem:[%s7385_s16 + $0x1c4] sm:$0xf] }
 0x8a1   : > { %v6644_v54 = vld [vmem:[%s7385_s16 + $0x62c] sm:$0xf0]  ;;  %v5945_v57 = vld [vmem:[%s7385_s16 + $0x720] sm:$0xf]  ;;  %3866 = vmatmul.bf16.vlgmr.msra.gmra.mxu1 %v8245_v23  ;;  %v5690_v41 = vor.u32 %v6612_v35, %v5689_v33  ;;  %v5259_v60 = vld [vmem:[%s7385_s16 + $0x1d0] sm:$0xf0] }
 0x8a2   : > { %v6676_v0 = vld [vmem:[%s7385_s16 + $0x72c] sm:$0xf0]  ;;  %v5545_v39 = vld [vmem:[%s7385_s16 + $0x400] sm:$0xf]  ;;  %v5818_v42 = vor.u32 %v6644_v54, %v5817_v36  ;;  %3903 = vmatpush.bf16.msrb.mxu0 %v5562_v38  ;;  %v6534_v61 = vld [vmem:[%s7385_s16 + $0x2c4] sm:$0xf]  ;;  %v5262_v7 = vor.u32 %v6502_v59, %v5259_v60 }
 0x8a3   : > { %v6576_v40 = vld [vmem:[%s7385_s16 + $0x40c] sm:$0xf0]  ;;  %v5673_v6 = vld [vmem:[%s7385_s16 + $0x500] sm:$0xf]  ;;  %v5946_v27 = vor.u32 %v6676_v0, %v5945_v57  ;;  %3916 = vmatpush.bf16.msrb.mxu1 %v5690_v41  ;;  %v5387_v2 = vld [vmem:[%s7385_s16 + $0x2d0] sm:$0xf0] }
 0x8a4   : > { %v6608_v43 = vld [vmem:[%s7385_s16 + $0x50c] sm:$0xf0]  ;;  %v5801_v44 = vld [vmem:[%s7385_s16 + $0x600] sm:$0xf]  ;;  %v5546_v49 = vor.u32 %v6576_v40, %v5545_v39  ;;  %3929 = vmatpush.bf16.msrb.mxu2 %v5818_v42  ;;  %v6466_v13 = vld [vmem:[%s7385_s16 + $0xa4] sm:$0xf]  ;;  %v5390_v20 = vor.u32 %v6534_v61, %v5387_v2 }
 0x8a5   : > { %v6640_v4 = vld [vmem:[%s7385_s16 + $0x60c] sm:$0xf0]  ;;  %v5929_v31 = vld [vmem:[%s7385_s16 + $0x700] sm:$0xf]  ;;  %v5674_v14 = vor.u32 %v6608_v43, %v5673_v6  ;;  %3942 = vmatpush.bf16.msrb.mxu3 %v5946_v27  ;;  %v5115_v26 = vld [vmem:[%s7385_s16 + $0xb0] sm:$0xf0] }
 0x8a6   : > { %v6672_v45 = vld [vmem:[%s7385_s16 + $0x70c] sm:$0xf0]  ;;  %v6169_v46 = vld [vmem:[%s7385_s16 + $0x8e0] sm:$0xf]  ;;  %v5802_v52 = vor.u32 %v6640_v4, %v5801_v44  ;;  %3904 = vmatpush.bf16.msrb.mxu0 %v5546_v49  ;;  %v6498_v28 = vld [vmem:[%s7385_s16 + $0x1a4] sm:$0xf]  ;;  %v5118_v57 = vor.u32 %v6466_v13, %v5115_v26 }
 0x8a7   : > { %v6732_v47 = vld [vmem:[%s7385_s16 + $0x8ec] sm:$0xf0]  ;;  %v5930_v16 = vor.u32 %v6672_v45, %v5929_v31  ;;  %v6153_v17 = vld [vmem:[%s7385_s16 + $0x8c0] sm:$0xf]  ;;  %3917 = vmatpush.bf16.msrb.mxu1 %v5674_v14  ;;  %v5243_v30 = vld [vmem:[%s7385_s16 + $0x1b0] sm:$0xf0] }
 0x8a8   : > { %v6170_v18 = vor.u32 %v6732_v47, %v6169_v46  ;;  %v6728_v55 = vld [vmem:[%s7385_s16 + $0x8cc] sm:$0xf0]  ;;  %3930 = vmatpush.bf16.msrb.mxu2 %v5802_v52  ;;  %v2092_v62 = vld.sshfl [vmem:[#allocation1 + $0x20] sm:$0xff pattern:$0x73625140]  ;;  %v5246_v0 = vor.u32 %v6498_v28, %v5243_v30 }
 0x8a9   : > { %v2094_v21 = vld.sshfl [vmem:[#allocation1 + $0x30] sm:$0xff pattern:$0x73625140]  ;;  %3943 = vmatpush.bf16.msrb.mxu3 %v5930_v16  ;;  %v6154_v63 = vor.u32 %v6728_v55, %v6153_v17  ;;  %v2095_v3 = vld.sshfl [vmem:[#allocation1 + $0x38] sm:$0xff pattern:$0x73625140]  ;;  %v8289_v24 = vpack.c.bf16 %v2092_v62, %v2092_v62 }
 0x8aa   : > { %3949 = vmatpush.bf16.msra.mxu0 %v6170_v18  ;;  %v8284_v1 = vpack.c.bf16 %v2094_v21, %v2094_v21  ;;  %v2093_v29 = vld.sshfl [vmem:[#allocation1 + $0x28] sm:$0xff pattern:$0x73625140]  ;;  %v6137_v8 = vld [vmem:[%s7385_s16 + $0x8a0] sm:$0xf]  ;;  %v8294_v33 = vpack.c.bf16 %v2095_v3, %v2095_v3 }
 0x8ab   : > { %3962 = vmatpush.bf16.msra.mxu1 %v5150_v58  ;;  %v6724_v11 = vld [vmem:[%s7385_s16 + $0x8ac] sm:$0xf0]  ;;  %v6530_v34 = vld [vmem:[%s7385_s16 + $0x2a4] sm:$0xf]  ;;  %v5371_v35 = vld [vmem:[%s7385_s16 + $0x2b0] sm:$0xf0]  ;;  %v8298_v36 = vpack.c.bf16 %v2093_v29, %v2093_v29 }
 0x8ac   : > { %3975 = vmatpush.bf16.msra.mxu2 %v5278_v19  ;;  %v6138_v54 = vor.u32 %v6724_v11, %v6137_v8  ;;  %v6121_v5 = vld [vmem:[%s7385_s16 + $0x880] sm:$0xf]  ;;  %v6720_v38 = vld [vmem:[%s7385_s16 + $0x88c] sm:$0xf0]  ;;  %v6462_v39 = vld [vmem:[%s7385_s16 + $0x84] sm:$0xf]  ;;  %v5374_v40 = vor.u32 %v6530_v34, %v5371_v35 }
 0x8ad   : > { %3988 = vmatpush.bf16.msra.mxu3 %v5406_v32  ;;  %v5099_v41 = vld [vmem:[%s7385_s16 + $0x90] sm:$0xf0]  ;;  %v6494_v42 = vld [vmem:[%s7385_s16 + $0x184] sm:$0xf]  ;;  %v6122_v27 = vor.u32 %v6720_v38, %v6121_v5  ;;  %v6105_v45 = vld [vmem:[%s7385_s16 + $0x860] sm:$0xf] }
 0x8ae   : > { %3950 = vmatpush.bf16.msra.mxu0 %v6154_v63  ;;  %v5227_v6 = vld [vmem:[%s7385_s16 + $0x190] sm:$0xf0]  ;;  %v6526_v43 = vld [vmem:[%s7385_s16 + $0x284] sm:$0xf]  ;;  %v5102_v4 = vor.u32 %v6462_v39, %v5099_v41  ;;  %v6716_v46 = vld [vmem:[%s7385_s16 + $0x86c] sm:$0xf0] }
 0x8af   : > { %3931 = vmatmul.bf16.vlgmr.msrb.gmra.mxu2 %v8284_v1  ;;  %3963 = vmatpush.bf16.msra.mxu1 %v5134_v37  ;;  %v5355_v44 = vld [vmem:[%s7385_s16 + $0x290] sm:$0xf0]  ;;  %v5230_v31 = vor.u32 %v6494_v42, %v5227_v6  ;;  %v6458_v47 = vld [vmem:[%s7385_s16 + $0x64] sm:$0xf]  ;;  %v6106_v52 = vor.u32 %v6716_v46, %v6105_v45  ;;  %v6089_v16 = vld [vmem:[%s7385_s16 + $0x840] sm:$0xf] }
 0x8b0   : > { %3976 = vmatpush.bf16.msra.mxu2 %v5262_v7  ;;  %3905 = vmatmul.bf16.vlgmr.msrb.gmra.mxu0 %v8289_v24  ;;  %v5358_v48 = vor.u32 %v6526_v43, %v5355_v44  ;;  %v5083_v49 = vld [vmem:[%s7385_s16 + $0x70] sm:$0xf0]  ;;  %v6490_v50 = vld [vmem:[%s7385_s16 + $0x164] sm:$0xf]  ;;  %v6712_v18 = vld [vmem:[%s7385_s16 + $0x84c] sm:$0xf0] }
 0x8b1   : > { %3989 = vmatpush.bf16.msra.mxu3 %v5390_v20  ;;  %3918 = vmatmul.bf16.vlgmr.msrb.gmra.mxu1 %v8298_v36  ;;  %v5211_v51 = vld [vmem:[%s7385_s16 + $0x170] sm:$0xf0]  ;;  %v6522_v12 = vld [vmem:[%s7385_s16 + $0x264] sm:$0xf]  ;;  %v5086_v15 = vor.u32 %v6458_v47, %v5083_v49  ;;  %v6090_v32 = vor.u32 %v6712_v18, %v6089_v16  ;;  %v6073_v61 = vld [vmem:[%s7385_s16 + $0x820] sm:$0xf] }
 0x8b2   : > { %3944 = vmatmul.bf16.vlgmr.msrb.gmra.mxu3 %v8294_v33  ;;  %3951 = vmatpush.bf16.msra.mxu0 %v6138_v54  ;;  %v5339_v14 = vld [vmem:[%s7385_s16 + $0x270] sm:$0xf0]  ;;  %v5214_v53 = vor.u32 %v6490_v50, %v5211_v51  ;;  %v6454_v17 = vld [vmem:[%s7385_s16 + $0x44] sm:$0xf]  ;;  %v6708_v2 = vld [vmem:[%s7385_s16 + $0x82c] sm:$0xf0] }
 0x8b3   : > { %3964 = vmatpush.bf16.msra.mxu1 %v5118_v57  ;;  %v5342_v55 = vor.u32 %v6522_v12, %v5339_v14  ;;  %v5067_v56 = vld [vmem:[%s7385_s16 + $0x50] sm:$0xf0]  ;;  %v6486_v58 = vld [vmem:[%s7385_s16 + $0x144] sm:$0xf]  ;;  %v6074_v11 = vor.u32 %v6708_v2, %v6073_v61  ;;  %v6057_v13 = vld [vmem:[%s7385_s16 + $0x800] sm:$0xf] }
 0x8b4   : > { %3977 = vmatpush.bf16.msra.mxu2 %v5246_v0  ;;  %v5195_v19 = vld [vmem:[%s7385_s16 + $0x150] sm:$0xf0]  ;;  %v6518_v25 = vld [vmem:[%s7385_s16 + $0x244] sm:$0xf]  ;;  %v5070_v59 = vor.u32 %v6454_v17, %v5067_v56  ;;  %v6704_v20 = vld [vmem:[%s7385_s16 + $0x80c] sm:$0xf0] }
 0x8b5   : > { %3990 = vmatpush.bf16.msra.mxu3 %v5374_v40  ;;  %v5323_v21 = vld [vmem:[%s7385_s16 + $0x250] sm:$0xf0]  ;;  %v5198_v60 = vor.u32 %v6486_v58, %v5195_v19  ;;  %v6450_v62 = vld [vmem:[%s7385_s16 + $0x24] sm:$0xf]  ;;  %v6058_v42 = vor.u32 %v6704_v20, %v6057_v13 }
 0x8b6   : > { %3952 = vmatpush.bf16.msra.mxu0 %v6122_v27  ;;  %v5326_v63 = vor.u32 %v6518_v25, %v5323_v21  ;;  %v5051_v3 = vld [vmem:[%s7385_s16 + $0x30] sm:$0xf0]  ;;  %v6482_v29 = vld [vmem:[%s7385_s16 + $0x124] sm:$0xf] }
 0x8b7   : > { %3965 = vmatpush.bf16.msra.mxu1 %v5102_v4  ;;  %v5179_v37 = vld [vmem:[%s7385_s16 + $0x130] sm:$0xf0]  ;;  %v6514_v7 = vld [vmem:[%s7385_s16 + $0x224] sm:$0xf]  ;;  %v5054_v28 = vor.u32 %v6450_v62, %v5051_v3 }
 0x8b8   : > { %3978 = vmatpush.bf16.msra.mxu2 %v5230_v31  ;;  %v5307_v8 = vld [vmem:[%s7385_s16 + $0x230] sm:$0xf0]  ;;  %v6446_v26 = vld [vmem:[%s7385_s16 + $0x4] sm:$0xf]  ;;  %v5182_v30 = vor.u32 %v6482_v29, %v5179_v37 }
 0x8b9   : > { %3991 = vmatpush.bf16.msra.mxu3 %v5358_v48  ;;  %v5035_v34 = vld [vmem:[%s7385_s16 + $0x10] sm:$0xf0]  ;;  %v6478_v35 = vld [vmem:[%s7385_s16 + $0x104] sm:$0xf]  ;;  %v5310_v57 = vor.u32 %v6514_v7, %v5307_v8 }
 0x8ba   : > { %3953 = vmatpush.bf16.msra.mxu0 %v6106_v52  ;;  %v5163_v54 = vld [vmem:[%s7385_s16 + $0x110] sm:$0xf0]  ;;  %v6510_v0 = vld [vmem:[%s7385_s16 + $0x204] sm:$0xf]  ;;  %v5038_v27 = vor.u32 %v6446_v26, %v5035_v34 }
 0x8bb   : > { %3966 = vmatpush.bf16.msra.mxu1 %v5086_v15  ;;  %v5291_v5 = vld [vmem:[%s7385_s16 + $0x210] sm:$0xf0]  ;;  %v6570_v38 = vld [vmem:[%s7385_s16 + $0x3e4] sm:$0xf]  ;;  %v5166_v4 = vor.u32 %v6478_v35, %v5163_v54 }
 0x8bc   : > { %3979 = vmatpush.bf16.msra.mxu2 %v5214_v53  ;;  %v5531_v39 = vld [vmem:[%s7385_s16 + $0x3f0] sm:$0xf0]  ;;  %v6602_v40 = vld [vmem:[%s7385_s16 + $0x4e4] sm:$0xf]  ;;  %v5294_v46 = vor.u32 %v6510_v0, %v5291_v5 }
 0x8bd   : > { %3992 = vmatpush.bf16.msra.mxu3 %v5342_v55  ;;  %v5659_v41 = vld [vmem:[%s7385_s16 + $0x4f0] sm:$0xf0]  ;;  %v6634_v6 = vld [vmem:[%s7385_s16 + $0x5e4] sm:$0xf]  ;;  %v5534_v47 = vor.u32 %v6570_v38, %v5531_v39 }
 0x8be   : > { %3954 = vmatpush.bf16.msra.mxu0 %v6090_v32  ;;  %v5787_v43 = vld [vmem:[%s7385_s16 + $0x5f0] sm:$0xf0]  ;;  %v6666_v44 = vld [vmem:[%s7385_s16 + $0x6e4] sm:$0xf]  ;;  %v5662_v48 = vor.u32 %v6602_v40, %v5659_v41 }
 0x8bf   : > { %3967 = vmatpush.bf16.msra.mxu1 %v5070_v59  ;;  %v5915_v31 = vld [vmem:[%s7385_s16 + $0x6f0] sm:$0xf0]  ;;  %v2097_v45 = vld.sshfl [vmem:[#allocation1] sm:$0xff pattern:$0x73625140]  ;;  %v5790_v49 = vor.u32 %v6634_v6, %v5787_v43 }
 0x8c0   : > { %3980 = vmatpush.bf16.msra.mxu2 %v5198_v60  ;;  %v6566_v50 = vld [vmem:[%s7385_s16 + $0x3c4] sm:$0xf]  ;;  %v5515_v51 = vld [vmem:[%s7385_s16 + $0x3d0] sm:$0xf0]  ;;  %v5918_v14 = vor.u32 %v6666_v44, %v5915_v31  ;;  %v8355_v52 = vpack.c.bf16 %v2097_v45, %v2097_v45 }
 0x8c1   : > { %3993 = vmatpush.bf16.msra.mxu3 %v5326_v63  ;;  %v6598_v12 = vld [vmem:[%s7385_s16 + $0x4c4] sm:$0xf]  ;;  %v5643_v15 = vld [vmem:[%s7385_s16 + $0x4d0] sm:$0xf0]  ;;  %v5518_v55 = vor.u32 %v6566_v50, %v5515_v51 }
 0x8c2   : > { %3955 = vmatpush.bf16.msra.mxu0 %v6074_v11  ;;  %v6630_v53 = vld [vmem:[%s7385_s16 + $0x5c4] sm:$0xf]  ;;  %v5771_v16 = vld [vmem:[%s7385_s16 + $0x5d0] sm:$0xf0]  ;;  %v5646_v56 = vor.u32 %v6598_v12, %v5643_v15 }
 0x8c3   : > { %3968 = vmatpush.bf16.msra.mxu1 %v5054_v28  ;;  %v6662_v18 = vld [vmem:[%s7385_s16 + $0x6c4] sm:$0xf]  ;;  %v5899_v17 = vld [vmem:[%s7385_s16 + $0x6d0] sm:$0xf0]  ;;  %v5774_v58 = vor.u32 %v6630_v53, %v5771_v16 }
 0x8c4   : > { %3981 = vmatpush.bf16.msra.mxu2 %v5182_v30  ;;  %v6562_v19 = vld [vmem:[%s7385_s16 + $0x3a4] sm:$0xf]  ;;  %v5499_v25 = vld [vmem:[%s7385_s16 + $0x3b0] sm:$0xf0]  ;;  %v5902_v32 = vor.u32 %v6662_v18, %v5899_v17 }
 0x8c5   : > { %3994 = vmatpush.bf16.msra.mxu3 %v5310_v57  ;;  %v6594_v21 = vld [vmem:[%s7385_s16 + $0x4a4] sm:$0xf]  ;;  %v5627_v59 = vld [vmem:[%s7385_s16 + $0x4b0] sm:$0xf0]  ;;  %v5502_v63 = vor.u32 %v6562_v19, %v5499_v25 }
 0x8c6   : > { %3956 = vmatpush.bf16.msra.mxu0 %v6058_v42  ;;  %v6626_v60 = vld [vmem:[%s7385_s16 + $0x5a4] sm:$0xf]  ;;  %v5755_v61 = vld [vmem:[%s7385_s16 + $0x5b0] sm:$0xf0]  ;;  %v5630_v3 = vor.u32 %v6594_v21, %v5627_v59 }
 0x8c7   : > { %3969 = vmatpush.bf16.msra.mxu1 %v5038_v27  ;;  %v6658_v2 = vld [vmem:[%s7385_s16 + $0x6a4] sm:$0xf]  ;;  %v5883_v62 = vld [vmem:[%s7385_s16 + $0x6b0] sm:$0xf0]  ;;  %v5758_v29 = vor.u32 %v6626_v60, %v5755_v61 }
 0x8c8   : > { %3982 = vmatpush.bf16.msra.mxu2 %v5166_v4  ;;  %v6558_v37 = vld [vmem:[%s7385_s16 + $0x384] sm:$0xf]  ;;  %v5483_v7 = vld [vmem:[%s7385_s16 + $0x390] sm:$0xf0]  ;;  %v5886_v11 = vor.u32 %v6658_v2, %v5883_v62 }
 0x8c9   : > { %3995 = vmatpush.bf16.msra.mxu3 %v5294_v46  ;;  %3957 = vmatmul.bf16.vlgmr.msra.gmra.mxu0 %v8355_v52  ;;  %v6590_v8 = vld [vmem:[%s7385_s16 + $0x484] sm:$0xf]  ;;  %v5611_v13 = vld [vmem:[%s7385_s16 + $0x490] sm:$0xf0]  ;;  %v5486_v34 = vor.u32 %v6558_v37, %v5483_v7 }
 0x8ca   : > { %4001 = vmatpush.bf16.msrb.mxu0 %v5534_v47  ;;  %3970 = vmatmul.bf16.vlgmr.msra.gmra.mxu1 %v8241_v10  ;;  %v6622_v20 = vld [vmem:[%s7385_s16 + $0x584] sm:$0xf]  ;;  %v5739_v26 = vld [vmem:[%s7385_s16 + $0x590] sm:$0xf0]  ;;  %v5614_v35 = vor.u32 %v6590_v8, %v5611_v13 }
 0x8cb   : > { %4014 = vmatpush.bf16.msrb.mxu1 %v5662_v48  ;;  %3983 = vmatmul.bf16.vlgmr.msra.gmra.mxu2 %v8245_v23  ;;  %v6654_v28 = vld [vmem:[%s7385_s16 + $0x684] sm:$0xf]  ;;  %v5867_v30 = vld [vmem:[%s7385_s16 + $0x690] sm:$0xf0]  ;;  %v5742_v54 = vor.u32 %v6622_v20, %v5739_v26 }
 0x8cc   : > { %4027 = vmatpush.bf16.msrb.mxu2 %v5790_v49  ;;  %3996 = vmatmul.bf16.vlgmr.msra.gmra.mxu3 %v8239_v9  ;;  %v6554_v57 = vld [vmem:[%s7385_s16 + $0x364] sm:$0xf]  ;;  %v5467_v0 = vld [vmem:[%s7385_s16 + $0x370] sm:$0xf0]  ;;  %v5870_v38 = vor.u32 %v6654_v28, %v5867_v30  ;;  %v5153_v28 = vld [vmem:[%s7385_s16 + $0xe8] sm:$0xf] }
 0x8cd   : > { %4040 = vmatpush.bf16.msrb.mxu3 %v5918_v14  ;;  %v6586_v5 = vld [vmem:[%s7385_s16 + $0x464] sm:$0xf]  ;;  %v5595_v39 = vld [vmem:[%s7385_s16 + $0x470] sm:$0xf0]  ;;  %v5470_v43 = vor.u32 %v6554_v57, %v5467_v0  ;;  %v6477_v30 = vld [vmem:[%s7385_s16 + $0xf4] sm:$0xf0] }
 0x8ce   : > { %4002 = vmatpush.bf16.msrb.mxu0 %v5518_v55  ;;  %v6618_v40 = vld [vmem:[%s7385_s16 + $0x564] sm:$0xf]  ;;  %v5723_v41 = vld [vmem:[%s7385_s16 + $0x570] sm:$0xf0]  ;;  %v5598_v44 = vor.u32 %v6586_v5, %v5595_v39  ;;  %v6509_v57 = vld [vmem:[%s7385_s16 + $0x1f4] sm:$0xf0]  ;;  %v5154_v39 = vor.u32 %v6477_v30, %v5153_v28 }
 0x8cf   : > { %4015 = vmatpush.bf16.msrb.mxu1 %v5646_v56  ;;  %v6650_v42 = vld [vmem:[%s7385_s16 + $0x664] sm:$0xf]  ;;  %v5851_v6 = vld [vmem:[%s7385_s16 + $0x670] sm:$0xf0]  ;;  %v5726_v27 = vor.u32 %v6618_v40, %v5723_v41 }
 0x8d0   : > { %4028 = vmatpush.bf16.msrb.mxu2 %v5774_v58  ;;  %v6550_v4 = vld [vmem:[%s7385_s16 + $0x344] sm:$0xf]  ;;  %v5451_v31 = vld [vmem:[%s7385_s16 + $0x350] sm:$0xf0]  ;;  %v5854_v46 = vor.u32 %v6650_v42, %v5851_v6 }
 0x8d1   : > { %4041 = vmatpush.bf16.msrb.mxu3 %v5902_v32  ;;  %v6582_v45 = vld [vmem:[%s7385_s16 + $0x444] sm:$0xf]  ;;  %v5579_v47 = vld [vmem:[%s7385_s16 + $0x450] sm:$0xf0]  ;;  %v5454_v12 = vor.u32 %v6550_v4, %v5451_v31  ;;  %v5265_v4 = vld [vmem:[%s7385_s16 + $0x1c8] sm:$0xf] }
 0x8d2   : > { %4003 = vmatpush.bf16.msrb.mxu0 %v5502_v63  ;;  %v6614_v48 = vld [vmem:[%s7385_s16 + $0x544] sm:$0xf]  ;;  %v5707_v49 = vld [vmem:[%s7385_s16 + $0x550] sm:$0xf0]  ;;  %v5582_v14 = vor.u32 %v6582_v45, %v5579_v47  ;;  %v6505_v31 = vld [vmem:[%s7385_s16 + $0x1d4] sm:$0xf0] }
 0x8d3   : > { %4016 = vmatpush.bf16.msrb.mxu1 %v5630_v3  ;;  %v6646_v50 = vld [vmem:[%s7385_s16 + $0x644] sm:$0xf]  ;;  %v5835_v51 = vld [vmem:[%s7385_s16 + $0x650] sm:$0xf0]  ;;  %v5710_v15 = vor.u32 %v6614_v48, %v5707_v49 }
 0x8d4   : > { %4029 = vmatpush.bf16.msrb.mxu2 %v5758_v29  ;;  %v6546_v53 = vld [vmem:[%s7385_s16 + $0x324] sm:$0xf]  ;;  %v5435_v16 = vld [vmem:[%s7385_s16 + $0x330] sm:$0xf0]  ;;  %v5838_v17 = vor.u32 %v6646_v50, %v5835_v51  ;;  %v5266_v51 = vor.u32 %v6505_v31, %v5265_v4 }
 0x8d5   : > { %4042 = vmatpush.bf16.msrb.mxu3 %v5886_v11  ;;  %v6578_v18 = vld [vmem:[%s7385_s16 + $0x424] sm:$0xf]  ;;  %v5563_v55 = vld [vmem:[%s7385_s16 + $0x430] sm:$0xf0]  ;;  %v5438_v21 = vor.u32 %v6546_v53, %v5435_v16  ;;  %v5249_v53 = vld [vmem:[%s7385_s16 + $0x1a8] sm:$0xf] }
 0x8d6   : > { %4004 = vmatpush.bf16.msrb.mxu0 %v5486_v34  ;;  %v6610_v56 = vld [vmem:[%s7385_s16 + $0x524] sm:$0xf]  ;;  %v5691_v58 = vld [vmem:[%s7385_s16 + $0x530] sm:$0xf0]  ;;  %v5566_v60 = vor.u32 %v6578_v18, %v5563_v55  ;;  %v6501_v16 = vld [vmem:[%s7385_s16 + $0x1b4] sm:$0xf0] }
 0x8d7   : > { %4017 = vmatpush.bf16.msrb.mxu1 %v5614_v35  ;;  %v6642_v19 = vld [vmem:[%s7385_s16 + $0x624] sm:$0xf]  ;;  %v5819_v25 = vld [vmem:[%s7385_s16 + $0x630] sm:$0xf0]  ;;  %v5694_v61 = vor.u32 %v6610_v56, %v5691_v58 }
 0x8d8   : > { %4030 = vmatpush.bf16.msrb.mxu2 %v5742_v54  ;;  %v6542_v32 = vld [vmem:[%s7385_s16 + $0x304] sm:$0xf]  ;;  %v5419_v59 = vld [vmem:[%s7385_s16 + $0x310] sm:$0xf0]  ;;  %v5822_v3 = vor.u32 %v6642_v19, %v5819_v25  ;;  %v5281_v54 = vld [vmem:[%s7385_s16 + $0x1e8] sm:$0xf]  ;;  %v5250_v25 = vor.u32 %v6501_v16, %v5249_v53 }
 0x8d9   : > { %4043 = vmatpush.bf16.msrb.mxu3 %v5870_v38  ;;  %v6574_v2 = vld [vmem:[%s7385_s16 + $0x404] sm:$0xf]  ;;  %v5547_v62 = vld [vmem:[%s7385_s16 + $0x410] sm:$0xf0]  ;;  %v5422_v20 = vor.u32 %v6542_v32, %v5419_v59  ;;  %v5282_v6 = vor.u32 %v6509_v57, %v5281_v54  ;;  %v5105_v32 = vld [vmem:[%s7385_s16 + $0x88] sm:$0xf] }
 0x8da   : > { %4005 = vmatpush.bf16.msrb.mxu0 %v5470_v43  ;;  %v6606_v63 = vld [vmem:[%s7385_s16 + $0x504] sm:$0xf]  ;;  %v5675_v29 = vld [vmem:[%s7385_s16 + $0x510] sm:$0xf0]  ;;  %v5550_v34 = vor.u32 %v6574_v2, %v5547_v62  ;;  %v6465_v59 = vld [vmem:[%s7385_s16 + $0x94] sm:$0xf0] }
 0x8db   : > { %4018 = vmatpush.bf16.msrb.mxu1 %v5598_v44  ;;  %v6638_v37 = vld [vmem:[%s7385_s16 + $0x604] sm:$0xf]  ;;  %v5803_v7 = vld [vmem:[%s7385_s16 + $0x610] sm:$0xf0]  ;;  %v5678_v35 = vor.u32 %v6606_v63, %v5675_v29  ;;  %v5137_v44 = vld [vmem:[%s7385_s16 + $0xc8] sm:$0xf]  ;;  %v5106_v63 = vor.u32 %v6465_v59, %v5105_v32 }
 0x8dc   : > { %4031 = vmatpush.bf16.msrb.mxu2 %v5726_v27  ;;  %v6698_v8 = vld [vmem:[%s7385_s16 + $0x7e4] sm:$0xf]  ;;  %v6043_v11 = vld [vmem:[%s7385_s16 + $0x7f0] sm:$0xf0]  ;;  %v5806_v0 = vor.u32 %v6638_v37, %v5803_v7  ;;  %v6473_v27 = vld [vmem:[%s7385_s16 + $0xd4] sm:$0xf0] }
 0x8dd   : > { %4044 = vmatpush.bf16.msrb.mxu3 %v5854_v46  ;;  %v6730_v13 = vld [vmem:[%s7385_s16 + $0x8e4] sm:$0xf]  ;;  %v6171_v26 = vld [vmem:[%s7385_s16 + $0x8f0] sm:$0xf0]  ;;  %v6046_v5 = vor.u32 %v6698_v8, %v6043_v11  ;;  %v5138_v47 = vor.u32 %v6473_v27, %v5137_v44  ;;  %v5089_v11 = vld [vmem:[%s7385_s16 + $0x68] sm:$0xf] }
 0x8de   : > { %4006 = vmatpush.bf16.msrb.mxu0 %v5454_v12  ;;  %v6174_v38 = vor.u32 %v6730_v13, %v6171_v26  ;;  %v6694_v40 = vld [vmem:[%s7385_s16 + $0x7c4] sm:$0xf]  ;;  %v6027_v41 = vld [vmem:[%s7385_s16 + $0x7d0] sm:$0xf0]  ;;  %v6461_v13 = vld [vmem:[%s7385_s16 + $0x74] sm:$0xf0] }
 0x8df   : > { %4019 = vmatpush.bf16.msrb.mxu1 %v5582_v14  ;;  %v6726_v42 = vld [vmem:[%s7385_s16 + $0x8c4] sm:$0xf]  ;;  %v6155_v43 = vld [vmem:[%s7385_s16 + $0x8d0] sm:$0xf0]  ;;  %v6030_v45 = vor.u32 %v6694_v40, %v6027_v41  ;;  %v5121_v14 = vld [vmem:[%s7385_s16 + $0xa8] sm:$0xf] }
 0x8e0   : > { %4032 = vmatpush.bf16.msrb.mxu2 %v5710_v15  ;;  %v6158_v46 = vor.u32 %v6726_v42, %v6155_v43  ;;  %v6690_v48 = vld [vmem:[%s7385_s16 + $0x7a4] sm:$0xf]  ;;  %v6011_v49 = vld [vmem:[%s7385_s16 + $0x7b0] sm:$0xf0]  ;;  %v6469_v15 = vld [vmem:[%s7385_s16 + $0xb4] sm:$0xf0] }
 0x8e1   : > { %4045 = vmatpush.bf16.msrb.mxu3 %v5838_v17  ;;  %v6722_v50 = vld [vmem:[%s7385_s16 + $0x8a4] sm:$0xf]  ;;  %v6139_v12 = vld [vmem:[%s7385_s16 + $0x8b0] sm:$0xf0]  ;;  %v6014_v18 = vor.u32 %v6690_v48, %v6011_v49  ;;  %v5122_v55 = vor.u32 %v6469_v15, %v5121_v14  ;;  %v6493_v26 = vld [vmem:[%s7385_s16 + $0x174] sm:$0xf0] }
 0x8e2   : > { %4007 = vmatpush.bf16.msrb.mxu0 %v5438_v21  ;;  %v6142_v17 = vor.u32 %v6722_v50, %v6139_v12  ;;  %v6686_v56 = vld [vmem:[%s7385_s16 + $0x784] sm:$0xf]  ;;  %v5995_v58 = vld [vmem:[%s7385_s16 + $0x790] sm:$0xf0]  ;;  %v5201_v40 = vld [vmem:[%s7385_s16 + $0x148] sm:$0xf] }
 0x8e3   : > { %4020 = vmatpush.bf16.msrb.mxu1 %v5566_v60  ;;  %v6718_v19 = vld [vmem:[%s7385_s16 + $0x884] sm:$0xf]  ;;  %v6123_v21 = vld [vmem:[%s7385_s16 + $0x890] sm:$0xf0]  ;;  %v5233_v60 = vld [vmem:[%s7385_s16 + $0x188] sm:$0xf]  ;;  %v5998_v2 = vor.u32 %v6686_v56, %v5995_v58 }
 0x8e4   : > { %4033 = vmatpush.bf16.msrb.mxu2 %v5694_v61  ;;  %v6497_v61 = vld [vmem:[%s7385_s16 + $0x194] sm:$0xf0]  ;;  %v6126_v62 = vor.u32 %v6718_v19, %v6123_v21  ;;  %v5979_v29 = vld [vmem:[%s7385_s16 + $0x770] sm:$0xf0]  ;;  %v6714_v37 = vld [vmem:[%s7385_s16 + $0x864] sm:$0xf] }
 0x8e5   : > { %4046 = vmatpush.bf16.msrb.mxu3 %v5822_v3  ;;  %v6682_v3 = vld [vmem:[%s7385_s16 + $0x764] sm:$0xf]  ;;  %v5234_v7 = vor.u32 %v6497_v61, %v5233_v60  ;;  %v6107_v8 = vld [vmem:[%s7385_s16 + $0x870] sm:$0xf0]  ;;  %v6489_v41 = vld [vmem:[%s7385_s16 + $0x154] sm:$0xf0] }
 0x8e6   : > { %4008 = vmatpush.bf16.msrb.mxu0 %v5422_v20  ;;  %v5217_v20 = vld [vmem:[%s7385_s16 + $0x168] sm:$0xf]  ;;  %v5982_v28 = vor.u32 %v6682_v3, %v5979_v29  ;;  %v6110_v30 = vor.u32 %v6714_v37, %v6107_v8  ;;  %v5963_v54 = vld [vmem:[%s7385_s16 + $0x750] sm:$0xf0]  ;;  %v6710_v57 = vld [vmem:[%s7385_s16 + $0x844] sm:$0xf]  ;;  %v5202_v31 = vor.u32 %v6489_v41, %v5201_v40 }
 0x8e7   : > { %4021 = vmatpush.bf16.msrb.mxu1 %v5550_v34  ;;  %v5090_v34 = vor.u32 %v6461_v13, %v5089_v11  ;;  %v6674_v44 = vld [vmem:[%s7385_s16 + $0x724] sm:$0xf]  ;;  %v5947_v27 = vld [vmem:[%s7385_s16 + $0x730] sm:$0xf0]  ;;  %v5185_v48 = vld [vmem:[%s7385_s16 + $0x128] sm:$0xf] }
 0x8e8   : > { %4034 = vmatpush.bf16.msrb.mxu2 %v5678_v35  ;;  %v6678_v35 = vld [vmem:[%s7385_s16 + $0x744] sm:$0xf]  ;;  %v6485_v49 = vld [vmem:[%s7385_s16 + $0x134] sm:$0xf0]  ;;  %v5950_v50 = vor.u32 %v6674_v44, %v5947_v27  ;;  %v5931_v12 = vld [vmem:[%s7385_s16 + $0x710] sm:$0xf0] }
 0x8e9   : > { %4047 = vmatpush.bf16.msrb.mxu3 %v5806_v0  ;;  %4009 = vmatmul.bf16.vlgmr.msrb.gmra.mxu0 %v8243_v22  ;;  %v5218_v0 = vor.u32 %v6493_v26, %v5217_v20  ;;  %v5966_v42 = vor.u32 %v6678_v35, %v5963_v54  ;;  %v6706_v4 = vld [vmem:[%s7385_s16 + $0x824] sm:$0xf]  ;;  %v6059_v16 = vld [vmem:[%s7385_s16 + $0x810] sm:$0xf0]  ;;  %v5169_v56 = vld [vmem:[%s7385_s16 + $0x108] sm:$0xf] }
 0x8ea   : > { %4053 = vmatpush.bf16.msra.mxu0 %v6046_v5  ;;  %4022 = vmatmul.bf16.vlgmr.msrb.gmra.mxu1 %v8289_v24  ;;  %v6091_v5 = vld [vmem:[%s7385_s16 + $0x850] sm:$0xf0]  ;;  %v6702_v53 = vld [vmem:[%s7385_s16 + $0x804] sm:$0xf]  ;;  %v6481_v58 = vld [vmem:[%s7385_s16 + $0x114] sm:$0xf0] }
 0x8eb   : > { %4066 = vmatpush.bf16.msra.mxu1 %v6174_v38  ;;  %4035 = vmatmul.bf16.vlgmr.msrb.gmra.mxu2 %v8298_v36  ;;  %v5073_v38 = vld [vmem:[%s7385_s16 + $0x48] sm:$0xf]  ;;  %v6573_v59 = vld [vmem:[%s7385_s16 + $0x3f4] sm:$0xf0]  ;;  %v5170_v29 = vor.u32 %v6481_v58, %v5169_v56 }
 0x8ec   : > { %4079 = vmatpush.bf16.msra.mxu2 %v5154_v39  ;;  %4048 = vmatmul.bf16.vlgmr.msrb.gmra.mxu3 %v8284_v1  ;;  %v6457_v39 = vld [vmem:[%s7385_s16 + $0x54] sm:$0xf0]  ;;  %v5409_v19 = vld [vmem:[%s7385_s16 + $0x2e8] sm:$0xf] }
 0x8ed   : > { %4092 = vmatpush.bf16.msra.mxu3 %v5282_v6  ;;  %v6094_v6 = vor.u32 %v6710_v57, %v6091_v5  ;;  %v5074_v43 = vor.u32 %v6457_v39, %v5073_v38  ;;  %v5537_v21 = vld [vmem:[%s7385_s16 + $0x3e8] sm:$0xf]  ;;  %v6605_v61 = vld [vmem:[%s7385_s16 + $0x4f4] sm:$0xf0] }
 0x8ee   : > { %4054 = vmatpush.bf16.msra.mxu0 %v6030_v45  ;;  %v6075_v45 = vld [vmem:[%s7385_s16 + $0x830] sm:$0xf0]  ;;  %v5665_v60 = vld [vmem:[%s7385_s16 + $0x4e8] sm:$0xf]  ;;  %v6637_v3 = vld [vmem:[%s7385_s16 + $0x5f4] sm:$0xf0] }
 0x8ef   : > { %4067 = vmatpush.bf16.msra.mxu1 %v6158_v46  ;;  %v5057_v46 = vld [vmem:[%s7385_s16 + $0x28] sm:$0xf]  ;;  %v6078_v14 = vor.u32 %v6706_v4, %v6075_v45  ;;  %v5666_v8 = vor.u32 %v6605_v61, %v5665_v60  ;;  %v6537_v13 = vld [vmem:[%s7385_s16 + $0x2d4] sm:$0xf0] }
 0x8f0   : > { %4080 = vmatpush.bf16.msra.mxu2 %v5138_v47  ;;  %v6453_v47 = vld [vmem:[%s7385_s16 + $0x34] sm:$0xf0]  ;;  %v5393_v11 = vld [vmem:[%s7385_s16 + $0x2c8] sm:$0xf] }
 0x8f1   : > { %4093 = vmatpush.bf16.msra.mxu3 %v5266_v51  ;;  %v6670_v51 = vld [vmem:[%s7385_s16 + $0x704] sm:$0xf]  ;;  %v5058_v15 = vor.u32 %v6453_v47, %v5057_v46  ;;  %v5521_v20 = vld [vmem:[%s7385_s16 + $0x3c8] sm:$0xf]  ;;  %v6633_v54 = vld [vmem:[%s7385_s16 + $0x5d4] sm:$0xf0]  ;;  %v5394_v57 = vor.u32 %v6537_v13, %v5393_v11 }
 0x8f2   : > { %4055 = vmatpush.bf16.msra.mxu0 %v6014_v18  ;;  %v5041_v18 = vld [vmem:[%s7385_s16 + $0x8] sm:$0xf]  ;;  %v5934_v32 = vor.u32 %v6670_v51, %v5931_v12  ;;  %v6533_v39 = vld [vmem:[%s7385_s16 + $0x2b4] sm:$0xf0] }
 0x8f3   : > { %4068 = vmatpush.bf16.msra.mxu1 %v6142_v17  ;;  %v5186_v17 = vor.u32 %v6485_v49, %v5185_v48  ;;  %v5777_v35 = vld [vmem:[%s7385_s16 + $0x5c8] sm:$0xf]  ;;  %v6629_v27 = vld [vmem:[%s7385_s16 + $0x5b4] sm:$0xf0] }
 0x8f4   : > { %4081 = vmatpush.bf16.msra.mxu2 %v5122_v55  ;;  %v6449_v55 = vld [vmem:[%s7385_s16 + $0x14] sm:$0xf0]  ;;  %v5377_v38 = vld [vmem:[%s7385_s16 + $0x2a8] sm:$0xf]  ;;  %v5778_v41 = vor.u32 %v6633_v54, %v5777_v35 }
 0x8f5   : > { %4094 = vmatpush.bf16.msra.mxu3 %v5250_v25  ;;  %v6541_v25 = vld [vmem:[%s7385_s16 + $0x2f4] sm:$0xf0]  ;;  %v5505_v40 = vld [vmem:[%s7385_s16 + $0x3a8] sm:$0xf]  ;;  %v5378_v4 = vor.u32 %v6533_v39, %v5377_v38 }
 0x8f6   : > { %4056 = vmatpush.bf16.msra.mxu0 %v5998_v2  ;;  %v6062_v2 = vor.u32 %v6702_v53, %v6059_v16  ;;  %v5410_v37 = vor.u32 %v6541_v25, %v5409_v19  ;;  %v5761_v44 = vld [vmem:[%s7385_s16 + $0x5a8] sm:$0xf]  ;;  %v6529_v47 = vld [vmem:[%s7385_s16 + $0x294] sm:$0xf0] }
 0x8f7   : > { %4069 = vmatpush.bf16.msra.mxu1 %v6126_v62  ;;  %v5042_v62 = vor.u32 %v6449_v55, %v5041_v18  ;;  %v5361_v46 = vld [vmem:[%s7385_s16 + $0x288] sm:$0xf]  ;;  %v5762_v49 = vor.u32 %v6629_v27, %v5761_v44  ;;  %v6593_v12 = vld [vmem:[%s7385_s16 + $0x494] sm:$0xf0] }
 0x8f8   : > { %4082 = vmatpush.bf16.msra.mxu2 %v5106_v63  ;;  %v5793_v63 = vld [vmem:[%s7385_s16 + $0x5e8] sm:$0xf]  ;;  %v5362_v53 = vor.u32 %v6529_v47, %v5361_v46  ;;  %v6525_v55 = vld [vmem:[%s7385_s16 + $0x274] sm:$0xf0] }
 0x8f9   : > { %4095 = vmatpush.bf16.msra.mxu3 %v5234_v7  ;;  %v5538_v7 = vor.u32 %v6573_v59, %v5537_v21  ;;  %v5794_v26 = vor.u32 %v6637_v3, %v5793_v63  ;;  %v5489_v48 = vld [vmem:[%s7385_s16 + $0x388] sm:$0xf]  ;;  %v6557_v19 = vld [vmem:[%s7385_s16 + $0x374] sm:$0xf0] }
 0x8fa   : > { %4057 = vmatpush.bf16.msra.mxu0 %v5982_v28  ;;  %v6569_v28 = vld [vmem:[%s7385_s16 + $0x3d4] sm:$0xf0]  ;;  %v5617_v51 = vld [vmem:[%s7385_s16 + $0x488] sm:$0xf] }
 0x8fb   : > { %4070 = vmatpush.bf16.msra.mxu1 %v6110_v30  ;;  %v5649_v30 = vld [vmem:[%s7385_s16 + $0x4c8] sm:$0xf]  ;;  %v5618_v18 = vor.u32 %v6593_v12, %v5617_v51  ;;  %v6589_v21 = vld [vmem:[%s7385_s16 + $0x474] sm:$0xf0] }
 0x8fc   : > { %4083 = vmatpush.bf16.msra.mxu2 %v5090_v34  ;;  %v6601_v34 = vld [vmem:[%s7385_s16 + $0x4d4] sm:$0xf0]  ;;  %v5473_v56 = vld [vmem:[%s7385_s16 + $0x368] sm:$0xf] }
 0x8fd   : > { %4096 = vmatpush.bf16.msra.mxu3 %v5218_v0  ;;  %v5522_v0 = vor.u32 %v6569_v28, %v5521_v20  ;;  %v5650_v5 = vor.u32 %v6601_v34, %v5649_v30  ;;  %v5601_v25 = vld [vmem:[%s7385_s16 + $0x468] sm:$0xf]  ;;  %v6621_v59 = vld [vmem:[%s7385_s16 + $0x574] sm:$0xf0]  ;;  %v5474_v61 = vor.u32 %v6557_v19, %v5473_v56 }
 0x8fe   : > { %4058 = vmatpush.bf16.msra.mxu0 %v5966_v42  ;;  %v6565_v42 = vld [vmem:[%s7385_s16 + $0x3b4] sm:$0xf0]  ;;  %v5457_v3 = vld [vmem:[%s7385_s16 + $0x348] sm:$0xf] }
 0x8ff   : > { %4071 = vmatpush.bf16.msra.mxu1 %v6094_v6  ;;  %v5633_v6 = vld [vmem:[%s7385_s16 + $0x4a8] sm:$0xf]  ;;  %v6521_v63 = vld [vmem:[%s7385_s16 + $0x254] sm:$0xf0] }
 0x900   : > { %4084 = vmatpush.bf16.msra.mxu2 %v5074_v43  ;;  %v6597_v43 = vld [vmem:[%s7385_s16 + $0x4b4] sm:$0xf0]  ;;  %v5713_v11 = vld [vmem:[%s7385_s16 + $0x548] sm:$0xf] }
 0x901   : > { %4097 = vmatpush.bf16.msra.mxu3 %v5202_v31  ;;  %v5506_v31 = vor.u32 %v6565_v42, %v5505_v40  ;;  %v5634_v45 = vor.u32 %v6597_v43, %v5633_v6  ;;  %v6617_v13 = vld [vmem:[%s7385_s16 + $0x554] sm:$0xf0]  ;;  %v5313_v30 = vld [vmem:[%s7385_s16 + $0x228] sm:$0xf] }
 0x902   : > { %4059 = vmatpush.bf16.msra.mxu0 %v5950_v50  ;;  %v6561_v50 = vld [vmem:[%s7385_s16 + $0x394] sm:$0xf0]  ;;  %v5441_v35 = vld [vmem:[%s7385_s16 + $0x328] sm:$0xf]  ;;  %v5714_v54 = vor.u32 %v6617_v13, %v5713_v11 }
 0x903   : > { %4072 = vmatpush.bf16.msra.mxu1 %v6078_v14  ;;  %v5745_v14 = vld [vmem:[%s7385_s16 + $0x588] sm:$0xf]  ;;  %v5490_v16 = vor.u32 %v6561_v50, %v5489_v48  ;;  %v6517_v34 = vld [vmem:[%s7385_s16 + $0x234] sm:$0xf0] }
 0x904   : > { %4085 = vmatpush.bf16.msra.mxu2 %v5058_v15  ;;  %v6625_v15 = vld [vmem:[%s7385_s16 + $0x594] sm:$0xf0]  ;;  %v5697_v38 = vld [vmem:[%s7385_s16 + $0x528] sm:$0xf]  ;;  %v5314_v40 = vor.u32 %v6517_v34, %v5313_v30 }
 0x905   : > { %4098 = vmatpush.bf16.msra.mxu3 %v5186_v17  ;;  %v5345_v17 = vld [vmem:[%s7385_s16 + $0x268] sm:$0xf]  ;;  %v5746_v58 = vor.u32 %v6625_v15, %v5745_v14  ;;  %v6613_v39 = vld [vmem:[%s7385_s16 + $0x534] sm:$0xf0] }
 0x906   : > { %4060 = vmatpush.bf16.msra.mxu0 %v5934_v32  ;;  %v5729_v32 = vld [vmem:[%s7385_s16 + $0x568] sm:$0xf]  ;;  %v5346_v60 = vor.u32 %v6525_v55, %v5345_v17  ;;  %v6513_v42 = vld [vmem:[%s7385_s16 + $0x214] sm:$0xf0]  ;;  %v6475_v17 = vld [vmem:[%s7385_s16 + $0xec] sm:$0xf] }
 0x907   : > { %4073 = vmatpush.bf16.msra.mxu1 %v6062_v2  ;;  %v5602_v2 = vor.u32 %v6589_v21, %v5601_v25  ;;  %v5425_v44 = vld [vmem:[%s7385_s16 + $0x308] sm:$0xf]  ;;  %v6545_v27 = vld [vmem:[%s7385_s16 + $0x314] sm:$0xf0]  ;;  %v5155_v55 = vld [vmem:[%s7385_s16 + $0xf8] sm:$0xf0] }
 0x908   : > { %4086 = vmatpush.bf16.msra.mxu2 %v5042_v62  ;;  %v5329_v62 = vld [vmem:[%s7385_s16 + $0x248] sm:$0xf]  ;;  %v6609_v47 = vld [vmem:[%s7385_s16 + $0x514] sm:$0xf0] }
 0x909   : > { %4099 = vmatpush.bf16.msra.mxu3 %v5170_v29  ;;  %4061 = vmatmul.bf16.vlgmr.msra.gmra.mxu0 %v8294_v33  ;;  %v5730_v29 = vor.u32 %v6621_v59, %v5729_v32  ;;  %v5330_v20 = vor.u32 %v6521_v63, %v5329_v62  ;;  %v5681_v46 = vld [vmem:[%s7385_s16 + $0x508] sm:$0xf]  ;;  %v6701_v12 = vld [vmem:[%s7385_s16 + $0x7f4] sm:$0xf0] }
 0x90a   : > { %4105 = vmatpush.bf16.msrb.mxu0 %v5410_v37  ;;  %4074 = vmatmul.bf16.vlgmr.msra.gmra.mxu1 %v8355_v52  ;;  %v6553_v37 = vld [vmem:[%s7385_s16 + $0x354] sm:$0xf0]  ;;  %v5921_v48 = vld [vmem:[%s7385_s16 + $0x6e8] sm:$0xf] }
 0x90b   : > { %4118 = vmatpush.bf16.msrb.mxu1 %v5538_v7  ;;  %4087 = vmatmul.bf16.vlgmr.msra.gmra.mxu2 %v8241_v10  ;;  %v5585_v7 = vld [vmem:[%s7385_s16 + $0x448] sm:$0xf]  ;;  %v6733_v15 = vld [vmem:[%s7385_s16 + $0x8f4] sm:$0xf0] }
 0x90c   : > { %4131 = vmatpush.bf16.msrb.mxu2 %v5666_v8  ;;  %4100 = vmatmul.bf16.vlgmr.msra.gmra.mxu3 %v8245_v23  ;;  %v6585_v8 = vld [vmem:[%s7385_s16 + $0x454] sm:$0xf0]  ;;  %v6049_v50 = vld [vmem:[%s7385_s16 + $0x7e8] sm:$0xf] }
 0x90d   : > { %4144 = vmatpush.bf16.msrb.mxu3 %v5794_v26  ;;  %v5458_v26 = vor.u32 %v6553_v37, %v5457_v3  ;;  %v5586_v28 = vor.u32 %v6585_v8, %v5585_v7  ;;  %v6177_v14 = vld [vmem:[%s7385_s16 + $0x8e8] sm:$0xf]  ;;  %v6050_v21 = vor.u32 %v6701_v12, %v6049_v50  ;;  %v6697_v62 = vld [vmem:[%s7385_s16 + $0x7d4] sm:$0xf0]  ;;  %v5139_v37 = vld [vmem:[%s7385_s16 + $0xd8] sm:$0xf0] }
 0x90e   : > { %4106 = vmatpush.bf16.msrb.mxu0 %v5394_v57  ;;  %v6549_v57 = vld [vmem:[%s7385_s16 + $0x334] sm:$0xf0]  ;;  %v6178_v32 = vor.u32 %v6733_v15, %v6177_v14  ;;  %v5905_v59 = vld [vmem:[%s7385_s16 + $0x6c8] sm:$0xf] }
 0x90f   : > { %4119 = vmatpush.bf16.msrb.mxu1 %v5522_v0  ;;  %v5569_v0 = vld [vmem:[%s7385_s16 + $0x428] sm:$0xf]  ;;  %v5442_v6 = vor.u32 %v6549_v57, %v5441_v35  ;;  %v6729_v3 = vld [vmem:[%s7385_s16 + $0x8d4] sm:$0xf0] }
 0x910   : > { %4132 = vmatpush.bf16.msrb.mxu2 %v5650_v5  ;;  %v6581_v5 = vld [vmem:[%s7385_s16 + $0x434] sm:$0xf0]  ;;  %v6161_v63 = vld [vmem:[%s7385_s16 + $0x8c8] sm:$0xf] }
 0x911   : > { %4145 = vmatpush.bf16.msrb.mxu3 %v5778_v41  ;;  %v5297_v41 = vld [vmem:[%s7385_s16 + $0x208] sm:$0xf]  ;;  %v5570_v43 = vor.u32 %v6581_v5, %v5569_v0  ;;  %v6661_v30 = vld [vmem:[%s7385_s16 + $0x6b4] sm:$0xf0] }
 0x912   : > { %4107 = vmatpush.bf16.msrb.mxu0 %v5378_v4  ;;  %v5553_v4 = vld [vmem:[%s7385_s16 + $0x408] sm:$0xf]  ;;  %v5298_v51 = vor.u32 %v6513_v42, %v5297_v41  ;;  %v6693_v57 = vld [vmem:[%s7385_s16 + $0x7b4] sm:$0xf0] }
 0x913   : > { %4120 = vmatpush.bf16.msrb.mxu1 %v5506_v31  ;;  %v5698_v31 = vor.u32 %v6613_v39, %v5697_v38  ;;  %v6017_v34 = vld [vmem:[%s7385_s16 + $0x7a8] sm:$0xf]  ;;  %v6725_v5 = vld [vmem:[%s7385_s16 + $0x8b4] sm:$0xf0]  ;;  %v6467_v39 = vld [vmem:[%s7385_s16 + $0xac] sm:$0xf] }
 0x914   : > { %4133 = vmatpush.bf16.msrb.mxu2 %v5634_v45  ;;  %v6577_v45 = vld [vmem:[%s7385_s16 + $0x414] sm:$0xf0]  ;;  %v6145_v0 = vld [vmem:[%s7385_s16 + $0x8a8] sm:$0xf] }
 0x915   : > { %4146 = vmatpush.bf16.msrb.mxu3 %v5762_v49  ;;  %v6669_v49 = vld [vmem:[%s7385_s16 + $0x6f4] sm:$0xf0] }
 0x916   : > { %4108 = vmatpush.bf16.msrb.mxu0 %v5362_v53  ;;  %v5922_v19 = vor.u32 %v6669_v49, %v5921_v48  ;;  %v6463_v48 = vld [vmem:[%s7385_s16 + $0x8c] sm:$0xf]  ;;  %v5107_v49 = vld [vmem:[%s7385_s16 + $0x98] sm:$0xf0] }
 0x917   : > { %4121 = vmatpush.bf16.msrb.mxu1 %v5490_v16  ;;  %v5426_v16 = vor.u32 %v6545_v27, %v5425_v44  ;;  %v5873_v44 = vld [vmem:[%s7385_s16 + $0x688] sm:$0xf]  ;;  %v6657_v27 = vld [vmem:[%s7385_s16 + $0x694] sm:$0xf0] }
 0x918   : > { %4134 = vmatpush.bf16.msrb.mxu2 %v5618_v18  ;;  %v5554_v18 = vor.u32 %v6577_v45, %v5553_v4  ;;  %v6001_v4 = vld [vmem:[%s7385_s16 + $0x788] sm:$0xf]  ;;  %v6689_v45 = vld [vmem:[%s7385_s16 + $0x794] sm:$0xf0] }
 0x919   : > { %4147 = vmatpush.bf16.msrb.mxu3 %v5746_v58  ;;  %v5682_v58 = vor.u32 %v6609_v47, %v5681_v46  ;;  %v6129_v46 = vld [vmem:[%s7385_s16 + $0x888] sm:$0xf]  ;;  %v6721_v47 = vld [vmem:[%s7385_s16 + $0x894] sm:$0xf0]  ;;  %v6002_v14 = vor.u32 %v6689_v45, %v6001_v4 }
 0x91a   : > { %4109 = vmatpush.bf16.msrb.mxu0 %v5346_v60  ;;  %v6665_v60 = vld [vmem:[%s7385_s16 + $0x6d4] sm:$0xf0]  ;;  %v6130_v15 = vor.u32 %v6721_v47, %v6129_v46  ;;  %v5809_v4 = vld [vmem:[%s7385_s16 + $0x608] sm:$0xf] }
 0x91b   : > { %4122 = vmatpush.bf16.msrb.mxu1 %v5474_v61  ;;  %v6033_v61 = vld [vmem:[%s7385_s16 + $0x7c8] sm:$0xf]  ;;  %v5906_v8 = vor.u32 %v6665_v60, %v5905_v59 }
 0x91c   : > { %4135 = vmatpush.bf16.msrb.mxu2 %v5602_v2  ;;  %v5158_v2 = vor.u32 %v6475_v17, %v5155_v55  ;;  %v5110_v17 = vor.u32 %v6463_v48, %v5107_v49  ;;  %v6685_v55 = vld [vmem:[%s7385_s16 + $0x774] sm:$0xf0]  ;;  %v5937_v48 = vld [vmem:[%s7385_s16 + $0x708] sm:$0xf] }
 0x91d   : > { %4148 = vmatpush.bf16.msrb.mxu3 %v5730_v29  ;;  %v3854_v53 = vpop.f32.mrf.mxu0  ;;  %v6471_v29 = vld [vmem:[%s7385_s16 + $0xcc] sm:$0xf]  ;;  %v6673_v49 = vld [vmem:[%s7385_s16 + $0x714] sm:$0xf0] }
 0x91e   : > { %4110 = vmatpush.bf16.msrb.mxu0 %v5330_v20  ;;  %v3867_v56 = vpop.f32.mrf.mxu1  ;;  %v6034_v20 = vor.u32 %v6697_v62, %v6033_v61  ;;  %v5142_v35 = vor.u32 %v6471_v29, %v5139_v37  ;;  %v5841_v62 = vld [vmem:[%s7385_s16 + $0x648] sm:$0xf] }
 0x91f   : > { %4123 = vmatpush.bf16.msrb.mxu1 %v5458_v26  ;;  %v3868_v25 = vadd.f32 %v3867_v56, %v3854_v53  ;;  %v6162_v26 = vor.u32 %v6729_v3, %v6161_v63  ;;  %v5857_v53 = vld [vmem:[%s7385_s16 + $0x668] sm:$0xf]  ;;  %v6649_v63 = vld [vmem:[%s7385_s16 + $0x654] sm:$0xf0] }
 0x920   : > { %4136 = vmatpush.bf16.msrb.mxu2 %v5586_v28  ;;  %v5889_v28 = vld [vmem:[%s7385_s16 + $0x6a8] sm:$0xf] }
 0x921   : > { %4149 = vmatpush.bf16.msrb.mxu3 %v5714_v54  ;;  %v5890_v42 = vor.u32 %v6661_v30, %v5889_v28  ;;  %v6113_v56 = vld [vmem:[%s7385_s16 + $0x868] sm:$0xf]  ;;  %v5842_v28 = vor.u32 %v6649_v63, %v5841_v62 }
 0x922   : > { %4111 = vmatpush.bf16.msrb.mxu0 %v5314_v40  ;;  %v3880_v7 = vpop.f32.mrf.mxu2  ;;  %v5123_v40 = vld [vmem:[%s7385_s16 + $0xb8] sm:$0xf0]  ;;  %v5969_v3 = vld [vmem:[%s7385_s16 + $0x748] sm:$0xf] }
 0x923   : > { %4124 = vmatpush.bf16.msrb.mxu1 %v5442_v6  ;;  %v3881_v11 = vadd.f32 %v3880_v7, %v3868_v25  ;;  %v3893_v13 = vpop.f32.mrf.mxu3  ;;  %v6018_v6 = vor.u32 %v6693_v57, %v6017_v34  ;;  %v5091_v25 = vld [vmem:[%s7385_s16 + $0x78] sm:$0xf0]  ;;  %v6681_v7 = vld [vmem:[%s7385_s16 + $0x754] sm:$0xf0] }
 0x924   : > { %4137 = vmatpush.bf16.msrb.mxu2 %v5570_v43  ;;  %v6146_v43 = vor.u32 %v6725_v5, %v6145_v0  ;;  %v5970_v34 = vor.u32 %v6681_v7, %v5969_v3  ;;  %v6645_v57 = vld [vmem:[%s7385_s16 + $0x634] sm:$0xf0]  ;;  %v5953_v0 = vld [vmem:[%s7385_s16 + $0x728] sm:$0xf]  ;;  %v6503_v3 = vld [vmem:[%s7385_s16 + $0x1cc] sm:$0xf] }
 0x925   : > { %4150 = vmatpush.bf16.msrb.mxu3 %v5698_v31  ;;  %v3894_v54 = vadd.f32 %v3893_v13, %v3881_v11  ;;  %v3856_v38 = vpop.f32.mrf.mxu0  ;;  %v5126_v31 = vor.u32 %v6467_v39, %v5123_v40  ;;  %v6713_v11 = vld [vmem:[%s7385_s16 + $0x854] sm:$0xf0]  ;;  %v6455_v13 = vld [vmem:[%s7385_s16 + $0x4c] sm:$0xf]  ;;  %v6081_v40 = vld [vmem:[%s7385_s16 + $0x828] sm:$0xf] }
 0x926   : > { %4112 = vmatpush.bf16.msrb.mxu0 %v5298_v51  ;;  %v3869_v41 = vpop.f32.mrf.mxu1  ;;  %v5874_v51 = vor.u32 %v6657_v27, %v5873_v44  ;;  %v6677_v39 = vld [vmem:[%s7385_s16 + $0x734] sm:$0xf0] }
 0x927   : > { %4125 = vmatpush.bf16.msrb.mxu1 %v5426_v16  ;;  %v6653_v16 = vld [vmem:[%s7385_s16 + $0x674] sm:$0xf0]  ;;  %v5954_v46 = vor.u32 %v6677_v39, %v5953_v0  ;;  %v5507_v39 = vld [vmem:[%s7385_s16 + $0x3b8] sm:$0xf0] }
 0x928   : > { %4138 = vmatpush.bf16.msrb.mxu2 %v5554_v18  ;;  %v5985_v18 = vld [vmem:[%s7385_s16 + $0x768] sm:$0xf]  ;;  %v6709_v41 = vld [vmem:[%s7385_s16 + $0x834] sm:$0xf0] }
 0x929   : > { %4151 = vmatpush.bf16.msrb.mxu3 %v5682_v58  ;;  %4113 = vmatmul.bf16.vlgmr.msrb.gmra.mxu0 %v8239_v9  ;;  %v6717_v58 = vld [vmem:[%s7385_s16 + $0x874] sm:$0xf0]  ;;  %v5986_v61 = vor.u32 %v6685_v55, %v5985_v18  ;;  %v6082_v47 = vor.u32 %v6709_v41, %v6081_v40  ;;  %v6539_v18 = vld [vmem:[%s7385_s16 + $0x2ec] sm:$0xf]  ;;  %v5635_v41 = vld [vmem:[%s7385_s16 + $0x4b8] sm:$0xf0] }
 0x92a   : > { %4157 = vmatpush.bf16.msra.mxu0 %v5922_v19  ;;  %4126 = vmatmul.bf16.vlgmr.msrb.gmra.mxu1 %v8243_v22  ;;  %v3882_v50 = vpop.f32.mrf.mxu2  ;;  %v6459_v19 = vld [vmem:[%s7385_s16 + $0x6c] sm:$0xf] }
 0x92b   : > { %4170 = vmatpush.bf16.msra.mxu1 %v6050_v21  ;;  %4139 = vmatmul.bf16.vlgmr.msrb.gmra.mxu2 %v8289_v24  ;;  %v3895_v12 = vpop.f32.mrf.mxu3  ;;  %v5094_v29 = vor.u32 %v6459_v19, %v5091_v25  ;;  %v6065_v50 = vld [vmem:[%s7385_s16 + $0x808] sm:$0xf]  ;;  %v5539_v19 = vld [vmem:[%s7385_s16 + $0x3f8] sm:$0xf0]  ;;  %v5938_v25 = vor.u32 %v6673_v49, %v5937_v48  ;;  %v6595_v40 = vld [vmem:[%s7385_s16 + $0x4ac] sm:$0xf] }
 0x92c   : > { %4183 = vmatpush.bf16.msra.mxu2 %v6178_v32  ;;  %4152 = vmatmul.bf16.vlgmr.msrb.gmra.mxu3 %v8298_v36  ;;  %v5858_v32 = vor.u32 %v6653_v16, %v5857_v53  ;;  %v6705_v12 = vld [vmem:[%s7385_s16 + $0x814] sm:$0xf0]  ;;  %v6507_v53 = vld [vmem:[%s7385_s16 + $0x1ec] sm:$0xf]  ;;  %v5283_v16 = vld [vmem:[%s7385_s16 + $0x1f8] sm:$0xf0] }
 0x92d   : > { %4196 = vmatpush.bf16.msra.mxu3 %v5158_v2  ;;  %v3906_v21 = vpop.f32.mrf.mxu0  ;;  %v6114_v2 = vor.u32 %v6717_v58, %v6113_v56  ;;  %v5411_v56 = vld [vmem:[%s7385_s16 + $0x2f8] sm:$0xf0]  ;;  %v6571_v58 = vld [vmem:[%s7385_s16 + $0x3ec] sm:$0xf] }
 0x92e   : > { %4158 = vmatpush.bf16.msra.mxu0 %v5906_v8  ;;  %v3907_v59 = vadd.f32 %v3906_v21, %v3894_v54  ;;  %v3919_v60 = vpop.f32.mrf.mxu1  ;;  %v6097_v8 = vld [vmem:[%s7385_s16 + $0x848] sm:$0xf]  ;;  %v6066_v21 = vor.u32 %v6705_v12, %v6065_v50  ;;  %v5414_v62 = vor.u32 %v6539_v18, %v5411_v56  ;;  %v5542_v63 = vor.u32 %v6571_v58, %v5539_v19  ;;  %v5491_v48 = vld [vmem:[%s7385_s16 + $0x398] sm:$0xf0]  ;;  %v6591_v50 = vld [vmem:[%s7385_s16 + $0x48c] sm:$0xf] }
 0x92f   : > { %4171 = vmatpush.bf16.msra.mxu1 %v6034_v20  ;;  %v5075_v20 = vld [vmem:[%s7385_s16 + $0x58] sm:$0xf0]  ;;  %v5825_v54 = vld [vmem:[%s7385_s16 + $0x628] sm:$0xf]  ;;  %v6523_v18 = vld [vmem:[%s7385_s16 + $0x26c] sm:$0xf] }
 0x930   : > { %4184 = vmatpush.bf16.msra.mxu2 %v6162_v26  ;;  %v3920_v37 = vadd.f32 %v3919_v60, %v3907_v59  ;;  %v5078_v5 = vor.u32 %v6455_v13, %v5075_v20  ;;  %v5826_v27 = vor.u32 %v6645_v57, %v5825_v54  ;;  %v5667_v59 = vld [vmem:[%s7385_s16 + $0x4f8] sm:$0xf0]  ;;  %v6599_v20 = vld [vmem:[%s7385_s16 + $0x4cc] sm:$0xf] }
 0x931   : > { %4197 = vmatpush.bf16.msra.mxu3 %v5142_v35  ;;  %v6098_v35 = vor.u32 %v6713_v11, %v6097_v8  ;;  %v5395_v8 = vld [vmem:[%s7385_s16 + $0x2d8] sm:$0xf0]  ;;  %v6567_v11 = vld [vmem:[%s7385_s16 + $0x3cc] sm:$0xf] }
 0x932   : > { %4159 = vmatpush.bf16.msra.mxu0 %v5890_v42  ;;  %v3932_v26 = vpop.f32.mrf.mxu2  ;;  %v5523_v13 = vld [vmem:[%s7385_s16 + $0x3d8] sm:$0xf0]  ;;  %v6531_v57 = vld [vmem:[%s7385_s16 + $0x2ac] sm:$0xf] }
 0x933   : > { %4172 = vmatpush.bf16.msra.mxu1 %v6018_v6  ;;  %v3933_v30 = vadd.f32 %v3932_v26, %v3920_v37  ;;  %v6451_v6 = vld [vmem:[%s7385_s16 + $0x2c] sm:$0xf]  ;;  %v5651_v26 = vld [vmem:[%s7385_s16 + $0x4d8] sm:$0xf0] }
 0x934   : > { %4185 = vmatpush.bf16.msra.mxu2 %v6146_v43  ;;  %v5059_v43 = vld [vmem:[%s7385_s16 + $0x38] sm:$0xf0]  ;;  %v6535_v37 = vld [vmem:[%s7385_s16 + $0x2cc] sm:$0xf]  ;;  %v5654_v0 = vor.u32 %v6599_v20, %v5651_v26 }
 0x935   : > { %4198 = vmatpush.bf16.msra.mxu3 %v5126_v31  ;;  %v3945_v38 = vpop.f32.mrf.mxu3  ;;  %v3908_v44 = vpop.f32.mrf.mxu0  ;;  %v6641_v31 = vld [vmem:[%s7385_s16 + $0x614] sm:$0xf0]  ;;  %v5251_v54 = vld [vmem:[%s7385_s16 + $0x1b8] sm:$0xf0]  ;;  %v6555_v58 = vld [vmem:[%s7385_s16 + $0x36c] sm:$0xf] }
 0x936   : > { %4160 = vmatpush.bf16.msra.mxu0 %v5874_v51  ;;  %v8608_v42 = vadd.f32 %v3945_v38, %v3933_v30  ;;  %v3921_v45 = vpop.f32.mrf.mxu1  ;;  %v5062_v51 = vor.u32 %v6451_v6, %v5059_v43  ;;  %v5810_v55 = vor.u32 %v6641_v31, %v5809_v4  ;;  %v5398_v30 = vor.u32 %v6535_v37, %v5395_v8  ;;  %v6563_v38 = vld [vmem:[%s7385_s16 + $0x3ac] sm:$0xf]  ;;  %v5235_v4 = vld [vmem:[%s7385_s16 + $0x198] sm:$0xf0] }
 0x937   : > { %4173 = vmatpush.bf16.msra.mxu1 %v6002_v14  ;;  %v6447_v14 = vld [vmem:[%s7385_s16 + $0xc] sm:$0xf]  ;;  %v5510_v44 = vor.u32 %v6563_v38, %v5507_v39  ;;  %v5638_v45 = vor.u32 %v6595_v40, %v5635_v41  ;;  %v5347_v56 = vld [vmem:[%s7385_s16 + $0x278] sm:$0xf0] }
 0x938   : > { %4186 = vmatpush.bf16.msra.mxu2 %v6130_v15  ;;  %v5043_v15 = vld [vmem:[%s7385_s16 + $0x18] sm:$0xf0]  ;;  %v6527_v31 = vld [vmem:[%s7385_s16 + $0x28c] sm:$0xf] }
 0x939   : > { %4199 = vmatpush.bf16.msra.mxu3 %v5110_v17  ;;  %v5046_v60 = vor.u32 %v6447_v14, %v5043_v15  ;;  %v6587_v19 = vld [vmem:[%s7385_s16 + $0x46c] sm:$0xf]  ;;  %v5315_v38 = vld [vmem:[%s7385_s16 + $0x238] sm:$0xf0] }
 0x93a   : > { %4161 = vmatpush.bf16.msra.mxu0 %v5858_v32  ;;  %v3934_v17 = vpop.f32.mrf.mxu2  ;;  %v6603_v32 = vld [vmem:[%s7385_s16 + $0x4ec] sm:$0xf]  ;;  %v5443_v40 = vld [vmem:[%s7385_s16 + $0x338] sm:$0xf0] }
 0x93b   : > { %4174 = vmatpush.bf16.msra.mxu1 %v5986_v61  ;;  %v5286_v61 = vor.u32 %v6507_v53, %v5283_v16  ;;  %v5670_v7 = vor.u32 %v6603_v32, %v5667_v59  ;;  %v6491_v53 = vld [vmem:[%s7385_s16 + $0x16c] sm:$0xf]  ;;  %v5219_v16 = vld [vmem:[%s7385_s16 + $0x178] sm:$0xf0]  ;;  %v5350_v32 = vor.u32 %v6523_v18, %v5347_v56 }
 0x93c   : > { %4187 = vmatpush.bf16.msra.mxu2 %v6114_v2  ;;  %v6583_v8 = vld [vmem:[%s7385_s16 + $0x44c] sm:$0xf]  ;;  %v6051_v56 = vld [vmem:[%s7385_s16 + $0x7f8] sm:$0xf0] }
 0x93d   : > { %4200 = vmatpush.bf16.msra.mxu3 %v5094_v29  ;;  %v3947_v2 = vpop.f32.mrf.mxu3  ;;  %v5267_v29 = vld [vmem:[%s7385_s16 + $0x1d8] sm:$0xf0]  ;;  %v6547_v39 = vld [vmem:[%s7385_s16 + $0x32c] sm:$0xf] }
 0x93e   : > { %4162 = vmatpush.bf16.msra.mxu0 %v5842_v28  ;;  %v5270_v28 = vor.u32 %v6503_v3, %v5267_v29  ;;  %v6519_v2 = vld [vmem:[%s7385_s16 + $0x24c] sm:$0xf]  ;;  %v5459_v29 = vld [vmem:[%s7385_s16 + $0x358] sm:$0xf0] }
 0x93f   : > { %4175 = vmatpush.bf16.msra.mxu1 %v5970_v34  ;;  %v5526_v34 = vor.u32 %v6567_v11, %v5523_v13  ;;  %v6551_v3 = vld [vmem:[%s7385_s16 + $0x34c] sm:$0xf]  ;;  %v5587_v11 = vld [vmem:[%s7385_s16 + $0x458] sm:$0xf0] }
 0x940   : > { %4188 = vmatpush.bf16.msra.mxu2 %v6098_v35  ;;  %v6499_v35 = vld [vmem:[%s7385_s16 + $0x1ac] sm:$0xf] }
 0x941   : > { %4201 = vmatpush.bf16.msra.mxu3 %v5078_v5  ;;  %v5379_v5 = vld [vmem:[%s7385_s16 + $0x2b8] sm:$0xf0]  ;;  %v5254_v6 = vor.u32 %v6499_v35, %v5251_v54  ;;  %v6515_v54 = vld [vmem:[%s7385_s16 + $0x22c] sm:$0xf] }
 0x942   : > { %4163 = vmatpush.bf16.msra.mxu0 %v5826_v27  ;;  %v5382_v43 = vor.u32 %v6531_v57, %v5379_v5  ;;  %v6495_v27 = vld [vmem:[%s7385_s16 + $0x18c] sm:$0xf]  ;;  %v5187_v35 = vld [vmem:[%s7385_s16 + $0x138] sm:$0xf0]  ;;  %v5590_v5 = vor.u32 %v6583_v8, %v5587_v11 }
 0x943   : > { %4176 = vmatpush.bf16.msra.mxu1 %v5954_v46  ;;  %v5363_v46 = vld [vmem:[%s7385_s16 + $0x298] sm:$0xf0]  ;;  %v5238_v12 = vor.u32 %v6495_v27, %v5235_v4  ;;  %v6579_v41 = vld [vmem:[%s7385_s16 + $0x42c] sm:$0xf]  ;;  %v5318_v4 = vor.u32 %v6515_v54, %v5315_v38 }
 0x944   : > { %4189 = vmatpush.bf16.msra.mxu2 %v6082_v47  ;;  %v6559_v47 = vld [vmem:[%s7385_s16 + $0x38c] sm:$0xf]  ;;  %v5366_v14 = vor.u32 %v6527_v31, %v5363_v46  ;;  %v5171_v27 = vld [vmem:[%s7385_s16 + $0x118] sm:$0xf0]  ;;  %v5446_v31 = vor.u32 %v6547_v39, %v5443_v40 }
 0x945   : > { %4202 = vmatpush.bf16.msra.mxu3 %v5062_v51  ;;  %v5494_v15 = vor.u32 %v6559_v47, %v5491_v48  ;;  %v5299_v46 = vld [vmem:[%s7385_s16 + $0x218] sm:$0xf0]  ;;  %v6543_v47 = vld [vmem:[%s7385_s16 + $0x30c] sm:$0xf] }
 0x946   : > { %4164 = vmatpush.bf16.msra.mxu0 %v5810_v55  ;;  %v3958_v49 = vpop.f32.mrf.mxu0  ;;  %v6163_v8 = vld [vmem:[%s7385_s16 + $0x8d8] sm:$0xf0]  ;;  %v6691_v54 = vld [vmem:[%s7385_s16 + $0x7ac] sm:$0xf] }
 0x947   : > { %4177 = vmatpush.bf16.msra.mxu1 %v5938_v25  ;;  %v8657_v51 = vadd.f32 %v3958_v49, %v8608_v42  ;;  %v3971_v17 = vpop.f32.mrf.mxu1  ;;  %v5475_v42 = vld [vmem:[%s7385_s16 + $0x378] sm:$0xf0] }
 0x948   : > { %4190 = vmatpush.bf16.msra.mxu2 %v6066_v21  ;;  %v5603_v25 = vld [vmem:[%s7385_s16 + $0x478] sm:$0xf0]  ;;  %v5222_v21 = vor.u32 %v6491_v53, %v5219_v16  ;;  %v5478_v59 = vor.u32 %v6555_v58, %v5475_v42  ;;  %v6667_v16 = vld [vmem:[%s7385_s16 + $0x6ec] sm:$0xf] }
 0x949   : > { %4203 = vmatpush.bf16.msra.mxu3 %v5046_v60  ;;  %4165 = vmatmul.bf16.vlgmr.msra.gmra.mxu0 %v8284_v1  ;;  %v6487_v60 = vld [vmem:[%s7385_s16 + $0x14c] sm:$0xf]  ;;  %v5427_v49 = vld [vmem:[%s7385_s16 + $0x318] sm:$0xf0] }
 0x94a   : > { %4209 = vmatpush.bf16.msrb.mxu0 %v5286_v61  ;;  %4178 = vmatmul.bf16.vlgmr.msra.gmra.mxu1 %v8294_v33  ;;  %v5203_v61 = vld [vmem:[%s7385_s16 + $0x158] sm:$0xf0]  ;;  %v5430_v42 = vor.u32 %v6543_v47, %v5427_v49 }
 0x94b   : > { %4222 = vmatpush.bf16.msrb.mxu1 %v5414_v62  ;;  %4191 = vmatmul.bf16.vlgmr.msra.gmra.mxu2 %v8355_v52  ;;  %v5606_v62 = vor.u32 %v6587_v19, %v5603_v25  ;;  %v5206_v26 = vor.u32 %v6487_v60, %v5203_v61  ;;  %v5795_v53 = vld [vmem:[%s7385_s16 + $0x5f8] sm:$0xf0]  ;;  %v6731_v19 = vld [vmem:[%s7385_s16 + $0x8ec] sm:$0xf] }
 0x94c   : > { %4235 = vmatpush.bf16.msrb.mxu2 %v5542_v63  ;;  %4204 = vmatmul.bf16.vlgmr.msra.gmra.mxu3 %v8241_v10  ;;  %v5619_v10 = vld [vmem:[%s7385_s16 + $0x498] sm:$0xf0]  ;;  %v6631_v61 = vld [vmem:[%s7385_s16 + $0x5cc] sm:$0xf] }
 0x94d   : > { %4248 = vmatpush.bf16.msrb.mxu3 %v5670_v7  ;;  %v5622_v55 = vor.u32 %v6591_v50, %v5619_v10  ;;  %v5331_v63 = vld [vmem:[%s7385_s16 + $0x258] sm:$0xf0]  ;;  %v6575_v50 = vld [vmem:[%s7385_s16 + $0x40c] sm:$0xf] }
 0x94e   : > { %4210 = vmatpush.bf16.msrb.mxu0 %v5270_v28  ;;  %v3984_v37 = vpop.f32.mrf.mxu2  ;;  %v3960_v20 = vpop.f32.mrf.mxu0  ;;  %v5334_v28 = vor.u32 %v6519_v2, %v5331_v63  ;;  %v5555_v10 = vld [vmem:[%s7385_s16 + $0x418] sm:$0xf0] }
 0x94f   : > { %4223 = vmatpush.bf16.msrb.mxu1 %v5398_v30  ;;  %v3997_v7 = vpop.f32.mrf.mxu3  ;;  %v3985_v13 = vadd.f32 %v3984_v37, %v3971_v17  ;;  %v5462_v30 = vor.u32 %v6551_v3, %v5459_v29  ;;  %v5923_v17 = vld [vmem:[%s7385_s16 + $0x6f8] sm:$0xf0]  ;;  %v6695_v29 = vld [vmem:[%s7385_s16 + $0x7cc] sm:$0xf] }
 0x950   : > { %4236 = vmatpush.bf16.msrb.mxu2 %v5526_v34  ;;  %v6483_v34 = vld [vmem:[%s7385_s16 + $0x12c] sm:$0xf]  ;;  %v6179_v25 = vld [vmem:[%s7385_s16 + $0x8f8] sm:$0xf0] }
 0x951   : > { %4249 = vmatpush.bf16.msrb.mxu3 %v5654_v0  ;;  %v8678_v57 = vadd.f32 %v3997_v7, %v3985_v13  ;;  %v3973_v0 = vpop.f32.mrf.mxu1  ;;  %v5779_v2 = vld [vmem:[%s7385_s16 + $0x5d8] sm:$0xf0]  ;;  %v6182_v63 = vor.u32 %v6731_v19, %v6179_v25  ;;  %v6727_v7 = vld [vmem:[%s7385_s16 + $0x8cc] sm:$0xf] }
 0x952   : > { %4211 = vmatpush.bf16.msrb.mxu0 %v5254_v6  ;;  %v5571_v6 = vld [vmem:[%s7385_s16 + $0x438] sm:$0xf0]  ;;  %v5782_v11 = vor.u32 %v6631_v61, %v5779_v2  ;;  %v6647_v25 = vld [vmem:[%s7385_s16 + $0x64c] sm:$0xf] }
 0x953   : > { %4224 = vmatpush.bf16.msrb.mxu1 %v5382_v43  ;;  %v5190_v43 = vor.u32 %v6483_v34, %v5187_v35  ;;  %v5574_v48 = vor.u32 %v6579_v41, %v5571_v6  ;;  %v5907_v3 = vld [vmem:[%s7385_s16 + $0x6d8] sm:$0xf0]  ;;  %v6166_v34 = vor.u32 %v6727_v7, %v6163_v8  ;;  %v6623_v41 = vld [vmem:[%s7385_s16 + $0x58c] sm:$0xf] }
 0x954   : > { %4237 = vmatpush.bf16.msrb.mxu2 %v5510_v44  ;;  %v6479_v44 = vld [vmem:[%s7385_s16 + $0x10c] sm:$0xf]  ;;  %v6035_v37 = vld [vmem:[%s7385_s16 + $0x7d8] sm:$0xf0] }
 0x955   : > { %4250 = vmatpush.bf16.msrb.mxu3 %v5638_v45  ;;  %v6511_v45 = vld [vmem:[%s7385_s16 + $0x20c] sm:$0xf]  ;;  %v5174_v18 = vor.u32 %v6479_v44, %v5171_v27  ;;  %v6038_v20 = vor.u32 %v6695_v29, %v6035_v37  ;;  %v5891_v35 = vld [vmem:[%s7385_s16 + $0x6b8] sm:$0xf0] }
 0x956   : > { %4212 = vmatpush.bf16.msrb.mxu0 %v5238_v12  ;;  %v3986_v12 = vpop.f32.mrf.mxu2  ;;  %v5302_v58 = vor.u32 %v6511_v45, %v5299_v46  ;;  %v6019_v0 = vld [vmem:[%s7385_s16 + $0x7b8] sm:$0xf0]  ;;  %v6687_v44 = vld [vmem:[%s7385_s16 + $0x78c] sm:$0xf] }
 0x957   : > { %4225 = vmatpush.bf16.msrb.mxu1 %v5366_v14  ;;  %v3999_v14 = vpop.f32.mrf.mxu3  ;;  %v6147_v38 = vld [vmem:[%s7385_s16 + $0x8b8] sm:$0xf0]  ;;  %v6022_v40 = vor.u32 %v6691_v54, %v6019_v0  ;;  %v6707_v0 = vld [vmem:[%s7385_s16 + $0x82c] sm:$0xf] }
 0x958   : > { %4238 = vmatpush.bf16.msrb.mxu2 %v5494_v15  ;;  %v6635_v15 = vld [vmem:[%s7385_s16 + $0x5ec] sm:$0xf]  ;;  %v5747_v6 = vld [vmem:[%s7385_s16 + $0x598] sm:$0xf0] }
 0x959   : > { %4251 = vmatpush.bf16.msrb.mxu3 %v5622_v55  ;;  %v6699_v55 = vld [vmem:[%s7385_s16 + $0x7ec] sm:$0xf]  ;;  %v6003_v27 = vld [vmem:[%s7385_s16 + $0x798] sm:$0xf0] }
 0x95a   : > { %4213 = vmatpush.bf16.msrb.mxu0 %v5222_v21  ;;  %v5558_v21 = vor.u32 %v6575_v50, %v5555_v10  ;;  %v6054_v60 = vor.u32 %v6699_v55, %v6051_v56  ;;  %v6006_v47 = vor.u32 %v6687_v44, %v6003_v27  ;;  %v5731_v49 = vld [vmem:[%s7385_s16 + $0x578] sm:$0xf0]  ;;  %v6651_v50 = vld [vmem:[%s7385_s16 + $0x66c] sm:$0xf] }
 0x95b   : > { %4226 = vmatpush.bf16.msrb.mxu1 %v5350_v32  ;;  %v5798_v32 = vor.u32 %v6635_v15, %v5795_v53  ;;  %v5859_v15 = vld [vmem:[%s7385_s16 + $0x678] sm:$0xf0]  ;;  %v6683_v53 = vld [vmem:[%s7385_s16 + $0x76c] sm:$0xf] }
 0x95c   : > { %4239 = vmatpush.bf16.msrb.mxu2 %v5478_v59  ;;  %v5926_v59 = vor.u32 %v6667_v16, %v5923_v17  ;;  %v5987_v16 = vld [vmem:[%s7385_s16 + $0x778] sm:$0xf0]  ;;  %v6671_v44 = vld [vmem:[%s7385_s16 + $0x70c] sm:$0xf] }
 0x95d   : > { %4252 = vmatpush.bf16.msrb.mxu3 %v5606_v62  ;;  %v6663_v62 = vld [vmem:[%s7385_s16 + $0x6cc] sm:$0xf]  ;;  %v6115_v17 = vld [vmem:[%s7385_s16 + $0x878] sm:$0xf0] }
 0x95e   : > { %4214 = vmatpush.bf16.msrb.mxu0 %v5206_v26  ;;  %v5910_v13 = vor.u32 %v6663_v62, %v5907_v3  ;;  %v6627_v26 = vld [vmem:[%s7385_s16 + $0x5ac] sm:$0xf]  ;;  %v5715_v19 = vld [vmem:[%s7385_s16 + $0x558] sm:$0xf0] }
 0x95f   : > { %4227 = vmatpush.bf16.msrb.mxu1 %v5334_v28  ;;  %v5763_v28 = vld [vmem:[%s7385_s16 + $0x5b8] sm:$0xf0] }
 0x960   : > { %4240 = vmatpush.bf16.msrb.mxu2 %v5462_v30  ;;  %v6659_v30 = vld [vmem:[%s7385_s16 + $0x6ac] sm:$0xf]  ;;  %v5766_v39 = vor.u32 %v6627_v26, %v5763_v28  ;;  %v5971_v61 = vld [vmem:[%s7385_s16 + $0x758] sm:$0xf0] }
 0x961   : > { %4253 = vmatpush.bf16.msrb.mxu3 %v5590_v5  ;;  %v6723_v5 = vld [vmem:[%s7385_s16 + $0x8ac] sm:$0xf]  ;;  %v6099_v3 = vld [vmem:[%s7385_s16 + $0x858] sm:$0xf0] }
 0x962   : > { %4215 = vmatpush.bf16.msrb.mxu0 %v5190_v43  ;;  %v5875_v43 = vld [vmem:[%s7385_s16 + $0x698] sm:$0xf0]  ;;  %v6643_v26 = vld [vmem:[%s7385_s16 + $0x62c] sm:$0xf] }
 0x963   : > { %4228 = vmatpush.bf16.msrb.mxu1 %v5318_v4  ;;  %v6719_v4 = vld [vmem:[%s7385_s16 + $0x88c] sm:$0xf]  ;;  %v5955_v54 = vld [vmem:[%s7385_s16 + $0x738] sm:$0xf0] }
 0x964   : > { %4241 = vmatpush.bf16.msrb.mxu2 %v5446_v31  ;;  %v6131_v31 = vld [vmem:[%s7385_s16 + $0x898] sm:$0xf0] }
 0x965   : > { %4254 = vmatpush.bf16.msrb.mxu3 %v5574_v48  ;;  %v6619_v48 = vld [vmem:[%s7385_s16 + $0x56c] sm:$0xf]  ;;  %v6134_v14 = vor.u32 %v6719_v4, %v6131_v31  ;;  %v5939_v27 = vld [vmem:[%s7385_s16 + $0x718] sm:$0xf0] }
 0x966   : > { %4216 = vmatpush.bf16.msrb.mxu0 %v5174_v18  ;;  %v4010_v45 = vpop.f32.mrf.mxu0  ;;  %v6715_v18 = vld [vmem:[%s7385_s16 + $0x86c] sm:$0xf]  ;;  %v5734_v56 = vor.u32 %v6619_v48, %v5731_v49 }
 0x967   : > { %4229 = vmatpush.bf16.msrb.mxu1 %v5302_v58  ;;  %v4011_v10 = vadd.f32 %v4010_v45, %v8678_v57  ;;  %v4023_v12 = vpop.f32.mrf.mxu1  ;;  %v5862_v57 = vor.u32 %v6651_v50, %v5859_v15  ;;  %v5990_v58 = vor.u32 %v6683_v53, %v5987_v16  ;;  %v6703_v31 = vld [vmem:[%s7385_s16 + $0x80c] sm:$0xf] }
 0x968   : > { %4242 = vmatpush.bf16.msrb.mxu2 %v5430_v42  ;;  %v6615_v42 = vld [vmem:[%s7385_s16 + $0x54c] sm:$0xf] }
 0x969   : > { %4255 = vmatpush.bf16.msrb.mxu3 %v5558_v21  ;;  %4217 = vmatmul.bf16.vlgmr.msrb.gmra.mxu0 %v8245_v23  ;;  %v6655_v23 = vld [vmem:[%s7385_s16 + $0x68c] sm:$0xf]  ;;  %v4024_v55 = vadd.f32 %v4023_v12, %v4011_v10  ;;  %v5718_v29 = vor.u32 %v6615_v42, %v5715_v19 }
 0x96a   : > { %4261 = vmatpush.bf16.msra.mxu0 %v5798_v32  ;;  %4230 = vmatmul.bf16.vlgmr.msrb.gmra.mxu1 %v8239_v9  ;;  %v5750_v9 = vor.u32 %v6623_v41, %v5747_v6  ;;  %v5878_v46 = vor.u32 %v6655_v23, %v5875_v43  ;;  %v6118_v32 = vor.u32 %v6715_v18, %v6115_v17  ;;  %v5683_v41 = vld [vmem:[%s7385_s16 + $0x518] sm:$0xf0]  ;;  %v6639_v6 = vld [vmem:[%s7385_s16 + $0x60c] sm:$0xf] }
 0x96b   : > { %4274 = vmatpush.bf16.msra.mxu1 %v5926_v59  ;;  %4243 = vmatmul.bf16.vlgmr.msrb.gmra.mxu2 %v8243_v22  ;;  %v5894_v22 = vor.u32 %v6659_v30, %v5891_v35  ;;  %v5843_v59 = vld [vmem:[%s7385_s16 + $0x658] sm:$0xf0]  ;;  %v6675_v35 = vld [vmem:[%s7385_s16 + $0x72c] sm:$0xf] }
 0x96c   : > { %4287 = vmatpush.bf16.msra.mxu2 %v6054_v60  ;;  %4256 = vmatmul.bf16.vlgmr.msrb.gmra.mxu3 %v8289_v24  ;;  %v6150_v24 = vor.u32 %v6723_v5, %v6147_v38  ;;  %v6679_v60 = vld [vmem:[%s7385_s16 + $0x74c] sm:$0xf]  ;;  %v5846_v8 = vor.u32 %v6647_v25, %v5843_v59  ;;  %v6083_v5 = vld [vmem:[%s7385_s16 + $0x838] sm:$0xf0] }
 0x96d   : > { %4300 = vmatpush.bf16.msra.mxu3 %v6182_v63  ;;  %v6711_v63 = vld [vmem:[%s7385_s16 + $0x84c] sm:$0xf]  ;;  %v5811_v43 = vld [vmem:[%s7385_s16 + $0x618] sm:$0xf0] }
 0x96e   : > { %4262 = vmatpush.bf16.msra.mxu0 %v5782_v11  ;;  %v4036_v21 = vpop.f32.mrf.mxu2  ;;  %v4012_v7 = vpop.f32.mrf.mxu0  ;;  %v5974_v11 = vor.u32 %v6679_v60, %v5971_v61  ;;  %v6102_v30 = vor.u32 %v6711_v63, %v6099_v3 }
 0x96f   : > { %4275 = vmatpush.bf16.msra.mxu1 %v5910_v13  ;;  %v4037_v2 = vadd.f32 %v4036_v21, %v4024_v55  ;;  %v4049_v62 = vpop.f32.mrf.mxu3  ;;  %v6611_v13 = vld [vmem:[%s7385_s16 + $0x52c] sm:$0xf]  ;;  %v4025_v28 = vpop.f32.mrf.mxu1 }
 0x970   : > { %4288 = vmatpush.bf16.msra.mxu2 %v6038_v20  ;;  %v5699_v20 = vld [vmem:[%s7385_s16 + $0x538] sm:$0xf0] }
 0x971   : > { %4301 = vmatpush.bf16.msra.mxu3 %v6166_v34  ;;  %v4050_v37 = vadd.f32 %v4049_v62, %v4037_v2  ;;  %v5827_v34 = vld [vmem:[%s7385_s16 + $0x638] sm:$0xf0]  ;;  %v5702_v38 = vor.u32 %v6611_v13, %v5699_v20 }
 0x972   : > { %4263 = vmatpush.bf16.msra.mxu0 %v5766_v39  ;;  %v5830_v39 = vor.u32 %v6643_v26, %v5827_v34 }
 0x973   : > { %4276 = vmatpush.bf16.msra.mxu1 %v5894_v22  ;;  %v5958_v22 = vor.u32 %v6675_v35, %v5955_v54 }
 0x974   : > { %4289 = vmatpush.bf16.msra.mxu2 %v6022_v40  ;;  %v6607_v40 = vld [vmem:[%s7385_s16 + $0x50c] sm:$0xf] }
 0x975   : > { %4302 = vmatpush.bf16.msra.mxu3 %v6150_v24  ;;  %v6086_v24 = vor.u32 %v6707_v0, %v6083_v5  ;;  %v5686_v45 = vor.u32 %v6607_v40, %v5683_v41 }
 0x976   : > { %4264 = vmatpush.bf16.msra.mxu0 %v5750_v9  ;;  %v4038_v23 = vpop.f32.mrf.mxu2  ;;  %v6067_v9 = vld [vmem:[%s7385_s16 + $0x818] sm:$0xf0] }
 0x977   : > { %4277 = vmatpush.bf16.msra.mxu1 %v5878_v46  ;;  %v4051_v4 = vpop.f32.mrf.mxu3  ;;  %v5814_v46 = vor.u32 %v6639_v6, %v5811_v43  ;;  %v6070_v48 = vor.u32 %v6703_v31, %v6067_v9 }
 0x978   : > { %4290 = vmatpush.bf16.msra.mxu2 %v6006_v47  ;;  %v5942_v47 = vor.u32 %v6671_v44, %v5939_v27 }
 0x979   : > { %4303 = vmatpush.bf16.msra.mxu3 %v6134_v14 }
 0x97a   : > { %4265 = vmatpush.bf16.msra.mxu0 %v5734_v56 }
 0x97b   : > { %4278 = vmatpush.bf16.msra.mxu1 %v5862_v57 }
 0x97c   : > { %4291 = vmatpush.bf16.msra.mxu2 %v5990_v58 }
 0x97d   : > { %4304 = vmatpush.bf16.msra.mxu3 %v6118_v32 }
 0x97e   : > { %4266 = vmatpush.bf16.msra.mxu0 %v5718_v29 }
 0x97f   : > { %4279 = vmatpush.bf16.msra.mxu1 %v5846_v8 }
 0x980   : > { %4292 = vmatpush.bf16.msra.mxu2 %v5974_v11 }
 0x981   : > { %4305 = vmatpush.bf16.msra.mxu3 %v6102_v30 }
 0x982   : > { %4267 = vmatpush.bf16.msra.mxu0 %v5702_v38 }
 0x983   : > { %4280 = vmatpush.bf16.msra.mxu1 %v5830_v39 }
 0x984   : > { %4293 = vmatpush.bf16.msra.mxu2 %v5958_v22 }
 0x985   : > { %4306 = vmatpush.bf16.msra.mxu3 %v6086_v24 }
 0x986   : > { %4268 = vmatpush.bf16.msra.mxu0 %v5686_v45  ;;  %v4062_v49 = vpop.f32.mrf.mxu0  ;;  %v2116_v45 = vld [vmem:[#allocation7] sm:$0xff] }
 0x987   : > { %4281 = vmatpush.bf16.msra.mxu1 %v5814_v46  ;;  %v4063_v50 = vadd.f32 %v4062_v49, %v4050_v37  ;;  %v4075_v10 = vpop.f32.mrf.mxu1 }
 0x988   : > { %4294 = vmatpush.bf16.msra.mxu2 %v5942_v47 }
 0x989   : > { %4307 = vmatpush.bf16.msra.mxu3 %v6070_v48  ;;  %4269 = vmatmul.bf16.vlgmr.msra.gmra.mxu0 %v8298_v36  ;;  %v4076_v12 = vadd.f32 %v4075_v10, %v4063_v50 }
 0x98a   : > { %4282 = vmatmul.bf16.vlgmr.msra.gmra.mxu1 %v8284_v1 }
 0x98b   : > { %4295 = vmatmul.bf16.vlgmr.msra.gmra.mxu2 %v8294_v33  ;;  %v4317_v14 = vrot.slane %v4076_v12, 6 }
 0x98c   : > { %4308 = vmatmul.bf16.vlgmr.msra.gmra.mxu3 %v8355_v52 }
 0x98d   : > { %v4321_v15 = vsel %vm4320_vm2, %v8657_v51, %v4317_v14 }
 0x98e   : > { %v4088_v53 = vpop.f32.mrf.mxu2  ;;  %v4064_v18 = vpop.f32.mrf.mxu0 }
 0x98f   : > { %v4101_v16 = vpop.f32.mrf.mxu3  ;;  %v4077_v36 = vpop.f32.mrf.mxu1 }
 0x990   : > { %v4102_v17 = vadd.f32 %v4101_v16, %v4088_v53 }
 0x996   : > { %v4090_v55 = vpop.f32.mrf.mxu2 }
 0x997   : > { %v4103_v1 = vpop.f32.mrf.mxu3 }
 0x9a6   : > { %v4114_v56 = vpop.f32.mrf.mxu0 }
 0x9a7   : > { %v4115_v33 = vadd.f32 %v4114_v56, %v4102_v17  ;;  %v4127_v57 = vpop.f32.mrf.mxu1 }
 0x9a9   : > { %v4128_v52 = vadd.f32 %v4127_v57, %v4115_v33 }
 0x9ae   : > { %v4140_v58 = vpop.f32.mrf.mxu2  ;;  %v4116_v21 = vpop.f32.mrf.mxu0 }
 0x9af   : > { %v4141_v42 = vadd.f32 %v4140_v58, %v4128_v52  ;;  %v4153_v19 = vpop.f32.mrf.mxu3  ;;  %v4129_v32 = vpop.f32.mrf.mxu1 }
 0x9b1   : > { %v4154_v25 = vadd.f32 %v4153_v19, %v4141_v42 }
 0x9b6   : > { %v4142_v59 = vpop.f32.mrf.mxu2 }
 0x9b7   : > { %v4155_v60 = vpop.f32.mrf.mxu3 }
 0x9c6   : > { %v4166_v51 = vpop.f32.mrf.mxu0 }
 0x9c7   : > { %v4167_v61 = vadd.f32 %v4166_v51, %v4154_v25  ;;  %v4179_v2 = vpop.f32.mrf.mxu1 }
 0x9c9   : > { %v4180_v62 = vadd.f32 %v4179_v2, %v4167_v61 }
 0x9ce   : > { %v4192_v63 = vpop.f32.mrf.mxu2  ;;  %v4168_v29 = vpop.f32.mrf.mxu0 }
 0x9cf   : > { %v4205_v3 = vpop.f32.mrf.mxu3  ;;  %v4181_v37 = vpop.f32.mrf.mxu1  ;;  %v4193_v23 = vadd.f32 %v4192_v63, %v4180_v62 }
 0x9d1   : > { %v4318_v31 = vrot.slane %v4193_v23, 4 }
 0x9d6   : > { %v4194_v7 = vpop.f32.mrf.mxu2 }
 0x9d7   : > { %v4207_v8 = vpop.f32.mrf.mxu3 }
 0x9e6   : > { %v4218_v11 = vpop.f32.mrf.mxu0 }
 0x9e7   : > { %v4231_v13 = vpop.f32.mrf.mxu1  ;;  %v4219_v54 = vadd.f32 %v4218_v11, %v4205_v3 }
 0x9e9   : > { %v4232_v0 = vadd.f32 %v4231_v13, %v4219_v54 }
 0x9ee   : > { %v4244_v20 = vpop.f32.mrf.mxu2  ;;  %v4220_v28 = vpop.f32.mrf.mxu0 }
 0x9ef   : > { %v4257_v26 = vpop.f32.mrf.mxu3  ;;  %v4233_v30 = vpop.f32.mrf.mxu1  ;;  %v4245_v5 = vadd.f32 %v4244_v20, %v4232_v0 }
 0x9f1   : > { %v4258_v38 = vadd.f32 %v4257_v26, %v4245_v5 }
 0x9f6   : > { %v4246_v34 = vpop.f32.mrf.mxu2 }
 0x9f7   : > { %v4259_v35 = vpop.f32.mrf.mxu3 }
 0xa06   : > { %v4270_v39 = vpop.f32.mrf.mxu0 }
 0xa07   : > { %v4283_v22 = vpop.f32.mrf.mxu1  ;;  %v4271_v40 = vadd.f32 %v4270_v39, %v4258_v38 }
 0xa09   : > { %v4284_v41 = vadd.f32 %v4283_v22, %v4271_v40 }
 0xa0e   : > { %v4296_v6 = vpop.f32.mrf.mxu2  ;;  %v4272_v44 = vpop.f32.mrf.mxu0 }
 0xa0f   : > { %v4297_v24 = vadd.f32 %v4296_v6, %v4284_v41  ;;  %v4309_v43 = vpop.f32.mrf.mxu3  ;;  %v4285_v27 = vpop.f32.mrf.mxu1 }
 0xa11   : > { %v4310_v4 = vadd.f32 %v4309_v43, %v4297_v24 }
 0xa13   : > { %v4319_v9 = vrot.slane %v4310_v4, 2 }
 0xa15   : > { %v4323_v46 = vsel %vm4322_vm12, %v4318_v31, %v4319_v9  ;;  %4332 = sbr.rel (%p6183_p1) target bundleno = 2796 (0xaec), region = 96 }
 0xa16   : > { %v4325_v47 = vsel %vm4324_vm11, %v4321_v15, %v4323_v46  ;;  %v4298_v48 = vpop.f32.mrf.mxu2 }
 0xa17   : > { %v4327_v49 = vadd.f32 %v4325_v47, %v2116_v45  ;;  %v4311_v50 = vpop.f32.mrf.mxu3 }
 0xa19   : > { %4328 = vst [vmem:[#allocation7] sm:$0xff] %v4327_v49 }
 0xa1a   : > { %v6242_v10 = vld [vmem:[#allocation15 + $0x70] sm:$0xf]  ;;  %v6749_v12 = vld [vmem:[#allocation15 + $0x74] sm:$0xf0]  ;;  %v6234_v33 = vld [vmem:[#allocation15 + $0x60] sm:$0xf] }
 0xa1b   : > { %v6306_v14 = vld [vmem:[#allocation15 + $0xf0] sm:$0xf]  ;;  %v6243_v53 = vor.u32 %v6749_v12, %v6242_v10  ;;  %v6765_v16 = vld [vmem:[#allocation15 + $0xf4] sm:$0xf0]  ;;  %v6747_v57 = vld [vmem:[#allocation15 + $0x64] sm:$0xf0] }
 0xa1c   : > { %v6370_v18 = vld [vmem:[#allocation15 + $0x170] sm:$0xf]  ;;  %v6781_v17 = vld [vmem:[#allocation15 + $0x174] sm:$0xf0]  ;;  %v6307_v36 = vor.u32 %v6765_v16, %v6306_v14  ;;  %v6298_v52 = vld [vmem:[#allocation15 + $0xe0] sm:$0xf]  ;;  %v6235_v42 = vor.u32 %v6747_v57, %v6234_v33 }
 0xa1d   : > { %v6371_v55 = vor.u32 %v6781_v17, %v6370_v18  ;;  %v6434_v1 = vld [vmem:[#allocation15 + $0x1f0] sm:$0xf]  ;;  %v6797_v56 = vld [vmem:[#allocation15 + $0x1f4] sm:$0xf0]  ;;  %4753 = vmatpush.bf16.msra.mxu0 %v6243_v53  ;;  %v6763_v58 = vld [vmem:[#allocation15 + $0xe4] sm:$0xf0] }
 0xa1e   : > { %v6435_v15 = vor.u32 %v6797_v56, %v6434_v1  ;;  %4766 = vmatpush.bf16.msra.mxu1 %v6307_v36  ;;  %v6299_v19 = vor.u32 %v6763_v58, %v6298_v52  ;;  %v6362_v25 = vld [vmem:[#allocation15 + $0x160] sm:$0xf]  ;;  %v6779_v21 = vld [vmem:[#allocation15 + $0x164] sm:$0xf0]  ;;  %v6226_v51 = vld [vmem:[#allocation15 + $0x50] sm:$0xf] }
 0xa1f   : > { %4779 = vmatpush.bf16.msra.mxu2 %v6371_v55  ;;  %v6426_v32 = vld [vmem:[#allocation15 + $0x1e0] sm:$0xf]  ;;  %v6363_v59 = vor.u32 %v6779_v21, %v6362_v25  ;;  %v6795_v60 = vld [vmem:[#allocation15 + $0x1e4] sm:$0xf0]  ;;  %v6745_v61 = vld [vmem:[#allocation15 + $0x54] sm:$0xf0] }
 0xa20   : > { %4792 = vmatpush.bf16.msra.mxu3 %v6435_v15  ;;  %v6427_v2 = vor.u32 %v6795_v60, %v6426_v32  ;;  %v6290_v62 = vld [vmem:[#allocation15 + $0xd0] sm:$0xf]  ;;  %v6761_v63 = vld [vmem:[#allocation15 + $0xd4] sm:$0xf0]  ;;  %v6227_v29 = vor.u32 %v6745_v61, %v6226_v51  ;;  %v6218_v20 = vld [vmem:[#allocation15 + $0x40] sm:$0xf] }
 0xa21   : > { %v6354_v3 = vld [vmem:[#allocation15 + $0x150] sm:$0xf]  ;;  %4754 = vmatpush.bf16.msra.mxu0 %v6235_v42  ;;  %v6777_v37 = vld [vmem:[#allocation15 + $0x154] sm:$0xf0]  ;;  %v6291_v11 = vor.u32 %v6761_v63, %v6290_v62  ;;  %v6743_v26 = vld [vmem:[#allocation15 + $0x44] sm:$0xf0] }
 0xa22   : > { %v6418_v7 = vld [vmem:[#allocation15 + $0x1d0] sm:$0xf]  ;;  %v6793_v8 = vld [vmem:[#allocation15 + $0x1d4] sm:$0xf0]  ;;  %4767 = vmatpush.bf16.msra.mxu1 %v6299_v19  ;;  %v6355_v13 = vor.u32 %v6777_v37, %v6354_v3  ;;  %v6282_v28 = vld [vmem:[#allocation15 + $0xc0] sm:$0xf]  ;;  %v6219_v38 = vor.u32 %v6743_v26, %v6218_v20 }
 0xa23   : > { %4780 = vmatpush.bf16.msra.mxu2 %v6363_v59  ;;  %v6419_v30 = vor.u32 %v6793_v8, %v6418_v7  ;;  %v6759_v34 = vld [vmem:[#allocation15 + $0xc4] sm:$0xf0]  ;;  %v6346_v35 = vld [vmem:[#allocation15 + $0x140] sm:$0xf]  ;;  %v6210_v40 = vld [vmem:[#allocation15 + $0x30] sm:$0xf] }
 0xa24   : > { %4793 = vmatpush.bf16.msra.mxu3 %v6427_v2  ;;  %v6775_v54 = vld [vmem:[#allocation15 + $0x144] sm:$0xf0]  ;;  %v6410_v0 = vld [vmem:[#allocation15 + $0x1c0] sm:$0xf]  ;;  %v6283_v39 = vor.u32 %v6759_v34, %v6282_v28  ;;  %v6741_v41 = vld [vmem:[#allocation15 + $0x34] sm:$0xf0] }
 0xa25   : > { %v6791_v5 = vld [vmem:[#allocation15 + $0x1c4] sm:$0xf0]  ;;  %4755 = vmatpush.bf16.msra.mxu0 %v6227_v29  ;;  %v6347_v22 = vor.u32 %v6775_v54, %v6346_v35  ;;  %v6274_v6 = vld [vmem:[#allocation15 + $0xb0] sm:$0xf]  ;;  %v6757_v24 = vld [vmem:[#allocation15 + $0xb4] sm:$0xf0]  ;;  %v6211_v31 = vor.u32 %v6741_v41, %v6210_v40 }
 0xa26   : > { %4768 = vmatpush.bf16.msra.mxu1 %v6291_v11  ;;  %v6411_v23 = vor.u32 %v6791_v5, %v6410_v0  ;;  %v6338_v43 = vld [vmem:[#allocation15 + $0x130] sm:$0xf]  ;;  %v6773_v44 = vld [vmem:[#allocation15 + $0x134] sm:$0xf0]  ;;  %v6275_v9 = vor.u32 %v6757_v24, %v6274_v6  ;;  %v6202_v46 = vld [vmem:[#allocation15 + $0x20] sm:$0xf] }
 0xa27   : > { %4781 = vmatpush.bf16.msra.mxu2 %v6355_v13  ;;  %v6402_v27 = vld [vmem:[#allocation15 + $0x1b0] sm:$0xf]  ;;  %v6789_v4 = vld [vmem:[#allocation15 + $0x1b4] sm:$0xf0]  ;;  %v6339_v45 = vor.u32 %v6773_v44, %v6338_v43  ;;  %v6739_v47 = vld [vmem:[#allocation15 + $0x24] sm:$0xf0] }
 0xa28   : > { %4794 = vmatpush.bf16.msra.mxu3 %v6419_v30  ;;  %v6266_v48 = vld [vmem:[#allocation15 + $0xa0] sm:$0xf]  ;;  %v6403_v49 = vor.u32 %v6789_v4, %v6402_v27  ;;  %v6755_v50 = vld [vmem:[#allocation15 + $0xa4] sm:$0xf0]  ;;  %v6203_v16 = vor.u32 %v6739_v47, %v6202_v46  ;;  %v6194_v36 = vld [vmem:[#allocation15 + $0x10] sm:$0xf] }
 0xa29   : > { %4756 = vmatpush.bf16.msra.mxu0 %v6219_v38  ;;  %v6330_v10 = vld [vmem:[#allocation15 + $0x120] sm:$0xf]  ;;  %v6771_v12 = vld [vmem:[#allocation15 + $0x124] sm:$0xf0]  ;;  %v6267_v18 = vor.u32 %v6755_v50, %v6266_v48  ;;  %v6737_v55 = vld [vmem:[#allocation15 + $0x14] sm:$0xf0] }
 0xa2a   : > { %4769 = vmatpush.bf16.msra.mxu1 %v6283_v39  ;;  %v6394_v14 = vld [vmem:[#allocation15 + $0x1a0] sm:$0xf]  ;;  %v6787_v53 = vld [vmem:[#allocation15 + $0x1a4] sm:$0xf0]  ;;  %v6331_v17 = vor.u32 %v6771_v12, %v6330_v10  ;;  %v6258_v1 = vld [vmem:[#allocation15 + $0x90] sm:$0xf]  ;;  %v6195_v19 = vor.u32 %v6737_v55, %v6194_v36 }
 0xa2b   : > { %4782 = vmatpush.bf16.msra.mxu2 %v6347_v22  ;;  %v6395_v56 = vor.u32 %v6787_v53, %v6394_v14  ;;  %v6753_v33 = vld [vmem:[#allocation15 + $0x94] sm:$0xf0]  ;;  %v6322_v15 = vld [vmem:[#allocation15 + $0x110] sm:$0xf]  ;;  %v6186_v42 = vld [vmem:[#allocation15] sm:$0xf] }
 0xa2c   : > { %4795 = vmatpush.bf16.msra.mxu3 %v6411_v23  ;;  %v6769_v57 = vld [vmem:[#allocation15 + $0x114] sm:$0xf0]  ;;  %v6386_v52 = vld [vmem:[#allocation15 + $0x190] sm:$0xf]  ;;  %v6735_v25 = vld [vmem:[#allocation15 + $0x4] sm:$0xf0]  ;;  %v6259_v59 = vor.u32 %v6753_v33, %v6258_v1 }
 0xa2d   : > { %4757 = vmatpush.bf16.msra.mxu0 %v6211_v31  ;;  %v6785_v58 = vld [vmem:[#allocation15 + $0x194] sm:$0xf0]  ;;  %v6250_v21 = vld [vmem:[#allocation15 + $0x80] sm:$0xf]  ;;  %v6751_v32 = vld [vmem:[#allocation15 + $0x84] sm:$0xf0]  ;;  %v6323_v60 = vor.u32 %v6769_v57, %v6322_v15  ;;  %v6187_v11 = vor.u32 %v6735_v25, %v6186_v42 }
 0xa2e   : > { %4770 = vmatpush.bf16.msra.mxu1 %v6275_v9  ;;  %v6314_v51 = vld [vmem:[#allocation15 + $0x100] sm:$0xf]  ;;  %v6767_v61 = vld [vmem:[#allocation15 + $0x104] sm:$0xf0]  ;;  %v6387_v62 = vor.u32 %v6785_v58, %v6386_v52  ;;  %v6748_v3 = vld [vmem:[#allocation15 + $0x74] sm:$0xf]  ;;  %v6251_v13 = vor.u32 %v6751_v32, %v6250_v21 }
 0xa2f   : > { %4783 = vmatpush.bf16.msra.mxu2 %v6339_v45  ;;  %v6378_v2 = vld [vmem:[#allocation15 + $0x180] sm:$0xf]  ;;  %v6783_v63 = vld [vmem:[#allocation15 + $0x184] sm:$0xf0]  ;;  %v6244_v29 = vld [vmem:[#allocation15 + $0x78] sm:$0xf0]  ;;  %v6315_v20 = vor.u32 %v6767_v61, %v6314_v51 }
 0xa30   : > { %4796 = vmatpush.bf16.msra.mxu3 %v6403_v49  ;;  %v6764_v37 = vld [vmem:[#allocation15 + $0xf4] sm:$0xf]  ;;  %v6308_v7 = vld [vmem:[#allocation15 + $0xf8] sm:$0xf0]  ;;  %v6379_v38 = vor.u32 %v6783_v63, %v6378_v2  ;;  %v6247_v39 = vor.u32 %v6748_v3, %v6244_v29  ;;  %v6746_v40 = vld [vmem:[#allocation15 + $0x64] sm:$0xf] }
 0xa31   : > { %4758 = vmatpush.bf16.msra.mxu0 %v6203_v16  ;;  %v6780_v8 = vld [vmem:[#allocation15 + $0x174] sm:$0xf]  ;;  %v6372_v26 = vld [vmem:[#allocation15 + $0x178] sm:$0xf0]  ;;  %v6311_v22 = vor.u32 %v6764_v37, %v6308_v7  ;;  %v6236_v41 = vld [vmem:[#allocation15 + $0x68] sm:$0xf0] }
 0xa32   : > { %4771 = vmatpush.bf16.msra.mxu1 %v6267_v18  ;;  %v6796_v28 = vld [vmem:[#allocation15 + $0x1f4] sm:$0xf]  ;;  %v4334_v30 = vld [vmem:[#allocation14] sm:$0xf]  ;;  %v6762_v6 = vld [vmem:[#allocation15 + $0xe4] sm:$0xf]  ;;  %v6375_v23 = vor.u32 %v6780_v8, %v6372_v26  ;;  %v6239_v50 = vor.u32 %v6746_v40, %v6236_v41 }
 0xa33   : > { %4784 = vmatpush.bf16.msra.mxu2 %v6331_v17  ;;  %v6436_v34 = vld [vmem:[#allocation15 + $0x1f8] sm:$0xf0]  ;;  %v4336_v35 = vperm.slane %v4334_v30, 0  ;;  %v4337_v54 = vperm.slane %v4334_v30, 1  ;;  %v4338_v0 = vperm.slane %v4334_v30, 2  ;;  %v4339_v5 = vperm.slane %v4334_v30, 3 }
 0xa34   : > { %4797 = vmatpush.bf16.msra.mxu3 %v6395_v56  ;;  %v6300_v24 = vld [vmem:[#allocation15 + $0xe8] sm:$0xf0]  ;;  %v6439_v4 = vor.u32 %v6796_v28, %v6436_v34  ;;  %v6778_v31 = vld [vmem:[#allocation15 + $0x164] sm:$0xf]  ;;  %v6744_v16 = vld [vmem:[#allocation15 + $0x54] sm:$0xf] }
 0xa35   : > { %4759 = vmatpush.bf16.msra.mxu0 %v6195_v19  ;;  %v4340_v43 = vrot.slane %v4337_v54, 6  ;;  %v4341_v44 = vrot.slane %v4338_v0, 4  ;;  %v4342_v27 = vrot.slane %v4339_v5, 2  ;;  %v6364_v9 = vld [vmem:[#allocation15 + $0x168] sm:$0xf0]  ;;  %v4333_v45 = vld [vmem:[#allocation7] sm:$0xff]  ;;  %v6303_v12 = vor.u32 %v6762_v6, %v6300_v24 }
 0xa36   : > { %4772 = vmatpush.bf16.msra.mxu1 %v6259_v59  ;;  %v6794_v46 = vld [vmem:[#allocation15 + $0x1e4] sm:$0xf]  ;;  %v6428_v47 = vld [vmem:[#allocation15 + $0x1e8] sm:$0xf0]  ;;  %v6367_v14 = vor.u32 %v6778_v31, %v6364_v9  ;;  %v6228_v18 = vld [vmem:[#allocation15 + $0x58] sm:$0xf0] }
 0xa37   : > { %4785 = vmatpush.bf16.msra.mxu2 %v6323_v60  ;;  %v4343_v48 = vsel %vm4320_vm2, %v4336_v35, %v4340_v43  ;;  %v4344_v49 = vsel %vm4322_vm12, %v4341_v44, %v4342_v27  ;;  %v6760_v17 = vld [vmem:[#allocation15 + $0xd4] sm:$0xf]  ;;  %v6431_v36 = vor.u32 %v6794_v46, %v6428_v47  ;;  %v6292_v55 = vld [vmem:[#allocation15 + $0xd8] sm:$0xf0]  ;;  %v6231_v52 = vor.u32 %v6744_v16, %v6228_v18  ;;  %v6742_v58 = vld [vmem:[#allocation15 + $0x44] sm:$0xf] }
 0xa38   : > { %4798 = vmatpush.bf16.msra.mxu3 %v6387_v62  ;;  %v4345_v10 = vsel %vm4324_vm11, %v4343_v48, %v4344_v49  ;;  %v6776_v1 = vld [vmem:[#allocation15 + $0x154] sm:$0xf]  ;;  %v6356_v56 = vld [vmem:[#allocation15 + $0x158] sm:$0xf0]  ;;  %v6295_v42 = vor.u32 %v6760_v17, %v6292_v55  ;;  %v6220_v25 = vld [vmem:[#allocation15 + $0x48] sm:$0xf0] }
 0xa39   : > { %4760 = vmatpush.bf16.msra.mxu0 %v6187_v11  ;;  %v4347_v53 = vadd.f32 %v4345_v10, %v4333_v45  ;;  %v6792_v15 = vld [vmem:[#allocation15 + $0x1d4] sm:$0xf]  ;;  %v6420_v57 = vld [vmem:[#allocation15 + $0x1d8] sm:$0xf0]  ;;  %v6359_v19 = vor.u32 %v6776_v1, %v6356_v56  ;;  %v6758_v21 = vld [vmem:[#allocation15 + $0xc4] sm:$0xf]  ;;  %v6223_v62 = vor.u32 %v6742_v58, %v6220_v25 }
 0xa3a   : > { %4773 = vmatpush.bf16.msra.mxu1 %v6251_v13  ;;  %v6423_v32 = vor.u32 %v6792_v15, %v6420_v57  ;;  %v6284_v59 = vld [vmem:[#allocation15 + $0xc8] sm:$0xf0]  ;;  %v6774_v60 = vld [vmem:[#allocation15 + $0x144] sm:$0xf]  ;;  %v6740_v29 = vld [vmem:[#allocation15 + $0x34] sm:$0xf] }
 0xa3b   : > { %4786 = vmatpush.bf16.msra.mxu2 %v6315_v20  ;;  %v4348_v33 = vmax.f32 %v4347_v53, 0.0  ;;  %v6348_v51 = vld [vmem:[#allocation15 + $0x148] sm:$0xf0]  ;;  %v6790_v61 = vld [vmem:[#allocation15 + $0x1c4] sm:$0xf]  ;;  %v6287_v63 = vor.u32 %v6758_v21, %v6284_v59 }
 0xa3c   : > { %4799 = vmatpush.bf16.msra.mxu3 %v6379_v38  ;;  %v6412_v2 = vld [vmem:[#allocation15 + $0x1c8] sm:$0xf0]  ;;  %v6351_v3 = vor.u32 %v6774_v60, %v6348_v51  ;;  %v6212_v37 = vld [vmem:[#allocation15 + $0x38] sm:$0xf0]  ;;  %v6756_v8 = vld [vmem:[#allocation15 + $0xb4] sm:$0xf] }
 0xa3d   : > { %4805 = vmatpush.bf16.msrb.mxu0 %v6247_v39  ;;  %4350 = vst [vmem:[#allocation1] ss:$4 sm:$0xff] %v4348_v33  ;;  %v6415_v7 = vor.u32 %v6790_v61, %v6412_v2  ;;  %v6276_v11 = vld [vmem:[#allocation15 + $0xb8] sm:$0xf0]  ;;  %v6772_v13 = vld [vmem:[#allocation15 + $0x134] sm:$0xf]  ;;  %v6215_v35 = vor.u32 %v6740_v29, %v6212_v37 }
 0xa3e   : > { %4818 = vmatpush.bf16.msrb.mxu1 %v6311_v22  ;;  %v6340_v20 = vld [vmem:[#allocation15 + $0x138] sm:$0xf0]  ;;  %v6788_v26 = vld [vmem:[#allocation15 + $0x1b4] sm:$0xf]  ;;  %v6738_v54 = vld [vmem:[#allocation15 + $0x24] sm:$0xf]  ;;  %v6279_v40 = vor.u32 %v6756_v8, %v6276_v11 }
 0xa3f   : > { %4831 = vmatpush.bf16.msrb.mxu2 %v6375_v23  ;;  %v6404_v28 = vld [vmem:[#allocation15 + $0x1b8] sm:$0xf0]  ;;  %v6204_v0 = vld [vmem:[#allocation15 + $0x28] sm:$0xf0]  ;;  %v6343_v23 = vor.u32 %v6772_v13, %v6340_v20  ;;  %v6754_v43 = vld [vmem:[#allocation15 + $0xa4] sm:$0xf] }
 0xa40   : > { %4844 = vmatpush.bf16.msrb.mxu3 %v6439_v4  ;;  %v6407_v24 = vor.u32 %v6788_v26, %v6404_v28  ;;  %v6268_v44 = vld [vmem:[#allocation15 + $0xa8] sm:$0xf0]  ;;  %v6770_v27 = vld [vmem:[#allocation15 + $0x124] sm:$0xf]  ;;  %v6207_v45 = vor.u32 %v6738_v54, %v6204_v0  ;;  %v6736_v47 = vld [vmem:[#allocation15 + $0x14] sm:$0xf] }
 0xa41   : > { %4806 = vmatpush.bf16.msrb.mxu0 %v6239_v50  ;;  %v6332_v4 = vld [vmem:[#allocation15 + $0x128] sm:$0xf0]  ;;  %v6786_v31 = vld [vmem:[#allocation15 + $0x1a4] sm:$0xf]  ;;  %v6271_v46 = vor.u32 %v6754_v43, %v6268_v44  ;;  %v6196_v48 = vld [vmem:[#allocation15 + $0x18] sm:$0xf0] }
 0xa42   : > { %4819 = vmatpush.bf16.msrb.mxu1 %v6303_v12  ;;  %v6396_v9 = vld [vmem:[#allocation15 + $0x1a8] sm:$0xf0]  ;;  %v6335_v49 = vor.u32 %v6770_v27, %v6332_v4  ;;  %v6752_v10 = vld [vmem:[#allocation15 + $0x94] sm:$0xf]  ;;  %v6260_v12 = vld [vmem:[#allocation15 + $0x98] sm:$0xf0]  ;;  %v6199_v17 = vor.u32 %v6736_v47, %v6196_v48 }
 0xa43   : > { %4832 = vmatpush.bf16.msrb.mxu2 %v6367_v14  ;;  %v6399_v50 = vor.u32 %v6786_v31, %v6396_v9  ;;  %v6768_v14 = vld [vmem:[#allocation15 + $0x114] sm:$0xf]  ;;  %v6324_v53 = vld [vmem:[#allocation15 + $0x118] sm:$0xf0]  ;;  %v6734_v55 = vld [vmem:[#allocation15 + $0x4] sm:$0xf] }
 0xa44   : > { %4845 = vmatpush.bf16.msrb.mxu3 %v6431_v36  ;;  %v4353_v30 = vld.sshfl [vmem:[#allocation1 + $0x10] sm:$0xff pattern:$0x73625140]  ;;  %v4351_v34 = vld.sshfl [vmem:[#allocation1] sm:$0xff pattern:$0x73625140]  ;;  %v6263_v36 = vor.u32 %v6752_v10, %v6260_v12  ;;  %v6327_v56 = vor.u32 %v6768_v14, %v6324_v53 }
 0xa45   : > { %4807 = vmatpush.bf16.msrb.mxu0 %v6231_v52  ;;  %v8774_v5 = vpack.c.bf16 %v4353_v30, %v4353_v30  ;;  %v8776_v38 = vpack.c.bf16 %v4351_v34, %v4351_v34  ;;  %v4354_v39 = vld.sshfl [vmem:[#allocation1 + $0x18] sm:$0xff pattern:$0x73625140]  ;;  %v4352_v22 = vld.sshfl [vmem:[#allocation1 + $0x8] sm:$0xff pattern:$0x73625140] }
 0xa46   : > { %4820 = vmatpush.bf16.msrb.mxu1 %v6295_v42  ;;  %v4362_v41 = vpack.c.bf16 %v4354_v39, %v4354_v39  ;;  %v4360_v6 = vpack.c.bf16 %v4352_v22, %v4352_v22  ;;  %v6784_v16 = vld [vmem:[#allocation15 + $0x194] sm:$0xf]  ;;  %v6388_v18 = vld [vmem:[#allocation15 + $0x198] sm:$0xf0]  ;;  %v6188_v1 = vld [vmem:[#allocation15 + $0x8] sm:$0xf0] }
 0xa47   : > { %4833 = vmatpush.bf16.msrb.mxu2 %v6359_v19  ;;  %4761 = vmatmul.bf16.vlgmr.msra.gmra.mxu0 %v8776_v38  ;;  %v6391_v33 = vor.u32 %v6784_v16, %v6388_v18  ;;  %v6750_v15 = vld [vmem:[#allocation15 + $0x84] sm:$0xf]  ;;  %v6252_v57 = vld [vmem:[#allocation15 + $0x88] sm:$0xf0]  ;;  %v6191_v25 = vor.u32 %v6734_v55, %v6188_v1 }
 0xa48   : > { %4846 = vmatpush.bf16.msrb.mxu3 %v6423_v32  ;;  %4787 = vmatmul.bf16.vlgmr.msra.gmra.mxu2 %v8774_v5  ;;  %v6766_v52 = vld [vmem:[#allocation15 + $0x104] sm:$0xf]  ;;  %v6316_v58 = vld [vmem:[#allocation15 + $0x108] sm:$0xf0]  ;;  %v6255_v21 = vor.u32 %v6750_v15, %v6252_v57 }
 0xa49   : > { %4808 = vmatpush.bf16.msrb.mxu0 %v6223_v62  ;;  %4800 = vmatmul.bf16.vlgmr.msra.gmra.mxu3 %v4362_v41  ;;  %v6782_v42 = vld [vmem:[#allocation15 + $0x184] sm:$0xf]  ;;  %v6380_v19 = vld [vmem:[#allocation15 + $0x188] sm:$0xf0]  ;;  %v6319_v32 = vor.u32 %v6766_v52, %v6316_v58  ;;  %v4427_v62 = vld [vmem:[#allocation17] sm:$0x3] }
 0xa4a   : > { %4821 = vmatpush.bf16.msrb.mxu1 %v6287_v63  ;;  %v6383_v59 = vor.u32 %v6782_v42, %v6380_v19  ;;  %v4429_v29 = vperm.slane %v4427_v62, 0 }
 0xa4b   : > { %4834 = vmatpush.bf16.msrb.mxu2 %v6351_v3  ;;  %4774 = vmatmul.bf16.vlgmr.msra.gmra.mxu1 %v4360_v6 }
 0xa4c   : > { %4847 = vmatpush.bf16.msrb.mxu3 %v6415_v7  ;;  %v4430_v7 = vperm.slane %v4427_v62, 1 }
 0xa4d   : > { %4809 = vmatpush.bf16.msrb.mxu0 %v6215_v35 }
 0xa4e   : > { %4822 = vmatpush.bf16.msrb.mxu1 %v6279_v40 }
 0xa4f   : > { %4835 = vmatpush.bf16.msrb.mxu2 %v6343_v23 }
 0xa50   : > { %4848 = vmatpush.bf16.msrb.mxu3 %v6407_v24 }
 0xa51   : > { %4810 = vmatpush.bf16.msrb.mxu0 %v6207_v45 }
 0xa52   : > { %4823 = vmatpush.bf16.msrb.mxu1 %v6271_v46 }
 0xa53   : > { %4836 = vmatpush.bf16.msrb.mxu2 %v6335_v49 }
 0xa54   : > { %4849 = vmatpush.bf16.msrb.mxu3 %v6399_v50 }
 0xa55   : > { %4811 = vmatpush.bf16.msrb.mxu0 %v6199_v17 }
 0xa56   : > { %4824 = vmatpush.bf16.msrb.mxu1 %v6263_v36 }
 0xa57   : > { %4837 = vmatpush.bf16.msrb.mxu2 %v6327_v56 }
 0xa58   : > { %4850 = vmatpush.bf16.msrb.mxu3 %v6391_v33 }
 0xa59   : > { %4812 = vmatpush.bf16.msrb.mxu0 %v6191_v25 }
 0xa5a   : > { %4825 = vmatpush.bf16.msrb.mxu1 %v6255_v21 }
 0xa5b   : > { %4838 = vmatpush.bf16.msrb.mxu2 %v6319_v32 }
 0xa5c   : > { %4851 = vmatpush.bf16.msrb.mxu3 %v6383_v59  ;;  %4813 = vmatmul.bf16.vlgmr.msrb.gmra.mxu0 %v8776_v38 }
 0xa5d   : > { %4826 = vmatmul.bf16.vlgmr.msrb.gmra.mxu1 %v4360_v6 }
 0xa5e   : > { %4839 = vmatmul.bf16.vlgmr.msrb.gmra.mxu2 %v8774_v5 }
 0xa5f   : > { %4852 = vmatmul.bf16.vlgmr.msrb.gmra.mxu3 %v4362_v41 }
 0xac4   : > { %v4762_v60 = vpop.f32.mrf.mxu0 }
 0xac5   : > { %v4763_v8 = vadd.f32 %v4762_v60, %v4429_v29 }
 0xac8   : > { %v4775_v51 = vpop.f32.mrf.mxu1 }
 0xac9   : > { %v4776_v28 = vadd.f32 %v4775_v51, %v4763_v8 }
 0xacb   : > { %v4788_v61 = vpop.f32.mrf.mxu2 }
 0xacc   : > { %v4801_v2 = vpop.f32.mrf.mxu3  ;;  %v4764_v63 = vpop.f32.mrf.mxu0  ;;  %v4789_v34 = vadd.f32 %v4788_v61, %v4776_v28 }
 0xace   : > { %v4802_v39 = vadd.f32 %v4801_v2, %v4789_v34 }
 0xad0   : > { %v4777_v3 = vpop.f32.mrf.mxu1  ;;  %v4857_v41 = vmax.f32 %v4802_v39, 0.0 }
 0xad3   : > { %v4790_v37 = vpop.f32.mrf.mxu2 }
 0xad4   : > { %v4803_v11 = vpop.f32.mrf.mxu3 }
 0xad9   : > { %v4814_v13 = vpop.f32.mrf.mxu0 }
 0xada   : > { %v4827_v20 = vpop.f32.mrf.mxu1  ;;  %v4815_v26 = vadd.f32 %v4814_v13, %v4430_v7 }
 0xadc   : > { %v4828_v30 = vadd.f32 %v4827_v20, %v4815_v26 }
 0xae1   : > { %v4840_v35 = vpop.f32.mrf.mxu2  ;;  %v4816_v5 = vpop.f32.mrf.mxu0 }
 0xae2   : > { %v4853_v54 = vpop.f32.mrf.mxu3  ;;  %v4841_v0 = vadd.f32 %v4840_v35, %v4828_v30  ;;  %v4829_v38 = vpop.f32.mrf.mxu1 }
 0xae4   : > { %v4854_v22 = vadd.f32 %v4853_v54, %v4841_v0 }
 0xae6   : > { %v4858_v40 = vmax.f32 %v4854_v22, 0.0 }
 0xae8   : > { %v4861_v6 = vrot.slane %v4858_v40, 6 }
 0xae9   : > { %v4842_v23 = vpop.f32.mrf.mxu2 }
 0xaea   : > { %v4855_v24 = vpop.f32.mrf.mxu3  ;;  %v4862_v43 = vsel %vm4320_vm2, %v4857_v41, %v4861_v6 }
 0xaeb   : > { %4864 = vst [vmem:[#allocation18] sm:$0xf] %v4862_v43 }
 0xaec PF: > { %p6880_p4 = scmp.eq.s32.totalorder %s7290_s21, 5  ;;  %s7210_s16 = smov [#allocation18]  }
 0xaed   : > { %s4871_s20 = sshll.u32 %s7210_s16, 4  ;;  %s4873_s12 = sshll.u32 %s8811_s11, 4  ;;  %s4872_s20 = int_to_ptr.vmem [resolvable:$true] %s4871_s20  ;;  %s4874_s12 = int_to_ptr.hbm [resolvable:$true] %s4873_s12 }
 0xaee   : > { %6846 = dma.vmem_to_hbm [thread:$0]  (%p6880_p4), %s4872_s20, 64, %s4874_s12, [#allocation10]  }
 0xaef   : > { %7177 = dma.done.wait (%p6880_p4), [#allocation10], 64  }
 0xaf0   : > { %7179 = vsyncadd (%p6880_p4), [#allocation10], 4294967232 }
 0xaf1 PF: > { %p22_p5 = scmp.ge.s32.totalorder %s7339_s14, 8   ;;  %s8856_s17 = smov %s7186_s18 }
 0xaf2   : > { %s8857_s18 = smov %s7190_s19  ;;  %s8858_s19 = smov %s7351_s30 }
 0xaf3   : > { %s8859_s20 = smov %s7339_s14  ;;  %24 = sbr.rel (!%p22_p5) target bundleno = 10 (0xa), region = 232 }
 0xaf8   :  { %4887 = vsyncpa [#allocation9], 1 }
 0xaf9   :  { %4889 = vsyncpa [#allocation9 + $0x1], 1 }
 0xafa   :  { %4890 = vsyncpa [#allocation12], 1 }
 0xafb   :  { %4891 = vsyncpa [#allocation16], 1 }
 0xafc   :  { %4892 = vsyncpa [#allocation10], 1 }
 0xafd   :  { %4894 = vsyncpa [#allocation10 + $0x1], 1 }

</bundles_post_ra>
